<compile_context>
chip_gen: v7x
topology: tpu7x:2x2x1
jax: 0.10.0
libtpu: 0.0.40
codegen_flags: <defaults>
</compile_context>

<pallas_src>
import functools
import math

import jax
import jax.numpy as jnp
from jax.experimental import pallas as pl
from jax.experimental.pallas import tpu as pltpu


# ---------------- Fused encoder-layer kernel (MHA + LN + FFN + LN) ----------

def _encoder_layer_kernel(x_ref, wqkv_ref, bqkv_ref, wo_ref, bo_ref,
                          ln1g_ref, ln1b_ref, w1_ref, b1_ref, w2_ref, b2_ref,
                          ln2g_ref, ln2b_ref,
                          o_ref,
                          qkv_scr, attn_scr, ffn_scr,
                          *, heads_num, eps):
    layer = pl.program_id(1)
    S, D = o_ref.shape[1], o_ref.shape[2]
    Dh = D // heads_num

    # Layer 0: seed the resident activation block with the embedded input.
    # (out index_map ignores the layer axis, so this block stays in VMEM
    #  across all layers of this batch element.)
    @pl.when(layer == 0)
    def _():
        o_ref[0] = x_ref[0]

    # ----------------------- Multi-head self-attention ----------------------
    # Fused QKV projection (1/sqrt(Dh) is pre-folded into the Wq columns).
    x_bf = o_ref[0].astype(jnp.bfloat16)                       # (S, D) bf16
    qkv = jnp.dot(x_bf, wqkv_ref[0],
                  preferred_element_type=jnp.float32)          # (S, 3D) f32
    qkv_scr[...] = (qkv + bqkv_ref[0]).astype(jnp.bfloat16)    # park as bf16

    # Per-head attention; heads are independent (no accumulator chain), each
    # head writes its output into the lane stripe h*Dh of attn_scr, which is
    # exactly the concatenated multi-head layout expected by Wo.
    for h in range(heads_num):
        qh = qkv_scr[:, h * Dh:(h + 1) * Dh]                   # (S, Dh) bf16
        kh = qkv_scr[:, D + h * Dh:D + (h + 1) * Dh]
        vh = qkv_scr[:, 2 * D + h * Dh:2 * D + (h + 1) * Dh]

        # q @ k^T without materializing the transpose (contract on Dh).
        s = jax.lax.dot_general(qh, kh,
                                dimension_numbers=(((1,), (1,)), ((), ())),
                                preferred_element_type=jnp.float32)  # (S, S)
        s = s - jnp.max(s, axis=-1, keepdims=True)
        p = jnp.exp(s)
        # Approximate EUP reciprocal: rows sum to 1 only to ~1e-3 — fine for
        # inference (documented tolerance in the driver check below).
        p = p * pl.reciprocal(jnp.sum(p, axis=-1, keepdims=True), approx=True)

        oh = jnp.dot(p.astype(jnp.bfloat16), vh,
                     preferred_element_type=jnp.float32)       # (S, Dh)
        attn_scr[:, h * Dh:(h + 1) * Dh] = oh.astype(jnp.bfloat16)

    # Single K=D output projection (head merge already done by the scratch
    # lane layout), residual, LayerNorm (f32, biased variance like PyTorch).
    sa = jnp.dot(attn_scr[...], wo_ref[0],
                 preferred_element_type=jnp.float32) + bo_ref[0]
    z = sa + o_ref[0]
    mu = jnp.mean(z, axis=-1, keepdims=True)
    var = jnp.mean(jnp.square(z - mu), axis=-1, keepdims=True)
    y = (z - mu) * jax.lax.rsqrt(var + eps) * ln1g_ref[0] + ln1b_ref[0]
    y_bf = y.astype(jnp.bfloat16)
    o_ref[0] = y            # stash the FFN residual in VMEM (keeps live set small)

    # --------------------------------- FFN ----------------------------------
    h1 = jnp.dot(y_bf, w1_ref[0],
                 preferred_element_type=jnp.float32) + b1_ref[0]     # (S, F)
    ffn_scr[...] = jnp.maximum(h1, 0.0).astype(jnp.bfloat16)         # park bf16
    f = jnp.dot(ffn_scr[...], w2_ref[0],
                preferred_element_type=jnp.float32) + b2_ref[0]      # (S, D)

    z2 = f + o_ref[0]
    mu2 = jnp.mean(z2, axis=-1, keepdims=True)
    var2 = jnp.mean(jnp.square(z2 - mu2), axis=-1, keepdims=True)
    o_ref[0] = (z2 - mu2) * jax.lax.rsqrt(var2 + eps) * ln2g_ref[0] + ln2b_ref[0]


def encoder_stack(x, p, *, heads_num, eps):
    B, S, D = x.shape
    assert D % heads_num == 0
    L = p["wqkv"].shape[0]
    F = p["w1"].shape[2]

    kern = functools.partial(_encoder_layer_kernel, heads_num=heads_num, eps=eps)
    return pl.pallas_call(
        kern,
        out_shape=jax.ShapeDtypeStruct((B, S, D), jnp.float32),
        grid=(B, L),
        in_specs=[
            pl.BlockSpec((1, S, D), lambda b, l: (b, 0, 0)),       # x (layer 0 only)
            pl.BlockSpec((1, D, 3 * D), lambda b, l: (l, 0, 0)),   # wqkv
            pl.BlockSpec((1, 1, 3 * D), lambda b, l: (l, 0, 0)),   # bqkv
            pl.BlockSpec((1, D, D), lambda b, l: (l, 0, 0)),       # wo
            pl.BlockSpec((1, 1, D), lambda b, l: (l, 0, 0)),       # bo
            pl.BlockSpec((1, 1, D), lambda b, l: (l, 0, 0)),       # ln1_g
            pl.BlockSpec((1, 1, D), lambda b, l: (l, 0, 0)),       # ln1_b
            pl.BlockSpec((1, D, F), lambda b, l: (l, 0, 0)),       # w1
            pl.BlockSpec((1, 1, F), lambda b, l: (l, 0, 0)),       # b1
            pl.BlockSpec((1, F, D), lambda b, l: (l, 0, 0)),       # w2
            pl.BlockSpec((1, 1, D), lambda b, l: (l, 0, 0)),       # b2
            pl.BlockSpec((1, 1, D), lambda b, l: (l, 0, 0)),       # ln2_g
            pl.BlockSpec((1, 1, D), lambda b, l: (l, 0, 0)),       # ln2_b
        ],
        # Resident across the layer ("arbitrary") axis -> acts as the carried
        # activation; written back to HBM only when the batch index advances.
        out_specs=pl.BlockSpec((1, S, D), lambda b, l: (b, 0, 0)),
        scratch_shapes=[
            pltpu.VMEM((S, 3 * D), jnp.bfloat16),   # fused QKV result
            pltpu.VMEM((S, D), jnp.bfloat16),       # merged head outputs
            pltpu.VMEM((S, F), jnp.bfloat16),       # FFN hidden (post-ReLU)
        ],
        compiler_params=pltpu.CompilerParams(
            dimension_semantics=("parallel", "arbitrary"),
            vmem_limit_bytes=32 * 1024 * 1024,      # safe on v5e/v6e/v7x
        ),
    )(x, p["wqkv"], p["bqkv"], p["wo"], p["bo"],
      p["ln1_g"], p["ln1_b"], p["w1"], p["b1"], p["w2"], p["b2"],
      p["ln2_g"], p["ln2_b"])


# ----------------------------- Model assembly -------------------------------

def sinusoidal_positional_encoding(max_len, d_model):
    pos = jnp.arange(max_len, dtype=jnp.float32)[:, None]
    i = jnp.arange(d_model)[None, :]
    angle = pos / jnp.power(10000.0, (2 * (i // 2)).astype(jnp.float32) / d_model)
    pe = jnp.where(i % 2 == 0, jnp.sin(angle), jnp.cos(angle))
    return pe.astype(jnp.float32)                   # (max_len, d_model)


def transformer_encoder_forward(tokens, params, heads_num, eps):
    # Embedding gather (pad_idx row is zero) + positional encoding: JAX glue.
    emb = params["embedding"][tokens]               # (B, S, D)
    S = tokens.shape[1]
    x = emb + params["pos_enc"][:S][None, :, :]
    return encoder_stack(x, params, heads_num=heads_num, eps=eps)


# ----------------------------- Parameter init -------------------------------

def init_params(key, vocab_size, max_len, pad_idx, d_model, N, d_ff, heads_num):
    keys = jax.random.split(key, 1 + N)
    embedding = 0.1 * jax.random.normal(keys[0], (vocab_size, d_model), jnp.float32)
    embedding = embedding.at[pad_idx].set(0.0)      # padding_idx row is zero

    scale = 1.0 / math.sqrt(d_model // heads_num)

    def lin(k, fan_in, fan_out):
        bound = 1.0 / math.sqrt(fan_in)
        kw, kb = jax.random.split(k)
        w = jax.random.uniform(kw, (fan_in, fan_out), jnp.float32, -bound, bound)
        b = jax.random.uniform(kb, (1, fan_out), jnp.float32, -bound, bound)
        return w, b

    names = ["wqkv", "bqkv", "wo", "bo", "w1", "b1", "w2", "b2",
             "ln1_g", "ln1_b", "ln2_g", "ln2_b"]
    stack = {n: [] for n in names}
    for n in range(N):
        bk = jax.random.split(keys[1 + n], 6)
        wq, bq = lin(bk[0], d_model, d_model)
        wk, bkk = lin(bk[1], d_model, d_model)
        wv, bv = lin(bk[2], d_model, d_model)
        wo, bo = lin(bk[3], d_model, d_model)
        w1, b1 = lin(bk[4], d_model, d_ff)
        w2, b2 = lin(bk[5], d_ff, d_model)
        # Fold the 1/sqrt(Dh) attention scale into Wq / bq (compile-time free).
        stack["wqkv"].append(jnp.concatenate([wq * scale, wk, wv], axis=1))
        stack["bqkv"].append(jnp.concatenate([bq * scale, bkk, bv], axis=1))
        stack["wo"].append(wo)
        stack["bo"].append(bo)
        stack["w1"].append(w1)
        stack["b1"].append(b1)
        stack["w2"].append(w2)
        stack["b2"].append(b2)
        stack["ln1_g"].append(jnp.ones((1, d_model), jnp.float32))
        stack["ln1_b"].append(jnp.zeros((1, d_model), jnp.float32))
        stack["ln2_g"].append(jnp.ones((1, d_model), jnp.float32))
        stack["ln2_b"].append(jnp.zeros((1, d_model), jnp.float32))

    params = {k: jnp.stack(v, axis=0) for k, v in stack.items()}
    # MXU operands stored bf16; biases / LayerNorm params stay f32.
    for k in ("wqkv", "wo", "w1", "w2"):
        params[k] = params[k].astype(jnp.bfloat16)
    params["embedding"] = embedding
    params["pos_enc"] = sinusoidal_positional_encoding(max_len, d_model)
    return params


# ------------------------- Pure-JAX reference (f32) --------------------------

def _layernorm(z, g, b, eps):
    mu = jnp.mean(z, axis=-1, keepdims=True)
    var = jnp.mean(jnp.square(z - mu), axis=-1, keepdims=True)
    return (z - mu) * jax.lax.rsqrt(var + eps) * g + b


def reference_forward(tokens, params, heads_num, eps):
    emb = params["embedding"][tokens]
    S = tokens.shape[1]
    x = emb + params["pos_enc"][:S][None, :, :]
    L, D = params["wqkv"].shape[0], x.shape[-1]
    Dh = D // heads_num
    with jax.default_matmul_precision("highest"):
        for l in range(L):
            wqkv = params["wqkv"][l].astype(jnp.float32)
            qkv = x @ wqkv + params["bqkv"][l]                       # (B,S,3D)
            q, k, v = qkv[..., :D], qkv[..., D:2 * D], qkv[..., 2 * D:]
            B_, S_, _ = q.shape
            q = q.reshape(B_, S_, heads_num, Dh).transpose(0, 2, 1, 3)
            k = k.reshape(B_, S_, heads_num, Dh).transpose(0, 2, 1, 3)
            v = v.reshape(B_, S_, heads_num, Dh).transpose(0, 2, 1, 3)
            s = jnp.einsum("bhqd,bhkd->bhqk", q, k)    # scale already folded
            p = jax.nn.softmax(s, axis=-1)
            o = jnp.einsum("bhqk,bhkd->bhqd", p, v)
            o = o.transpose(0, 2, 1, 3).reshape(B_, S_, D)
            sa = o @ params["wo"][l].astype(jnp.float32) + params["bo"][l]
            x = _layernorm(sa + x, params["ln1_g"][l], params["ln1_b"][l], eps)
            h = jnp.maximum(x @ params["w1"][l].astype(jnp.float32)
                            + params["b1"][l], 0.0)
            f = h @ params["w2"][l].astype(jnp.float32) + params["b2"][l]
            x = _layernorm(f + x, params["ln2_g"][l], params["ln2_b"][l], eps)
    return x


# --------------------------------- Driver ------------------------------------

if __name__ == "__main__":
    vocab_size = 100
    max_len = 128
    pad_idx = 0
    d_model = 128        # lane-dense (multiple of 128)
    N = 2
    d_ff = 512           # lane-dense
    heads_num = 4
    layer_norm_eps = 1e-5

    B, S = 2, 128        # B=2 -> 2 "parallel" grid steps (both v7x TCs used)

    key = jax.random.PRNGKey(0)
    k_param, k_tok = jax.random.split(key)
    params = init_params(k_param, vocab_size, max_len, pad_idx,
                         d_model, N, d_ff, heads_num)

    tokens = jax.random.randint(k_tok, (B, S), 0, vocab_size, dtype=jnp.int32)
    tokens = tokens.at[:, -1].set(pad_idx)          # include a pad token

    fwd = jax.jit(transformer_encoder_forward, static_argnums=(2, 3))
    out = fwd(tokens, params, heads_num, layer_norm_eps)
    out = jax.block_until_ready(out)

    assert out.shape == (B, S, d_model), out.shape
    assert jnp.all(jnp.isfinite(out))

    # Loose tolerance: kernel uses bf16 MXU operands + approx EUP reciprocal
    # in the softmax denominator; reference is f32 throughout.
    ref = reference_forward(tokens, params, heads_num, layer_norm_eps)
    err = float(jnp.max(jnp.abs(out - ref)))
    assert err < 5e-2, f"max abs error vs f32 reference: {err}"

    print("KERNEL_OK")
</pallas_src>

<mosaic_0001>
module attributes {stable_mosaic.version = 11 : i64} {
  func.func @_encoder_layer_kernel(%arg0: i32, %arg1: i32, %arg2: memref<1x128x128xf32, #tpu.memory_space<vmem>>, %arg3: memref<1x128x384xbf16, #tpu.memory_space<vmem>>, %arg4: memref<1x1x384xf32, #tpu.memory_space<vmem>>, %arg5: memref<1x128x128xbf16, #tpu.memory_space<vmem>>, %arg6: memref<1x1x128xf32, #tpu.memory_space<vmem>>, %arg7: memref<1x1x128xf32, #tpu.memory_space<vmem>>, %arg8: memref<1x1x128xf32, #tpu.memory_space<vmem>>, %arg9: memref<1x128x512xbf16, #tpu.memory_space<vmem>>, %arg10: memref<1x1x512xf32, #tpu.memory_space<vmem>>, %arg11: memref<1x512x128xbf16, #tpu.memory_space<vmem>>, %arg12: memref<1x1x128xf32, #tpu.memory_space<vmem>>, %arg13: memref<1x1x128xf32, #tpu.memory_space<vmem>>, %arg14: memref<1x1x128xf32, #tpu.memory_space<vmem>>, %arg15: memref<1x128x128xf32, #tpu.memory_space<vmem>>, %arg16: memref<128x384xbf16, #tpu.memory_space<vmem>>, %arg17: memref<128x128xbf16, #tpu.memory_space<vmem>>, %arg18: memref<128x512xbf16, #tpu.memory_space<vmem>>) attributes {dimension_semantics = [#tpu.dimension_semantics<parallel>, #tpu.dimension_semantics<arbitrary>], iteration_bounds = array<i64: 2, 2>, scalar_prefetch = 0 : i64, scratch_operands = 3 : i64, tpu.core_type = #tpu.core_type<tc>, window_params = [{transform_indices = @transform_0, window_bounds = array<i64: 1, 128, 128>}, {transform_indices = @transform_1, window_bounds = array<i64: 1, 128, 384>}, {transform_indices = @transform_2, window_bounds = array<i64: 1, 1, 384>}, {transform_indices = @transform_3, window_bounds = array<i64: 1, 128, 128>}, {transform_indices = @transform_4, window_bounds = array<i64: 1, 1, 128>}, {transform_indices = @transform_5, window_bounds = array<i64: 1, 1, 128>}, {transform_indices = @transform_6, window_bounds = array<i64: 1, 1, 128>}, {transform_indices = @transform_7, window_bounds = array<i64: 1, 128, 512>}, {transform_indices = @transform_8, window_bounds = array<i64: 1, 1, 512>}, {transform_indices = @transform_9, window_bounds = array<i64: 1, 512, 128>}, {transform_indices = @transform_10, window_bounds = array<i64: 1, 1, 128>}, {transform_indices = @transform_11, window_bounds = array<i64: 1, 1, 128>}, {transform_indices = @transform_12, window_bounds = array<i64: 1, 1, 128>}, {transform_indices = @transform_13, window_bounds = array<i64: 1, 128, 128>}]} {
    %c0_i32 = arith.constant 0 : i32
    %0 = arith.cmpi eq, %arg1, %c0_i32 : i32
    %1 = arith.extui %0 : i1 to i32
    %c0_i32_0 = arith.constant 0 : i32
    %2 = arith.cmpi ne, %1, %c0_i32_0 : i32
    scf.if %2 {
      %c0_110 = arith.constant 0 : index
      %c0_111 = arith.constant 0 : index
      %c0_112 = arith.constant 0 : index
      %179 = vector.load %arg2[%c0_110, %c0_111, %c0_112] : memref<1x128x128xf32, #tpu.memory_space<vmem>>, vector<1x128x128xf32>
      %180 = vector.shape_cast %179 : vector<1x128x128xf32> to vector<128x128xf32>
      %c0_113 = arith.constant 0 : index
      %c0_114 = arith.constant 0 : index
      %c0_115 = arith.constant 0 : index
      %181 = vector.load %arg15[%c0_113, %c0_114, %c0_115] : memref<1x128x128xf32, #tpu.memory_space<vmem>>, vector<1x128x128xf32>
      %182 = vector.shape_cast %181 : vector<1x128x128xf32> to vector<128x128xf32>
      %183 = vector.shape_cast %180 : vector<128x128xf32> to vector<1x128x128xf32>
      tpu.vector_store %arg15[%c0_113, %c0_114, %c0_115], %183 {strides = array<i32>} : memref<1x128x128xf32, #tpu.memory_space<vmem>>, vector<1x128x128xf32>,
    } else {
    }
    %c0 = arith.constant 0 : index
    %c0_1 = arith.constant 0 : index
    %c0_2 = arith.constant 0 : index
    %3 = vector.load %arg15[%c0, %c0_1, %c0_2] : memref<1x128x128xf32, #tpu.memory_space<vmem>>, vector<1x128x128xf32>
    %4 = vector.shape_cast %3 : vector<1x128x128xf32> to vector<128x128xf32>
    %5 = arith.truncf %4 : vector<128x128xf32> to vector<128x128xbf16>
    %c0_3 = arith.constant 0 : index
    %c0_4 = arith.constant 0 : index
    %c0_5 = arith.constant 0 : index
    %6 = vector.load %arg3[%c0_3, %c0_4, %c0_5] : memref<1x128x384xbf16, #tpu.memory_space<vmem>>, vector<1x128x384xbf16>
    %7 = vector.shape_cast %6 : vector<1x128x384xbf16> to vector<128x384xbf16>
    %cst = arith.constant dense<0.000000e+00> : vector<128x384xf32>
    %8 = tpu.matmul %5, %7, %cst {dimension_numbers = #tpu.dot_dimension_numbers<[1], [0], [0], [1], [0, 0, 1, 1], [], []>} : vector<128x128xbf16>, vector<128x384xbf16>, vector<128x384xf32> -> vector<128x384xf32>
    %c0_6 = arith.constant 0 : index
    %c0_7 = arith.constant 0 : index
    %c0_8 = arith.constant 0 : index
    %9 = vector.load %arg4[%c0_6, %c0_7, %c0_8] : memref<1x1x384xf32, #tpu.memory_space<vmem>>, vector<1x1x384xf32>
    %10 = vector.shape_cast %9 : vector<1x1x384xf32> to vector<1x384xf32>
    %11 = vector.broadcast %10 : vector<1x384xf32> to vector<128x384xf32>
    %12 = arith.addf %8, %11 : vector<128x384xf32>
    %13 = arith.truncf %12 : vector<128x384xf32> to vector<128x384xbf16>
    %c0_9 = arith.constant 0 : index
    %c0_10 = arith.constant 0 : index
    %14 = vector.load %arg16[%c0_9, %c0_10] : memref<128x384xbf16, #tpu.memory_space<vmem>>, vector<128x384xbf16>
    tpu.vector_store %arg16[%c0_9, %c0_10], %13 {strides = array<i32>} : memref<128x384xbf16, #tpu.memory_space<vmem>>, vector<128x384xbf16>,
    %c0_11 = arith.constant 0 : index
    %c0_12 = arith.constant 0 : index
    %15 = vector.load %arg16[%c0_11, %c0_12] : memref<128x384xbf16, #tpu.memory_space<vmem>>, vector<128x32xbf16>
    %c0_13 = arith.constant 0 : index
    %c128 = arith.constant 128 : index
    %16 = vector.load %arg16[%c0_13, %c128] : memref<128x384xbf16, #tpu.memory_space<vmem>>, vector<128x32xbf16>
    %c0_14 = arith.constant 0 : index
    %c256 = arith.constant 256 : index
    %17 = vector.load %arg16[%c0_14, %c256] : memref<128x384xbf16, #tpu.memory_space<vmem>>, vector<128x32xbf16>
    %cst_15 = arith.constant dense<0.000000e+00> : vector<128x128xf32>
    %18 = tpu.matmul %15, %16, %cst_15 {dimension_numbers = #tpu.dot_dimension_numbers<[1], [1], [0], [0], [0, 0, 1, 0], [], []>} : vector<128x32xbf16>, vector<128x32xbf16>, vector<128x128xf32> -> vector<128x128xf32>
    %cst_16 = arith.constant dense<0xFF800000> : vector<128xf32>
    %19 = vector.multi_reduction <maximumf>, %18, %cst_16 [1] : vector<128x128xf32> to vector<128xf32>
    %20 = vector.shape_cast %19 : vector<128xf32> to vector<128x1xf32>
    %21 = vector.broadcast %20 : vector<128x1xf32> to vector<128x128xf32>
    %22 = arith.subf %18, %21 : vector<128x128xf32>
    %23 = math.exp %22 : vector<128x128xf32>
    %cst_17 = arith.constant dense<0.000000e+00> : vector<128xf32>
    %24 = vector.multi_reduction <add>, %23, %cst_17 [1] : vector<128x128xf32> to vector<128xf32>
    %25 = vector.shape_cast %24 : vector<128xf32> to vector<128x1xf32>
    %26 = tpu.reciprocal %25 {approx = true} : vector<128x1xf32> -> vector<128x1xf32>
    %27 = vector.broadcast %26 : vector<128x1xf32> to vector<128x128xf32>
    %28 = arith.mulf %23, %27 : vector<128x128xf32>
    %29 = arith.truncf %28 : vector<128x128xf32> to vector<128x128xbf16>
    %cst_18 = arith.constant dense<0.000000e+00> : vector<128x32xf32>
    %30 = tpu.matmul %29, %17, %cst_18 {dimension_numbers = #tpu.dot_dimension_numbers<[1], [0], [0], [1], [0, 0, 1, 1], [], []>} : vector<128x128xbf16>, vector<128x32xbf16>, vector<128x32xf32> -> vector<128x32xf32>
    %31 = arith.truncf %30 : vector<128x32xf32> to vector<128x32xbf16>
    %c0_19 = arith.constant 0 : index
    %c0_20 = arith.constant 0 : index
    %32 = vector.load %arg17[%c0_19, %c0_20] : memref<128x128xbf16, #tpu.memory_space<vmem>>, vector<128x32xbf16>
    tpu.vector_store %arg17[%c0_19, %c0_20], %31 {strides = array<i32>} : memref<128x128xbf16, #tpu.memory_space<vmem>>, vector<128x32xbf16>,
    %c0_21 = arith.constant 0 : index
    %c32 = arith.constant 32 : index
    %33 = vector.load %arg16[%c0_21, %c32] : memref<128x384xbf16, #tpu.memory_space<vmem>>, vector<128x32xbf16>
    %c0_22 = arith.constant 0 : index
    %c160 = arith.constant 160 : index
    %34 = vector.load %arg16[%c0_22, %c160] : memref<128x384xbf16, #tpu.memory_space<vmem>>, vector<128x32xbf16>
    %c0_23 = arith.constant 0 : index
    %c288 = arith.constant 288 : index
    %35 = vector.load %arg16[%c0_23, %c288] : memref<128x384xbf16, #tpu.memory_space<vmem>>, vector<128x32xbf16>
    %cst_24 = arith.constant dense<0.000000e+00> : vector<128x128xf32>
    %36 = tpu.matmul %33, %34, %cst_24 {dimension_numbers = #tpu.dot_dimension_numbers<[1], [1], [0], [0], [0, 0, 1, 0], [], []>} : vector<128x32xbf16>, vector<128x32xbf16>, vector<128x128xf32> -> vector<128x128xf32>
    %cst_25 = arith.constant dense<0xFF800000> : vector<128xf32>
    %37 = vector.multi_reduction <maximumf>, %36, %cst_25 [1] : vector<128x128xf32> to vector<128xf32>
    %38 = vector.shape_cast %37 : vector<128xf32> to vector<128x1xf32>
    %39 = vector.broadcast %38 : vector<128x1xf32> to vector<128x128xf32>
    %40 = arith.subf %36, %39 : vector<128x128xf32>
    %41 = math.exp %40 : vector<128x128xf32>
    %cst_26 = arith.constant dense<0.000000e+00> : vector<128xf32>
    %42 = vector.multi_reduction <add>, %41, %cst_26 [1] : vector<128x128xf32> to vector<128xf32>
    %43 = vector.shape_cast %42 : vector<128xf32> to vector<128x1xf32>
    %44 = tpu.reciprocal %43 {approx = true} : vector<128x1xf32> -> vector<128x1xf32>
    %45 = vector.broadcast %44 : vector<128x1xf32> to vector<128x128xf32>
    %46 = arith.mulf %41, %45 : vector<128x128xf32>
    %47 = arith.truncf %46 : vector<128x128xf32> to vector<128x128xbf16>
    %cst_27 = arith.constant dense<0.000000e+00> : vector<128x32xf32>
    %48 = tpu.matmul %47, %35, %cst_27 {dimension_numbers = #tpu.dot_dimension_numbers<[1], [0], [0], [1], [0, 0, 1, 1], [], []>} : vector<128x128xbf16>, vector<128x32xbf16>, vector<128x32xf32> -> vector<128x32xf32>
    %49 = arith.truncf %48 : vector<128x32xf32> to vector<128x32xbf16>
    %c0_28 = arith.constant 0 : index
    %c32_29 = arith.constant 32 : index
    %50 = vector.load %arg17[%c0_28, %c32_29] : memref<128x128xbf16, #tpu.memory_space<vmem>>, vector<128x32xbf16>
    tpu.vector_store %arg17[%c0_28, %c32_29], %49 {strides = array<i32>} : memref<128x128xbf16, #tpu.memory_space<vmem>>, vector<128x32xbf16>,
    %c0_30 = arith.constant 0 : index
    %c64 = arith.constant 64 : index
    %51 = vector.load %arg16[%c0_30, %c64] : memref<128x384xbf16, #tpu.memory_space<vmem>>, vector<128x32xbf16>
    %c0_31 = arith.constant 0 : index
    %c192 = arith.constant 192 : index
    %52 = vector.load %arg16[%c0_31, %c192] : memref<128x384xbf16, #tpu.memory_space<vmem>>, vector<128x32xbf16>
    %c0_32 = arith.constant 0 : index
    %c320 = arith.constant 320 : index
    %53 = vector.load %arg16[%c0_32, %c320] : memref<128x384xbf16, #tpu.memory_space<vmem>>, vector<128x32xbf16>
    %cst_33 = arith.constant dense<0.000000e+00> : vector<128x128xf32>
    %54 = tpu.matmul %51, %52, %cst_33 {dimension_numbers = #tpu.dot_dimension_numbers<[1], [1], [0], [0], [0, 0, 1, 0], [], []>} : vector<128x32xbf16>, vector<128x32xbf16>, vector<128x128xf32> -> vector<128x128xf32>
    %cst_34 = arith.constant dense<0xFF800000> : vector<128xf32>
    %55 = vector.multi_reduction <maximumf>, %54, %cst_34 [1] : vector<128x128xf32> to vector<128xf32>
    %56 = vector.shape_cast %55 : vector<128xf32> to vector<128x1xf32>
    %57 = vector.broadcast %56 : vector<128x1xf32> to vector<128x128xf32>
    %58 = arith.subf %54, %57 : vector<128x128xf32>
    %59 = math.exp %58 : vector<128x128xf32>
    %cst_35 = arith.constant dense<0.000000e+00> : vector<128xf32>
    %60 = vector.multi_reduction <add>, %59, %cst_35 [1] : vector<128x128xf32> to vector<128xf32>
    %61 = vector.shape_cast %60 : vector<128xf32> to vector<128x1xf32>
    %62 = tpu.reciprocal %61 {approx = true} : vector<128x1xf32> -> vector<128x1xf32>
    %63 = vector.broadcast %62 : vector<128x1xf32> to vector<128x128xf32>
    %64 = arith.mulf %59, %63 : vector<128x128xf32>
    %65 = arith.truncf %64 : vector<128x128xf32> to vector<128x128xbf16>
    %cst_36 = arith.constant dense<0.000000e+00> : vector<128x32xf32>
    %66 = tpu.matmul %65, %53, %cst_36 {dimension_numbers = #tpu.dot_dimension_numbers<[1], [0], [0], [1], [0, 0, 1, 1], [], []>} : vector<128x128xbf16>, vector<128x32xbf16>, vector<128x32xf32> -> vector<128x32xf32>
    %67 = arith.truncf %66 : vector<128x32xf32> to vector<128x32xbf16>
    %c0_37 = arith.constant 0 : index
    %c64_38 = arith.constant 64 : index
    %68 = vector.load %arg17[%c0_37, %c64_38] : memref<128x128xbf16, #tpu.memory_space<vmem>>, vector<128x32xbf16>
    tpu.vector_store %arg17[%c0_37, %c64_38], %67 {strides = array<i32>} : memref<128x128xbf16, #tpu.memory_space<vmem>>, vector<128x32xbf16>,
    %c0_39 = arith.constant 0 : index
    %c96 = arith.constant 96 : index
    %69 = vector.load %arg16[%c0_39, %c96] : memref<128x384xbf16, #tpu.memory_space<vmem>>, vector<128x32xbf16>
    %c0_40 = arith.constant 0 : index
    %c224 = arith.constant 224 : index
    %70 = vector.load %arg16[%c0_40, %c224] : memref<128x384xbf16, #tpu.memory_space<vmem>>, vector<128x32xbf16>
    %c0_41 = arith.constant 0 : index
    %c352 = arith.constant 352 : index
    %71 = vector.load %arg16[%c0_41, %c352] : memref<128x384xbf16, #tpu.memory_space<vmem>>, vector<128x32xbf16>
    %cst_42 = arith.constant dense<0.000000e+00> : vector<128x128xf32>
    %72 = tpu.matmul %69, %70, %cst_42 {dimension_numbers = #tpu.dot_dimension_numbers<[1], [1], [0], [0], [0, 0, 1, 0], [], []>} : vector<128x32xbf16>, vector<128x32xbf16>, vector<128x128xf32> -> vector<128x128xf32>
    %cst_43 = arith.constant dense<0xFF800000> : vector<128xf32>
    %73 = vector.multi_reduction <maximumf>, %72, %cst_43 [1] : vector<128x128xf32> to vector<128xf32>
    %74 = vector.shape_cast %73 : vector<128xf32> to vector<128x1xf32>
    %75 = vector.broadcast %74 : vector<128x1xf32> to vector<128x128xf32>
    %76 = arith.subf %72, %75 : vector<128x128xf32>
    %77 = math.exp %76 : vector<128x128xf32>
    %cst_44 = arith.constant dense<0.000000e+00> : vector<128xf32>
    %78 = vector.multi_reduction <add>, %77, %cst_44 [1] : vector<128x128xf32> to vector<128xf32>
    %79 = vector.shape_cast %78 : vector<128xf32> to vector<128x1xf32>
    %80 = tpu.reciprocal %79 {approx = true} : vector<128x1xf32> -> vector<128x1xf32>
    %81 = vector.broadcast %80 : vector<128x1xf32> to vector<128x128xf32>
    %82 = arith.mulf %77, %81 : vector<128x128xf32>
    %83 = arith.truncf %82 : vector<128x128xf32> to vector<128x128xbf16>
    %cst_45 = arith.constant dense<0.000000e+00> : vector<128x32xf32>
    %84 = tpu.matmul %83, %71, %cst_45 {dimension_numbers = #tpu.dot_dimension_numbers<[1], [0], [0], [1], [0, 0, 1, 1], [], []>} : vector<128x128xbf16>, vector<128x32xbf16>, vector<128x32xf32> -> vector<128x32xf32>
    %85 = arith.truncf %84 : vector<128x32xf32> to vector<128x32xbf16>
    %c0_46 = arith.constant 0 : index
    %c96_47 = arith.constant 96 : index
    %86 = vector.load %arg17[%c0_46, %c96_47] : memref<128x128xbf16, #tpu.memory_space<vmem>>, vector<128x32xbf16>
    tpu.vector_store %arg17[%c0_46, %c96_47], %85 {strides = array<i32>} : memref<128x128xbf16, #tpu.memory_space<vmem>>, vector<128x32xbf16>,
    %c0_48 = arith.constant 0 : index
    %c0_49 = arith.constant 0 : index
    %87 = vector.load %arg17[%c0_48, %c0_49] : memref<128x128xbf16, #tpu.memory_space<vmem>>, vector<128x128xbf16>
    %c0_50 = arith.constant 0 : index
    %c0_51 = arith.constant 0 : index
    %c0_52 = arith.constant 0 : index
    %88 = vector.load %arg5[%c0_50, %c0_51, %c0_52] : memref<1x128x128xbf16, #tpu.memory_space<vmem>>, vector<1x128x128xbf16>
    %89 = vector.shape_cast %88 : vector<1x128x128xbf16> to vector<128x128xbf16>
    %cst_53 = arith.constant dense<0.000000e+00> : vector<128x128xf32>
    %90 = tpu.matmul %87, %89, %cst_53 {dimension_numbers = #tpu.dot_dimension_numbers<[1], [0], [0], [1], [0, 0, 1, 1], [], []>} : vector<128x128xbf16>, vector<128x128xbf16>, vector<128x128xf32> -> vector<128x128xf32>
    %c0_54 = arith.constant 0 : index
    %c0_55 = arith.constant 0 : index
    %c0_56 = arith.constant 0 : index
    %91 = vector.load %arg6[%c0_54, %c0_55, %c0_56] : memref<1x1x128xf32, #tpu.memory_space<vmem>>, vector<1x1x128xf32>
    %92 = vector.shape_cast %91 : vector<1x1x128xf32> to vector<1x128xf32>
    %93 = vector.broadcast %92 : vector<1x128xf32> to vector<128x128xf32>
    %94 = arith.addf %90, %93 : vector<128x128xf32>
    %c0_57 = arith.constant 0 : index
    %c0_58 = arith.constant 0 : index
    %c0_59 = arith.constant 0 : index
    %95 = vector.load %arg15[%c0_57, %c0_58, %c0_59] : memref<1x128x128xf32, #tpu.memory_space<vmem>>, vector<1x128x128xf32>
    %96 = vector.shape_cast %95 : vector<1x128x128xf32> to vector<128x128xf32>
    %97 = arith.addf %94, %96 : vector<128x128xf32>
    %cst_60 = arith.constant dense<0.000000e+00> : vector<128xf32>
    %98 = vector.multi_reduction <add>, %97, %cst_60 [1] : vector<128x128xf32> to vector<128xf32>
    %99 = vector.shape_cast %98 : vector<128xf32> to vector<128x1xf32>
    %cst_61 = arith.constant 1.280000e+02 : f32
    %100 = vector.broadcast %cst_61 : f32 to vector<128x1xf32>
    %101 = arith.divf %99, %100 : vector<128x1xf32>
    %102 = vector.broadcast %101 : vector<128x1xf32> to vector<128x128xf32>
    %103 = arith.subf %97, %102 : vector<128x128xf32>
    %104 = arith.mulf %103, %103 : vector<128x128xf32>
    %cst_62 = arith.constant dense<0.000000e+00> : vector<128xf32>
    %105 = vector.multi_reduction <add>, %104, %cst_62 [1] : vector<128x128xf32> to vector<128xf32>
    %106 = vector.shape_cast %105 : vector<128xf32> to vector<128x1xf32>
    %cst_63 = arith.constant 1.280000e+02 : f32
    %107 = vector.broadcast %cst_63 : f32 to vector<128x1xf32>
    %108 = arith.divf %106, %107 : vector<128x1xf32>
    %109 = vector.broadcast %101 : vector<128x1xf32> to vector<128x128xf32>
    %110 = arith.subf %97, %109 : vector<128x128xf32>
    %cst_64 = arith.constant 9.99999974E-6 : f32
    %111 = vector.broadcast %cst_64 : f32 to vector<128x1xf32>
    %112 = arith.addf %108, %111 : vector<128x1xf32>
    %113 = math.rsqrt %112 : vector<128x1xf32>
    %114 = vector.broadcast %113 : vector<128x1xf32> to vector<128x128xf32>
    %115 = arith.mulf %110, %114 : vector<128x128xf32>
    %c0_65 = arith.constant 0 : index
    %c0_66 = arith.constant 0 : index
    %c0_67 = arith.constant 0 : index
    %116 = vector.load %arg7[%c0_65, %c0_66, %c0_67] : memref<1x1x128xf32, #tpu.memory_space<vmem>>, vector<1x1x128xf32>
    %117 = vector.shape_cast %116 : vector<1x1x128xf32> to vector<1x128xf32>
    %118 = vector.broadcast %117 : vector<1x128xf32> to vector<128x128xf32>
    %119 = arith.mulf %115, %118 : vector<128x128xf32>
    %c0_68 = arith.constant 0 : index
    %c0_69 = arith.constant 0 : index
    %c0_70 = arith.constant 0 : index
    %120 = vector.load %arg8[%c0_68, %c0_69, %c0_70] : memref<1x1x128xf32, #tpu.memory_space<vmem>>, vector<1x1x128xf32>
    %121 = vector.shape_cast %120 : vector<1x1x128xf32> to vector<1x128xf32>
    %122 = vector.broadcast %121 : vector<1x128xf32> to vector<128x128xf32>
    %123 = arith.addf %119, %122 : vector<128x128xf32>
    %124 = arith.truncf %123 : vector<128x128xf32> to vector<128x128xbf16>
    %c0_71 = arith.constant 0 : index
    %c0_72 = arith.constant 0 : index
    %c0_73 = arith.constant 0 : index
    %125 = vector.load %arg15[%c0_71, %c0_72, %c0_73] : memref<1x128x128xf32, #tpu.memory_space<vmem>>, vector<1x128x128xf32>
    %126 = vector.shape_cast %125 : vector<1x128x128xf32> to vector<128x128xf32>
    %127 = vector.shape_cast %123 : vector<128x128xf32> to vector<1x128x128xf32>
    tpu.vector_store %arg15[%c0_71, %c0_72, %c0_73], %127 {strides = array<i32>} : memref<1x128x128xf32, #tpu.memory_space<vmem>>, vector<1x128x128xf32>,
    %c0_74 = arith.constant 0 : index
    %c0_75 = arith.constant 0 : index
    %c0_76 = arith.constant 0 : index
    %128 = vector.load %arg9[%c0_74, %c0_75, %c0_76] : memref<1x128x512xbf16, #tpu.memory_space<vmem>>, vector<1x128x512xbf16>
    %129 = vector.shape_cast %128 : vector<1x128x512xbf16> to vector<128x512xbf16>
    %cst_77 = arith.constant dense<0.000000e+00> : vector<128x512xf32>
    %130 = tpu.matmul %124, %129, %cst_77 {dimension_numbers = #tpu.dot_dimension_numbers<[1], [0], [0], [1], [0, 0, 1, 1], [], []>} : vector<128x128xbf16>, vector<128x512xbf16>, vector<128x512xf32> -> vector<128x512xf32>
    %c0_78 = arith.constant 0 : index
    %c0_79 = arith.constant 0 : index
    %c0_80 = arith.constant 0 : index
    %131 = vector.load %arg10[%c0_78, %c0_79, %c0_80] : memref<1x1x512xf32, #tpu.memory_space<vmem>>, vector<1x1x512xf32>
    %132 = vector.shape_cast %131 : vector<1x1x512xf32> to vector<1x512xf32>
    %133 = vector.broadcast %132 : vector<1x512xf32> to vector<128x512xf32>
    %134 = arith.addf %130, %133 : vector<128x512xf32>
    %cst_81 = arith.constant 0.000000e+00 : f32
    %135 = vector.broadcast %cst_81 : f32 to vector<128x512xf32>
    %136 = arith.maximumf %134, %135 : vector<128x512xf32>
    %137 = arith.truncf %136 : vector<128x512xf32> to vector<128x512xbf16>
    %c0_82 = arith.constant 0 : index
    %c0_83 = arith.constant 0 : index
    %138 = vector.load %arg18[%c0_82, %c0_83] : memref<128x512xbf16, #tpu.memory_space<vmem>>, vector<128x512xbf16>
    tpu.vector_store %arg18[%c0_82, %c0_83], %137 {strides = array<i32>} : memref<128x512xbf16, #tpu.memory_space<vmem>>, vector<128x512xbf16>,
    %c0_84 = arith.constant 0 : index
    %c0_85 = arith.constant 0 : index
    %139 = vector.load %arg18[%c0_84, %c0_85] : memref<128x512xbf16, #tpu.memory_space<vmem>>, vector<128x512xbf16>
    %c0_86 = arith.constant 0 : index
    %c0_87 = arith.constant 0 : index
    %c0_88 = arith.constant 0 : index
    %140 = vector.load %arg11[%c0_86, %c0_87, %c0_88] : memref<1x512x128xbf16, #tpu.memory_space<vmem>>, vector<1x512x128xbf16>
    %141 = vector.shape_cast %140 : vector<1x512x128xbf16> to vector<512x128xbf16>
    %cst_89 = arith.constant dense<0.000000e+00> : vector<128x128xf32>
    %142 = tpu.matmul %139, %141, %cst_89 {dimension_numbers = #tpu.dot_dimension_numbers<[1], [0], [0], [1], [0, 0, 1, 1], [], []>} : vector<128x512xbf16>, vector<512x128xbf16>, vector<128x128xf32> -> vector<128x128xf32>
    %c0_90 = arith.constant 0 : index
    %c0_91 = arith.constant 0 : index
    %c0_92 = arith.constant 0 : index
    %143 = vector.load %arg12[%c0_90, %c0_91, %c0_92] : memref<1x1x128xf32, #tpu.memory_space<vmem>>, vector<1x1x128xf32>
    %144 = vector.shape_cast %143 : vector<1x1x128xf32> to vector<1x128xf32>
    %145 = vector.broadcast %144 : vector<1x128xf32> to vector<128x128xf32>
    %146 = arith.addf %142, %145 : vector<128x128xf32>
    %c0_93 = arith.constant 0 : index
    %c0_94 = arith.constant 0 : index
    %c0_95 = arith.constant 0 : index
    %147 = vector.load %arg15[%c0_93, %c0_94, %c0_95] : memref<1x128x128xf32, #tpu.memory_space<vmem>>, vector<1x128x128xf32>
    %148 = vector.shape_cast %147 : vector<1x128x128xf32> to vector<128x128xf32>
    %149 = arith.addf %146, %148 : vector<128x128xf32>
    %cst_96 = arith.constant dense<0.000000e+00> : vector<128xf32>
    %150 = vector.multi_reduction <add>, %149, %cst_96 [1] : vector<128x128xf32> to vector<128xf32>
    %151 = vector.shape_cast %150 : vector<128xf32> to vector<128x1xf32>
    %cst_97 = arith.constant 1.280000e+02 : f32
    %152 = vector.broadcast %cst_97 : f32 to vector<128x1xf32>
    %153 = arith.divf %151, %152 : vector<128x1xf32>
    %154 = vector.broadcast %153 : vector<128x1xf32> to vector<128x128xf32>
    %155 = arith.subf %149, %154 : vector<128x128xf32>
    %156 = arith.mulf %155, %155 : vector<128x128xf32>
    %cst_98 = arith.constant dense<0.000000e+00> : vector<128xf32>
    %157 = vector.multi_reduction <add>, %156, %cst_98 [1] : vector<128x128xf32> to vector<128xf32>
    %158 = vector.shape_cast %157 : vector<128xf32> to vector<128x1xf32>
    %cst_99 = arith.constant 1.280000e+02 : f32
    %159 = vector.broadcast %cst_99 : f32 to vector<128x1xf32>
    %160 = arith.divf %158, %159 : vector<128x1xf32>
    %161 = vector.broadcast %153 : vector<128x1xf32> to vector<128x128xf32>
    %162 = arith.subf %149, %161 : vector<128x128xf32>
    %cst_100 = arith.constant 9.99999974E-6 : f32
    %163 = vector.broadcast %cst_100 : f32 to vector<128x1xf32>
    %164 = arith.addf %160, %163 : vector<128x1xf32>
    %165 = math.rsqrt %164 : vector<128x1xf32>
    %166 = vector.broadcast %165 : vector<128x1xf32> to vector<128x128xf32>
    %167 = arith.mulf %162, %166 : vector<128x128xf32>
    %c0_101 = arith.constant 0 : index
    %c0_102 = arith.constant 0 : index
    %c0_103 = arith.constant 0 : index
    %168 = vector.load %arg13[%c0_101, %c0_102, %c0_103] : memref<1x1x128xf32, #tpu.memory_space<vmem>>, vector<1x1x128xf32>
    %169 = vector.shape_cast %168 : vector<1x1x128xf32> to vector<1x128xf32>
    %170 = vector.broadcast %169 : vector<1x128xf32> to vector<128x128xf32>
    %171 = arith.mulf %167, %170 : vector<128x128xf32>
    %c0_104 = arith.constant 0 : index
    %c0_105 = arith.constant 0 : index
    %c0_106 = arith.constant 0 : index
    %172 = vector.load %arg14[%c0_104, %c0_105, %c0_106] : memref<1x1x128xf32, #tpu.memory_space<vmem>>, vector<1x1x128xf32>
    %173 = vector.shape_cast %172 : vector<1x1x128xf32> to vector<1x128xf32>
    %174 = vector.broadcast %173 : vector<1x128xf32> to vector<128x128xf32>
    %175 = arith.addf %171, %174 : vector<128x128xf32>
    %c0_107 = arith.constant 0 : index
    %c0_108 = arith.constant 0 : index
    %c0_109 = arith.constant 0 : index
    %176 = vector.load %arg15[%c0_107, %c0_108, %c0_109] : memref<1x128x128xf32, #tpu.memory_space<vmem>>, vector<1x128x128xf32>
    %177 = vector.shape_cast %176 : vector<1x128x128xf32> to vector<128x128xf32>
    %178 = vector.shape_cast %175 : vector<128x128xf32> to vector<1x128x128xf32>
    tpu.vector_store %arg15[%c0_107, %c0_108, %c0_109], %178 {strides = array<i32>} : memref<1x128x128xf32, #tpu.memory_space<vmem>>, vector<1x128x128xf32>,
    return
  }
  func.func @transform_0(%arg0: i32, %arg1: i32) -> (i32, i32, i32) {
    %c0_i32 = arith.constant 0 : i32
    %c0_i32_0 = arith.constant 0 : i32
    %c0_i32_1 = arith.constant 0 : i32
    return %arg0, %c0_i32, %c0_i32_0 : i32, i32, i32
  }
  func.func @transform_1(%arg0: i32, %arg1: i32) -> (i32, i32, i32) {
    %c0_i32 = arith.constant 0 : i32
    %c0_i32_0 = arith.constant 0 : i32
    %c0_i32_1 = arith.constant 0 : i32
    return %arg1, %c0_i32, %c0_i32_0 : i32, i32, i32
  }
  func.func @transform_2(%arg0: i32, %arg1: i32) -> (i32, i32, i32) {
    %c0_i32 = arith.constant 0 : i32
    %c0_i32_0 = arith.constant 0 : i32
    %c0_i32_1 = arith.constant 0 : i32
    return %arg1, %c0_i32, %c0_i32_0 : i32, i32, i32
  }
  func.func @transform_3(%arg0: i32, %arg1: i32) -> (i32, i32, i32) {
    %c0_i32 = arith.constant 0 : i32
    %c0_i32_0 = arith.constant 0 : i32
    %c0_i32_1 = arith.constant 0 : i32
    return %arg1, %c0_i32, %c0_i32_0 : i32, i32, i32
  }
  func.func @transform_4(%arg0: i32, %arg1: i32) -> (i32, i32, i32) {
    %c0_i32 = arith.constant 0 : i32
    %c0_i32_0 = arith.constant 0 : i32
    %c0_i32_1 = arith.constant 0 : i32
    return %arg1, %c0_i32, %c0_i32_0 : i32, i32, i32
  }
  func.func @transform_5(%arg0: i32, %arg1: i32) -> (i32, i32, i32) {
    %c0_i32 = arith.constant 0 : i32
    %c0_i32_0 = arith.constant 0 : i32
    %c0_i32_1 = arith.constant 0 : i32
    return %arg1, %c0_i32, %c0_i32_0 : i32, i32, i32
  }
  func.func @transform_6(%arg0: i32, %arg1: i32) -> (i32, i32, i32) {
    %c0_i32 = arith.constant 0 : i32
    %c0_i32_0 = arith.constant 0 : i32
    %c0_i32_1 = arith.constant 0 : i32
    return %arg1, %c0_i32, %c0_i32_0 : i32, i32, i32
  }
  func.func @transform_7(%arg0: i32, %arg1: i32) -> (i32, i32, i32) {
    %c0_i32 = arith.constant 0 : i32
    %c0_i32_0 = arith.constant 0 : i32
    %c0_i32_1 = arith.constant 0 : i32
    return %arg1, %c0_i32, %c0_i32_0 : i32, i32, i32
  }
  func.func @transform_8(%arg0: i32, %arg1: i32) -> (i32, i32, i32) {
    %c0_i32 = arith.constant 0 : i32
    %c0_i32_0 = arith.constant 0 : i32
    %c0_i32_1 = arith.constant 0 : i32
    return %arg1, %c0_i32, %c0_i32_0 : i32, i32, i32
  }
  func.func @transform_9(%arg0: i32, %arg1: i32) -> (i32, i32, i32) {
    %c0_i32 = arith.constant 0 : i32
    %c0_i32_0 = arith.constant 0 : i32
    %c0_i32_1 = arith.constant 0 : i32
    return %arg1, %c0_i32, %c0_i32_0 : i32, i32, i32
  }
  func.func @transform_10(%arg0: i32, %arg1: i32) -> (i32, i32, i32) {
    %c0_i32 = arith.constant 0 : i32
    %c0_i32_0 = arith.constant 0 : i32
    %c0_i32_1 = arith.constant 0 : i32
    return %arg1, %c0_i32, %c0_i32_0 : i32, i32, i32
  }
  func.func @transform_11(%arg0: i32, %arg1: i32) -> (i32, i32, i32) {
    %c0_i32 = arith.constant 0 : i32
    %c0_i32_0 = arith.constant 0 : i32
    %c0_i32_1 = arith.constant 0 : i32
    return %arg1, %c0_i32, %c0_i32_0 : i32, i32, i32
  }
  func.func @transform_12(%arg0: i32, %arg1: i32) -> (i32, i32, i32) {
    %c0_i32 = arith.constant 0 : i32
    %c0_i32_0 = arith.constant 0 : i32
    %c0_i32_1 = arith.constant 0 : i32
    return %arg1, %c0_i32, %c0_i32_0 : i32, i32, i32
  }
  func.func @transform_13(%arg0: i32, %arg1: i32) -> (i32, i32, i32) {
    %c0_i32 = arith.constant 0 : i32
    %c0_i32_0 = arith.constant 0 : i32
    %c0_i32_1 = arith.constant 0 : i32
    return %arg0, %c0_i32, %c0_i32_0 : i32, i32, i32
  }
}

</mosaic_0001>

<bundles_post_ra>
// kernel: transformer_encoder_forward.1
= control target key start
LH: loop header
LB: loop body
LE: loop exit
PB: predicated region body
PF: predicated region fallthrough
CT: control target
= control target key end

     0   :  { %s8781_s0 = inlined_call_operand.vmem [shape: f32[2,128,128], index: 0, kind: input, shape index: {}]   ;;  %s8782_s1 = inlined_call_operand.vmem [shape: bf16[2,128,384], index: 1, kind: input, shape index: {}]   ;;  %s8783_s2 = inlined_call_operand.vmem [shape: f32[2,1,384], index: 2, kind: input, shape index: {}]   ;;  %s8784_s3 = inlined_call_operand.vmem [shape: bf16[2,128,128], index: 3, kind: input, shape index: {}]   ;;  %s8785_s4 = inlined_call_operand.vmem [shape: f32[2,1,128], index: 4, kind: input, shape index: {}]   ;;  %s8786_s5 = inlined_call_operand.vmem [shape: f32[2,1,128], index: 5, kind: input, shape index: {}]   ;;  %s8787_s6 = inlined_call_operand.vmem [shape: f32[2,1,128], index: 6, kind: input, shape index: {}]   ;;  %s8788_s7 = inlined_call_operand.vmem [shape: bf16[2,128,512], index: 7, kind: input, shape index: {}]   ;;  %s8789_s8 = inlined_call_operand.vmem [shape: f32[2,1,512], index: 8, kind: input, shape index: {}]   ;;  %s8790_s9 = inlined_call_operand.vmem [shape: bf16[2,512,128], index: 9, kind: input, shape index: {}]   ;;  %s8791_s10 = inlined_call_operand.vmem [shape: f32[2,1,128], index: 10, kind: input, shape index: {}]   ;;  %s8792_s11 = inlined_call_operand.vmem [shape: f32[2,1,128], index: 11, kind: input, shape index: {}]   ;;  %s8793_s12 = inlined_call_operand.vmem [shape: f32[2,1,128], index: 12, kind: input, shape index: {}]   ;;  %s8794_s13 = inlined_call_operand.hbm [shape: f32[2,128,128], index: 13, kind: output, shape index: {}]  }
   0x1   :  { %8824 = sst [smem:[#allocation29_spill]] %s8781_s0 }
   0x2   :  { %8825 = sst [smem:[#allocation30_spill]] %s8782_s1 }
   0x3   :  { %8826 = sst [smem:[#allocation31_spill]] %s8783_s2 }
   0x4   :  { %8827 = sst [smem:[#allocation32_spill]] %s8784_s3 }
   0x5   :  { %8828 = sst [smem:[#allocation33_spill]] %s8788_s7 }
   0x6   :  { %8829 = sst [smem:[#allocation34_spill]] %s8794_s13 }
   0x7   :  { %18 = vsyncpa [#allocation6], 0 }
   0x8   :  { %20 = vsyncpa [#allocation6 + $0x1], 0  ;;  %s6725_s25 = smov 0   ;;  %s6727_s26 = smov 0  }
   0x9   :  { %s6729_s27 = smov 0   ;;  %s6731_s28 = smov 0  }
   0xa   :  { %s6733_s29 = smov 0   ;;  %s6735_s30 = smov 0  }
   0xb   :  { %s6737_s14 = smov 0   ;;  %s6739_s15 = smov 0  }
   0xc LB: > { %8830 = sst [smem:[#allocation8_spill]] %s6618_s25  ;;  %s5216_s16 = sadd.s32 4294967295, %s6646_s15   ;;  %s6646_s15 = sphi %s6739_s15, %s26_s15   ;;  %s6642_s14 = sphi %s6737_s14, %s8903_s14   ;;  %s6638_s30 = sphi %s6735_s30, %s8902_s30   ;;  %s6634_s29 = sphi %s6733_s29, %s8901_s29   ;;  %s6630_s28 = sphi %s6731_s28, %s8900_s28   ;;  %s6626_s27 = sphi %s6729_s27, %s8899_s27   ;;  %s6622_s26 = sphi %s6727_s26, %s8898_s26   ;;  %s6618_s25 = sphi %s6725_s25, %s8897_s25  }
   0xd   : > { %8831 = sst [smem:[#allocation9_spill]] %s6622_s26  ;;  %s5217_s17 = sadd.s32 4294967294, %s6646_s15  }
   0xe   : > { %8832 = sst [smem:[#allocation10_spill]] %s6626_s27  ;;  %s35_s18 = sadd.s32 1, %s6638_s30 }
   0xf   : > { %8833 = sst [smem:[#allocation11_spill]] %s6630_s28  ;;  %p36_p0 = scmp.ge.s32.totalorder %s35_s18, 2 }
  0x10   : > { %8834 = sst [smem:[#allocation12_spill]] %s6634_s29  ;;  %s38_s19 = sadd.s32 1, %s6642_s14 }
  0x11   : > { %8835 = sst [smem:[#allocation13_spill]] %s6638_s30  ;;  %p393_p1 = scmp.ne.s32.totalorder %s6626_s27, %s6622_s26 }
  0x12   : > { %8836 = sst [smem:[#allocation14_spill]] %s6642_s14  ;;  %p394_p2 = scmp.eq.s32.totalorder %s5216_s16, 3 }
  0x13   : > { %8837 = sst [smem:[#allocation15_spill]] %s6646_s15  ;;  %s8905_s18 = smov (%p36_p0, %s35_s18), 0 }
  0x14   : > { %8838 = sst [smem:[#allocation16_spill]] %s8905_s18  ;;  %s8907_s19 = smov (!%p36_p0, %s38_s19), %s6642_s14 }
  0x15   : > { %p6774_p3 = por %p394_p2, %p393_p1  ;;  %p399_p4 = scmp.ne.s32.totalorder %s6622_s26, %s6618_s25 }
  0x16   : > { %p40_p5 = scmp.ge.s32.totalorder %s8907_s19, 2  ;;  %p400_p6 = scmp.eq.s32.totalorder %s5217_s17, 3 }
  0x17   : > { %s8839_s20 = scalar_select %p6774_p3, 1, 0 }
  0x18   : > { %p5220_p7 = scmp.ge.s32.totalorder %s6646_s15, 1  ;;  %p508_p8 = scmp.lt.s32.totalorder %s6646_s15, 5 }
  0x19   : > { %8840 = sst [smem:[#allocation17_spill]] %s8839_s20  ;;  %s8909_s19 = smov (%p40_p5, %s8907_s19), 0 }
  0x1a   : > { %8841 = sst [smem:[#allocation18_spill]] %s8909_s19  ;;  %p6784_p9 = por %p400_p6, %p399_p4 }
  0x1b   : > { %p509_p10 = pnand %p5220_p7, %p508_p8  ;;  %s380_s22 = ssub.s32 %s6642_s14, %s8909_s19 }
  0x1c   : > { %s8842_s21 = scalar_select %p6784_p9, 1, 0 }
  0x1d   : > { %s383_s23 = sadd.s32 1, %s6626_s27  ;;  %p381_p11 = scmp.eq.s32.totalorder %s380_s22, 0 }
  0x1e   : > { %8843 = sst [smem:[#allocation19_spill]] %s8842_s21  ;;  %512 = sbr.rel (%p509_p10) target bundleno = 4541 (0x11bd), region = 72 }
  0x1f   : > { %s6792_s24 = scalar_select %p381_p11, %s6626_s27, %s383_s23  }
  0x21   : > { %8844 = sst [smem:[#allocation20_spill]] %s6792_s24 }
  0x25   : > { %s8798_s16 = sand.u32 1, %s6622_s26   ;;  %p598_p12 = scmp.lt.s32.totalorder %s6634_s29, 1 }
  0x26   : > { %s5221_s17 = sshll.u32 %s8798_s16, 7  ;;  %p603_p13 = scmp.lt.s32.totalorder %s6630_s28, 1 }
  0x27   : > { %s599_s18 = scalar_select %p598_p12, %s6634_s29, 1 }
  0x28   : > { %s6801_s30 = scalar_select %p603_p13, %s6630_s28, 1 }
  0x29   : > { %s5372_s22 = sshll.u32 %s599_s18, 7  ;;  %s8845_s0 = sld [smem:[#allocation29_spill]] }
  0x2a   : > { %s6033_s16 = smul.u32 192, %s6801_s30  ;;  %s5373_s27 = sshll.u32 %s6801_s30, 6 }
  0x2b   : > { %s6034_s24 = smul.u32 3, %s6801_s30  ;;  %s8847_s1 = sld [smem:[#allocation30_spill]] }
  0x2c   : > { %s8848_s3 = sld [smem:[#allocation32_spill]]  ;;  %s8849_s2 = sld [smem:[#allocation31_spill]] }
  0x2d   : > { %s5374_s13 = sshll.u32 %s6801_s30, 8  ;;  %s8850_s7 = sld [smem:[#allocation33_spill]] }
  0x2e   : > { %s6853_s28 = scalar_lea.vmem %s8790_s9, %s5374_s13 }
  0x2f   : > { %s6806_s14 = scalar_lea.vmem %s8845_s0, %s5372_s22 }
  0x30   : > { %8846 = sst [smem:[#allocation21_spill]] %s6806_s14 }
  0x31   : > { %s6814_s15 = scalar_lea.vmem %s8847_s1, %s6033_s16  ;;  %s642_s16 = scalar_lea.vmem %s8791_s10, %s6801_s30 }
  0x32   : > { %s6819_s18 = scalar_lea.vmem %s8848_s3, %s5373_s27  ;;  %s6824_s22 = scalar_lea.vmem %s8849_s2, %s6034_s24 }
  0x33   : > { %s5229_s27 = sshll.u32 %s6801_s30, 2  ;;  %s6843_s26 = scalar_lea.vmem %s8850_s7, %s5374_s13 }
  0x34   : > { %s6848_s0 = scalar_lea.vmem %s8789_s8, %s5229_s27  ;;  %s645_s3 = scalar_lea.vmem %s8792_s11, %s6801_s30 }
  0x35   : > { %s648_s7 = scalar_lea.vmem %s8793_s12, %s6801_s30  ;;  %s6867_s24 = scalar_lea.vmem [#allocation5], %s5221_s17 }
  0x36   : > { %s8851_s27 = sld [smem:[#allocation11_spill]] }
  0x3c   : > { %p5232_p0 = scmp.ne.s32.totalorder %s8851_s27, 0 }
  0x3d   : > { %s8852_s29 = sld [smem:[#allocation21_spill]] (!%p5232_p0) }
  0x3e   : > { %653 = sbr.rel (%p5232_p0) target bundleno = 76 (0x4c), region = 76 }
  0x43   : > { %v654_v0 = vld [vmem:[%s8852_s29] sm:$0xff] (!%p5232_p0)  ;;  %v655_v1 = vld [vmem:[%s8852_s29 + $0x8] sm:$0xff] (!%p5232_p0)  ;;  %v656_v2 = vld [vmem:[%s8852_s29 + $0x10] sm:$0xff] (!%p5232_p0) }
  0x44   : > { %670 = vst [vmem:[%s6867_s24] sm:$0xff] (!%p5232_p0), %v654_v0  ;;  %671 = vst [vmem:[%s6867_s24 + $0x8] sm:$0xff] (!%p5232_p0), %v655_v1  ;;  %v657_v3 = vld [vmem:[%s8852_s29 + $0x18] sm:$0xff] (!%p5232_p0)  ;;  %v658_v4 = vld [vmem:[%s8852_s29 + $0x20] sm:$0xff] (!%p5232_p0) }
  0x45   : > { %672 = vst [vmem:[%s6867_s24 + $0x10] sm:$0xff] %v656_v2  ;;  %v659_v5 = vld [vmem:[%s8852_s29 + $0x28] sm:$0xff]  ;;  %673 = vst [vmem:[%s6867_s24 + $0x18] sm:$0xff] %v657_v3  ;;  %v660_v6 = vld [vmem:[%s8852_s29 + $0x30] sm:$0xff] }
  0x46   : > { %674 = vst [vmem:[%s6867_s24 + $0x20] sm:$0xff] %v658_v4  ;;  %675 = vst [vmem:[%s6867_s24 + $0x28] sm:$0xff] %v659_v5  ;;  %v661_v7 = vld [vmem:[%s8852_s29 + $0x38] sm:$0xff]  ;;  %v662_v8 = vld [vmem:[%s8852_s29 + $0x40] sm:$0xff] }
  0x47   : > { %676 = vst [vmem:[%s6867_s24 + $0x30] sm:$0xff] %v660_v6  ;;  %677 = vst [vmem:[%s6867_s24 + $0x38] sm:$0xff] %v661_v7  ;;  %v663_v9 = vld [vmem:[%s8852_s29 + $0x48] sm:$0xff]  ;;  %v664_v10 = vld [vmem:[%s8852_s29 + $0x50] sm:$0xff] }
  0x48   : > { %678 = vst [vmem:[%s6867_s24 + $0x40] sm:$0xff] %v662_v8  ;;  %v665_v11 = vld [vmem:[%s8852_s29 + $0x58] sm:$0xff]  ;;  %679 = vst [vmem:[%s6867_s24 + $0x48] sm:$0xff] %v663_v9  ;;  %v666_v12 = vld [vmem:[%s8852_s29 + $0x60] sm:$0xff] }
  0x49   : > { %680 = vst [vmem:[%s6867_s24 + $0x50] sm:$0xff] %v664_v10  ;;  %681 = vst [vmem:[%s6867_s24 + $0x58] sm:$0xff] %v665_v11  ;;  %v667_v13 = vld [vmem:[%s8852_s29 + $0x68] sm:$0xff]  ;;  %v668_v14 = vld [vmem:[%s8852_s29 + $0x70] sm:$0xff] }
  0x4a   : > { %682 = vst [vmem:[%s6867_s24 + $0x60] sm:$0xff] %v666_v12  ;;  %683 = vst [vmem:[%s6867_s24 + $0x68] sm:$0xff] %v667_v13  ;;  %v669_v15 = vld [vmem:[%s8852_s29 + $0x78] sm:$0xff] }
  0x4b   : > { %684 = vst [vmem:[%s6867_s24 + $0x70] sm:$0xff] %v668_v14  ;;  %685 = vst [vmem:[%s6867_s24 + $0x78] sm:$0xff] %v669_v15 }
  0x4c PF: > { %v6112_v16 = vld [vmem:[%s6814_s15 + $0x4] ss:$12 sps:$4 sm:$0xff]   ;;  %v6114_v17 = vld [vmem:[%s6814_s15] ss:$12 sps:$4 sm:$0xff]   ;;  %v8814_v18 = vmov 0   ;;  %v744_v1 = vlaneseq  ;;  %vm1169_vm0 = vcmask 261120   ;;  %s8884_s14 = scalar_lea.vmem %s8787_s6, %s6801_s30 }
  0x4d   : > { %919 = vmatprep.mubr.bf16.mxu0 %v8814_v18  ;;  %887 = vmatprep.subr.bf16.mxu0 %v6112_v16  ;;  %v6115_v19 = vld [vmem:[%s6814_s15 + $0x1c] ss:$12 sps:$4 sm:$0xff]   ;;  %v6117_v20 = vld [vmem:[%s6814_s15 + $0x18] ss:$12 sps:$4 sm:$0xff]   ;;  %v6118_v21 = vld [vmem:[%s6814_s15 + $0x34] ss:$12 sps:$4 sm:$0xff]  }
  0x4e   : > { %888 = vmatpush1.bf16.msra.mxu0 %v6114_v17  ;;  %v6120_v22 = vld [vmem:[%s6814_s15 + $0x30] ss:$12 sps:$4 sm:$0xff]   ;;  %v6121_v23 = vld [vmem:[%s6814_s15 + $0x4c] ss:$12 sps:$4 sm:$0xff]   ;;  %v6123_v25 = vld [vmem:[%s6814_s15 + $0x48] ss:$12 sps:$4 sm:$0xff]  }
  0x4f   : > { %889 = vmatprep.subr.bf16.mxu0 %v6115_v19  ;;  %v6124_v27 = vld [vmem:[%s6814_s15 + $0x64] ss:$12 sps:$4 sm:$0xff]   ;;  %v6126_v29 = vld [vmem:[%s6814_s15 + $0x60] ss:$12 sps:$4 sm:$0xff]   ;;  %v6127_v30 = vld [vmem:[%s6814_s15 + $0x7c] ss:$12 sps:$4 sm:$0xff]  }
  0x50   : > { %v6136_v31 = vld [vmem:[%s6814_s15 + $0x8] ss:$12 sps:$4 sm:$0xff]   ;;  %v6137_v32 = vld [vmem:[%s6814_s15 + $0x20] ss:$12 sps:$4 sm:$0xff]   ;;  %v6129_v33 = vld [vmem:[%s6814_s15 + $0x78] ss:$12 sps:$4 sm:$0xff]  }
  0x51   : > { %5665 = vmatprep.subr.bf16.mxu1 %v6136_v31  ;;  %v6130_v34 = vld [vmem:[%s6814_s15 + $0x94] ss:$12 sps:$4 sm:$0xff]   ;;  %v6138_v35 = vld [vmem:[%s6814_s15 + $0x38] ss:$12 sps:$4 sm:$0xff]   ;;  %v6132_v36 = vld [vmem:[%s6814_s15 + $0x90] ss:$12 sps:$4 sm:$0xff]  }
  0x52   : > { %890 = vmatpush1.bf16.msra.mxu0 %v6117_v20  ;;  %v686_v24 = vld [vmem:[%s6867_s24] sm:$0xff]  ;;  %v687_v26 = vld [vmem:[%s6867_s24 + $0x8] sm:$0xff]  ;;  %5666 = vmatpush3.bf16.msra.mxu1 %v6136_v31  ;;  %v689_v43 = vld [vmem:[%s6867_s24 + $0x18] sm:$0xff]  ;;  %v6950_v2 = vshrl.u32 %v744_v1, 7  ;;  %s6649_s1 = smov 96   ;;  %s6650_s2 = smov 64  }
  0x53   : > { %891 = vmatprep.subr.bf16.mxu0 %v6118_v21  ;;  %v702_v28 = vpack.c.bf16 %v687_v26, %v686_v24  ;;  %5667 = vmatprep.subr.bf16.mxu1 %v6137_v32  ;;  %v6133_v37 = vld [vmem:[%s6814_s15 + $0xac] ss:$12 sps:$4 sm:$0xff]   ;;  %v6139_v38 = vld [vmem:[%s6814_s15 + $0x50] ss:$12 sps:$4 sm:$0xff]   ;;  %v6135_v39 = vld [vmem:[%s6814_s15 + $0xa8] ss:$12 sps:$4 sm:$0xff]  }
  0x54   : > { %v6140_v40 = vld [vmem:[%s6814_s15 + $0x68] ss:$12 sps:$4 sm:$0xff]   ;;  %v6141_v41 = vld [vmem:[%s6814_s15 + $0x80] ss:$12 sps:$4 sm:$0xff]   ;;  %v688_v42 = vld [vmem:[%s6867_s24 + $0x10] sm:$0xff]  ;;  %8853 = vst [vmem:[#allocation22_spill] sm:$0xff] %v6950_v2 }
  0x55   : > { %5681 = vmatprep.mubr.bf16.mxu1 %v702_v28  ;;  %v6142_v44 = vld [vmem:[%s6814_s15 + $0x98] ss:$12 sps:$4 sm:$0xff]   ;;  %v703_v45 = vpack.c.bf16 %v689_v43, %v688_v42  ;;  %v6143_v46 = vld [vmem:[%s6814_s15 + $0xb0] ss:$12 sps:$4 sm:$0xff]   ;;  %v690_v47 = vld [vmem:[%s6867_s24 + $0x20] sm:$0xff]  ;;  %v8813_v3 = vsub.s32 0, %v6950_v2 }
  0x56   : > { %892 = vmatpush1.bf16.msra.mxu0 %v6120_v22  ;;  %5668 = vmatpush3.bf16.msra.mxu1 %v6137_v32  ;;  %v691_v48 = vld [vmem:[%s6867_s24 + $0x28] sm:$0xff]  ;;  %v692_v50 = vld [vmem:[%s6867_s24 + $0x30] sm:$0xff]  ;;  %v693_v51 = vld [vmem:[%s6867_s24 + $0x38] sm:$0xff]  ;;  %v8811_v5 = vsub.s32 1, %v6950_v2  ;;  %v8812_v24 = vsub.s32 2, %v6950_v2  ;;  %s6651_s15 = smov 32  }
  0x57   : > { %893 = vmatprep.subr.bf16.mxu0 %v6121_v23  ;;  %5669 = vmatprep.subr.bf16.mxu1 %v6138_v35  ;;  %v704_v49 = vpack.c.bf16 %v691_v48, %v690_v47  ;;  %v694_v52 = vld [vmem:[%s6867_s24 + $0x40] sm:$0xff]  ;;  %v695_v53 = vld [vmem:[%s6867_s24 + $0x48] sm:$0xff]  ;;  %v705_v54 = vpack.c.bf16 %v693_v51, %v692_v50  ;;  %v696_v56 = vld [vmem:[%s6867_s24 + $0x50] sm:$0xff]  ;;  %vm2118_vm1 = vcmask 523520   ;;  %vm2665_vm2 = vcmask 785920   ;;  %s8892_s17 = sld [smem:[#allocation34_spill]] }
  0x58   : > { %v706_v55 = vpack.c.bf16 %v695_v53, %v694_v52  ;;  %v697_v57 = vld [vmem:[%s6867_s24 + $0x58] sm:$0xff]  ;;  %v698_v58 = vld [vmem:[%s6867_s24 + $0x60] sm:$0xff]  ;;  %v699_v59 = vld [vmem:[%s6867_s24 + $0x68] sm:$0xff]  ;;  %vm3212_vm3 = vcmask 1048320  }
  0x59   : > { %v707_v60 = vpack.c.bf16 %v697_v57, %v696_v56  ;;  %v708_v61 = vpack.c.bf16 %v699_v59, %v698_v58  ;;  %v700_v62 = vld [vmem:[%s6867_s24 + $0x70] sm:$0xff]  ;;  %v701_v63 = vld [vmem:[%s6867_s24 + $0x78] sm:$0xff] }
  0x5a   : > { %894 = vmatpush1.bf16.msra.mxu0 %v6123_v25  ;;  %5670 = vmatpush3.bf16.msra.mxu1 %v6138_v35  ;;  %v709_v0 = vpack.c.bf16 %v701_v63, %v700_v62  ;;  %v742_v4 = vld [vmem:[%s6824_s22] sm:$0x7]  ;;  %s8882_s22 = scalar_lea.vmem %s8785_s4, %s6801_s30 }
  0x5b   : > { %895 = vmatprep.subr.bf16.mxu0 %v6124_v27  ;;  %5671 = vmatprep.subr.bf16.mxu1 %v6139_v38  ;;  %v6957_v6 = vrot.slane %v742_v4, %v8813_v3  ;;  %v6961_v8 = vrot.slane %v742_v4, %v8811_v5  ;;  %v6990_v31 = vrot.slane %v742_v4, %v8812_v24 }
  0x5e   : > { %896 = vmatpush1.bf16.msra.mxu0 %v6126_v29  ;;  %5672 = vmatpush3.bf16.msra.mxu1 %v6139_v38 }
  0x5f   : > { %897 = vmatprep.subr.bf16.mxu0 %v6127_v30  ;;  %5673 = vmatprep.subr.bf16.mxu1 %v6140_v40 }
  0x62   : > { %898 = vmatpush1.bf16.msra.mxu0 %v6129_v33  ;;  %5674 = vmatpush3.bf16.msra.mxu1 %v6140_v40 }
  0x63   : > { %899 = vmatprep.subr.bf16.mxu0 %v6130_v34  ;;  %5675 = vmatprep.subr.bf16.mxu1 %v6141_v41 }
  0x66   : > { %900 = vmatpush1.bf16.msra.mxu0 %v6132_v36  ;;  %5676 = vmatpush3.bf16.msra.mxu1 %v6141_v41 }
  0x67   : > { %901 = vmatprep.subr.bf16.mxu0 %v6133_v37  ;;  %5677 = vmatprep.subr.bf16.mxu1 %v6142_v44 }
  0x6a   : > { %902 = vmatpush1.bf16.msra.mxu0 %v6135_v39  ;;  %5678 = vmatpush3.bf16.msra.mxu1 %v6142_v44 }
  0x6b   : > { %5679 = vmatprep.subr.bf16.mxu1 %v6143_v46 }
  0x6d   : > { %920 = vmatmul.mubr.bf16.vlgmr.msra.gmra.mrb[0].mxu0 %v702_v28 }
  0x6e   : > { %929 = vmatprep.mubr.bf16.mxu0 %v8814_v18  ;;  %5680 = vmatpush3.bf16.msra.mxu1 %v6143_v46 }
  0x71   : > { %5682 = vmatmul.mubr.bf16.vlgmr.msra.gmra.mrb[0].mxu1 %v703_v45 }
  0x72   : > { %5685 = vmatprep.mubr.bf16.mxu1 %v704_v49 }
  0x75   : > { %930 = vmatmul.mubr.bf16.gmra.mrb[4].mxu0 %v703_v45 }
  0x76   : > { %939 = vmatprep.mubr.bf16.mxu0 %v8814_v18 }
  0x79   : > { %5686 = vmatmul.mubr.bf16.gmra.mrb[4].mxu1 %v705_v54 }
  0x7a   : > { %5689 = vmatprep.mubr.bf16.mxu1 %v706_v55 }
  0x7d   : > { %940 = vmatmul.mubr.bf16.gmra.mrb[8].mxu0 %v704_v49 }
  0x7e   : > { %949 = vmatprep.mubr.bf16.mxu0 %v8814_v18 }
  0x81   : > { %5690 = vmatmul.mubr.bf16.gmra.mrb[8].mxu1 %v707_v60 }
  0x82   : > { %5693 = vmatprep.mubr.bf16.mxu1 %v708_v61 }
  0x85   : > { %950 = vmatmul.mubr.bf16.gmra.mrb[12].mxu0 %v705_v54 }
  0x86   : > { %959 = vmatprep.mubr.bf16.mxu0 %v8814_v18 }
  0x89   : > { %5694 = vmatmul.mubr.bf16.gmra.mrb[12].mxu1 %v709_v0 }
  0x8d   : > { %960 = vmatmul.mubr.bf16.gmra.mrb[16].mxu0 %v706_v55 }
  0x8e   : > { %969 = vmatprep.mubr.bf16.mxu0 %v8814_v18 }
  0x95   : > { %970 = vmatmul.mubr.bf16.gmra.mrb[20].mxu0 %v707_v60 }
  0x96   : > { %979 = vmatprep.mubr.bf16.mxu0 %v8814_v18 }
  0x9d   : > { %980 = vmatmul.mubr.bf16.gmra.mrb[24].mxu0 %v708_v61 }
  0x9e   : > { %989 = vmatprep.mubr.bf16.mxu0 %v8814_v18 }
  0xa5   : > { %990 = vmatmul.mubr.bf16.gmra.mrb[28].mxu0 %v709_v0 }
 0x140   : > { %v921_v7 = vpop.f32.mrb[0].mxu0 }
 0x141   : > { %v923_v9 = vpop.f32.mrb[1].mxu0  ;;  %v922_v11 = vadd.f32 %v921_v7, %v6957_v6 }
 0x142   : > { %v925_v10 = vpop.f32.mrb[2].mxu0  ;;  %v924_v14 = vadd.f32 %v923_v9, %v6961_v8 }
 0x143   : > { %v926_v12 = vadd.f32 %v925_v10, %v6957_v6  ;;  %v927_v13 = vpop.f32.mrb[3].mxu0 }
 0x144   : > { %v928_v15 = vadd.f32 %v927_v13, %v6961_v8  ;;  %v5683_v34 = vpop.f32.mrb[0].mxu1 }
 0x145   : > { %v6967_v16 = vpack.c.bf16 %v926_v12, %v922_v11  ;;  %v1043_v37 = vadd.f32 %v5683_v34, %v6990_v31  ;;  %v1034_v38 = vpop.f32.mrb[1].mxu1 }
 0x146   : > { %v6969_v17 = vpack.c.bf16 %v928_v15, %v924_v14  ;;  %v1035_v40 = vadd.f32 %v1034_v38, %v6990_v31  ;;  %v5684_v41 = vpop.f32.mrb[2].mxu1 }
 0x147   : > { %5713 = vmatprep.mubr.msk.bf16.mxu0 %vm1169_vm0, %v6967_v16  ;;  %v1046_v44 = vadd.f32 %v5684_v41, %v6990_v31  ;;  %v1037_v45 = vpop.f32.mrb[3].mxu1 }
 0x148   : > { %v931_v19 = vpop.f32.mrb[4].mxu0  ;;  %1636 = vrot.lane.b32.xlu0 %v6969_v17, %s6649_s1  ;;  %6001 = vmatprep.subr.msk.bf16.mxu0 %vm1169_vm0, %v6969_v17  ;;  %v1195_v20 = vsel %vm1169_vm0, %v6969_v17, 0  ;;  %v1038_v48 = vadd.f32 %v1037_v45, %v6990_v31 }
 0x149   : > { %v932_v21 = vadd.f32 %v931_v19, %v6957_v6  ;;  %v933_v22 = vpop.f32.mrb[5].mxu0  ;;  %5698 = vmatpush3.bf16.xpose.msra.mxu0 %v1195_v20  ;;  %v7008_v50 = vpack.c.bf16 %v1046_v44, %v1043_v37 }
 0x14a   : > { %v935_v23 = vpop.f32.mrb[6].mxu0  ;;  %v934_v27 = vadd.f32 %v933_v22, %v6961_v8  ;;  %v7012_v52 = vpack.c.bf16 %v1038_v48, %v1035_v40 }
 0x14b   : > { %v936_v25 = vadd.f32 %v935_v23, %v6957_v6  ;;  %v937_v26 = vpop.f32.mrb[7].mxu0 }
 0x14c   : > { %v938_v28 = vadd.f32 %v937_v26, %v6961_v8  ;;  %v5687_v55 = vpop.f32.mrb[4].mxu1  ;;  %5729 = vmatprep.subr.bf16.mxu1 %v7012_v52 }
 0x14d   : > { %v6984_v29 = vpack.c.bf16 %v936_v25, %v932_v21  ;;  %v1059_v58 = vadd.f32 %v5687_v55, %v6990_v31  ;;  %v1050_v59 = vpop.f32.mrb[5].mxu1  ;;  %5730 = vmatpush3.bf16.msra.mxu1 %v7012_v52 }
 0x14e   : > { %v6986_v30 = vpack.c.bf16 %v938_v28, %v934_v27  ;;  %v1051_v61 = vadd.f32 %v1050_v59, %v6990_v31  ;;  %v5688_v62 = vpop.f32.mrb[6].mxu1  ;;  %5731 = vmatprep.subr.bf16.mxu1 %v7008_v50 }
 0x14f   : > { %v1062_v1 = vadd.f32 %v5688_v62, %v6990_v31  ;;  %v1053_v4 = vpop.f32.mrb[7].mxu1 }
 0x150   : > { %v941_v32 = vpop.f32.mrb[8].mxu0  ;;  %1638 = vrot.lane.b32.xlu1 %v6986_v30, %s6649_s1  ;;  %6002 = vmatprep.subr.msk.bf16.mxu0 %vm1169_vm0, %v6986_v30  ;;  %v1198_v33 = vsel %vm1169_vm0, %v6986_v30, 0  ;;  %v1054_v10 = vadd.f32 %v1053_v4, %v6990_v31 }
 0x151   : > { %v942_v35 = vadd.f32 %v941_v32, %v6957_v6  ;;  %v943_v36 = vpop.f32.mrb[9].mxu0  ;;  %5700 = vmatpush3.bf16.xpose.msra.mxu0 %v1198_v33  ;;  %v7031_v12 = vpack.c.bf16 %v1062_v1, %v1059_v58  ;;  %5732 = vmatpush3.bf16.msra.mxu1 %v7008_v50 }
 0x152   : > { %v945_v39 = vpop.f32.mrb[10].mxu0  ;;  %v944_v46 = vadd.f32 %v943_v36, %v6961_v8  ;;  %v7036_v14 = vpack.c.bf16 %v1054_v10, %v1051_v61 }
 0x153   : > { %v946_v42 = vadd.f32 %v945_v39, %v6957_v6  ;;  %v947_v43 = vpop.f32.mrb[11].mxu0 }
 0x154   : > { %v948_v47 = vadd.f32 %v947_v43, %v6961_v8  ;;  %v5691_v20 = vpop.f32.mrb[8].mxu1  ;;  %5733 = vmatprep.subr.bf16.mxu1 %v7036_v14 }
 0x155   : > { %v7006_v49 = vpack.c.bf16 %v946_v42, %v942_v35  ;;  %v1075_v23 = vadd.f32 %v5691_v20, %v6990_v31  ;;  %v1066_v25 = vpop.f32.mrb[9].mxu1  ;;  %5734 = vmatpush3.bf16.msra.mxu1 %v7036_v14 }
 0x156   : > { %v7010_v51 = vpack.c.bf16 %v948_v47, %v944_v46  ;;  %v1067_v27 = vadd.f32 %v1066_v25, %v6990_v31  ;;  %v5692_v28 = vpop.f32.mrb[10].mxu1  ;;  %5735 = vmatprep.subr.bf16.mxu1 %v7031_v12 }
 0x157   : > { %v1078_v34 = vadd.f32 %v5692_v28, %v6990_v31  ;;  %v1069_v35 = vpop.f32.mrb[11].mxu1 }
 0x158   : > { %v951_v53 = vpop.f32.mrb[12].mxu0  ;;  %6003 = vmatprep.subr.msk.bf16.mxu0 %vm1169_vm0, %v7010_v51  ;;  %v1201_v54 = vsel %vm1169_vm0, %v7010_v51, 0  ;;  %v1070_v38 = vadd.f32 %v1069_v35, %v6990_v31 }
 0x159   : > { %v952_v56 = vadd.f32 %v951_v53, %v6957_v6  ;;  %v953_v57 = vpop.f32.mrb[13].mxu0  ;;  %5702 = vmatpush3.bf16.xpose.msra.mxu0 %v1201_v54  ;;  %v7055_v40 = vpack.c.bf16 %v1078_v34, %v1075_v23  ;;  %5736 = vmatpush3.bf16.msra.mxu1 %v7031_v12 }
 0x15a   : > { %v955_v60 = vpop.f32.mrb[14].mxu0  ;;  %v954_v7 = vadd.f32 %v953_v57, %v6961_v8  ;;  %v7060_v42 = vpack.c.bf16 %v1070_v38, %v1067_v27 }
 0x15b   : > { %v956_v63 = vadd.f32 %v955_v60, %v6957_v6  ;;  %v957_v0 = vpop.f32.mrb[15].mxu0 }
 0x15c   : > { %v958_v9 = vadd.f32 %v957_v0, %v6961_v8  ;;  %v5695_v45 = vpop.f32.mrb[12].mxu1  ;;  %5737 = vmatprep.subr.bf16.mxu1 %v7060_v42 }
 0x15d   : > { %v7029_v11 = vpack.c.bf16 %v956_v63, %v952_v56  ;;  %v1091_v48 = vadd.f32 %v5695_v45, %v6990_v31  ;;  %v1082_v53 = vpop.f32.mrb[13].mxu1  ;;  %5738 = vmatpush3.bf16.msra.mxu1 %v7060_v42 }
 0x15e   : > { %v7034_v13 = vpack.c.bf16 %v958_v9, %v954_v7  ;;  %v1083_v55 = vadd.f32 %v1082_v53, %v6990_v31  ;;  %v5696_v56 = vpop.f32.mrb[14].mxu1  ;;  %5739 = vmatprep.subr.bf16.mxu1 %v7055_v40 }
 0x15f   : > { %v1094_v59 = vadd.f32 %v5696_v56, %v6990_v31  ;;  %v1085_v60 = vpop.f32.mrb[15].mxu1 }
 0x160   : > { %v961_v15 = vpop.f32.mrb[16].mxu0  ;;  %6004 = vmatprep.subr.msk.bf16.mxu0 %vm1169_vm0, %v7034_v13  ;;  %v1204_v19 = vsel %vm1169_vm0, %v7034_v13, 0  ;;  %v1086_v63 = vadd.f32 %v1085_v60, %v6990_v31 }
 0x161   : > { %v962_v21 = vadd.f32 %v961_v15, %v6957_v6  ;;  %v963_v22 = vpop.f32.mrb[17].mxu0  ;;  %5704 = vmatpush3.bf16.xpose.msra.mxu0 %v1204_v19  ;;  %v7079_v1 = vpack.c.bf16 %v1094_v59, %v1091_v48  ;;  %5740 = vmatpush3.bf16.msra.mxu1 %v7055_v40 }
 0x162   : > { %v965_v26 = vpop.f32.mrb[18].mxu0  ;;  %v964_v36 = vadd.f32 %v963_v22, %v6961_v8  ;;  %v7084_v7 = vpack.c.bf16 %v1086_v63, %v1083_v55 }
 0x163   : > { %v966_v32 = vadd.f32 %v965_v26, %v6957_v6  ;;  %v967_v33 = vpop.f32.mrb[19].mxu0 }
 0x164   : > { %v968_v37 = vadd.f32 %v967_v33, %v6961_v8  ;;  %5741 = vmatprep.subr.bf16.mxu1 %v7084_v7 }
 0x165   : > { %v7053_v39 = vpack.c.bf16 %v966_v32, %v962_v21  ;;  %5742 = vmatpush3.bf16.msra.mxu1 %v7084_v7 }
 0x166   : > { %v7058_v41 = vpack.c.bf16 %v968_v37, %v964_v36  ;;  %5743 = vmatprep.subr.bf16.mxu1 %v7079_v1 }
 0x168   : > { %v971_v43 = vpop.f32.mrb[20].mxu0  ;;  %6005 = vmatprep.subr.msk.bf16.mxu0 %vm1169_vm0, %v7058_v41  ;;  %v1207_v44 = vsel %vm1169_vm0, %v7058_v41, 0 }
 0x169   : > { %v972_v46 = vadd.f32 %v971_v43, %v6957_v6  ;;  %v973_v47 = vpop.f32.mrb[21].mxu0  ;;  %5706 = vmatpush3.bf16.xpose.msra.mxu0 %v1207_v44  ;;  %5744 = vmatpush3.bf16.msra.mxu1 %v7079_v1 }
 0x16a   : > { %v975_v54 = vpop.f32.mrb[22].mxu0  ;;  %v974_v61 = vadd.f32 %v973_v47, %v6961_v8 }
 0x16b   : > { %v976_v57 = vadd.f32 %v975_v54, %v6957_v6  ;;  %v977_v58 = vpop.f32.mrb[23].mxu0 }
 0x16c   : > { %v978_v62 = vadd.f32 %v977_v58, %v6961_v8 }
 0x16d   : > { %v7077_v0 = vpack.c.bf16 %v976_v57, %v972_v46 }
 0x16e   : > { %v7082_v4 = vpack.c.bf16 %v978_v62, %v974_v61 }
 0x170   : > { %v981_v9 = vpop.f32.mrb[24].mxu0  ;;  %6006 = vmatprep.subr.msk.bf16.mxu0 %vm1169_vm0, %v7082_v4  ;;  %v1210_v10 = vsel %vm1169_vm0, %v7082_v4, 0 }
 0x171   : > { %v982_v31 = vadd.f32 %v981_v9, %v6957_v6  ;;  %v983_v15 = vpop.f32.mrb[25].mxu0  ;;  %5708 = vmatpush3.bf16.xpose.msra.mxu0 %v1210_v10 }
 0x172   : > { %v985_v19 = vpop.f32.mrb[26].mxu0  ;;  %v984_v22 = vadd.f32 %v983_v15, %v6961_v8 }
 0x173   : > { %v986_v20 = vadd.f32 %v985_v19, %v6957_v6  ;;  %v987_v21 = vpop.f32.mrb[27].mxu0 }
 0x174   : > { %v988_v23 = vadd.f32 %v987_v21, %v6961_v8 }
 0x175   : > { %v7097_v25 = vpack.c.bf16 %v986_v20, %v982_v31 }
 0x176   : > { %v7100_v26 = vpack.c.bf16 %v988_v23, %v984_v22 }
 0x178   : > { %v991_v27 = vpop.f32.mrb[28].mxu0  ;;  %6007 = vmatprep.subr.msk.bf16.mxu0 %vm1169_vm0, %v7100_v26  ;;  %v1213_v28 = vsel %vm1169_vm0, %v7100_v26, 0 }
 0x179   : > { %v992_v32 = vadd.f32 %v991_v27, %v6957_v6  ;;  %v993_v33 = vpop.f32.mrb[29].mxu0  ;;  %5710 = vmatpush3.bf16.xpose.msra.mxu0 %v1213_v28 }
 0x17a   : > { %v995_v34 = vpop.f32.mrb[30].mxu0  ;;  %v994_v37 = vadd.f32 %v993_v33, %v6961_v8 }
 0x17b   : > { %v996_v35 = vadd.f32 %v995_v34, %v6957_v6  ;;  %v997_v36 = vpop.f32.mrb[31].mxu0 }
 0x17c   : > { %v998_v38 = vadd.f32 %v997_v36, %v6961_v8 }
 0x17d   : > { %v7110_v43 = vpack.c.bf16 %v996_v35, %v992_v32 }
 0x17e   : > { %v7112_v44 = vpack.c.bf16 %v998_v38, %v994_v37 }
 0x180   : > { %6008 = vmatprep.subr.msk.bf16.mxu0 %vm1169_vm0, %v7112_v44  ;;  %v1216_v45 = vsel %vm1169_vm0, %v7112_v44, 0 }
 0x181   : > { %5712 = vmatpush3.bf16.xpose.msra.mxu0 %v1216_v45 }
 0x188   : > { %5714 = vmatmul.mubr.msk.bf16.vlgmr.msra.gmra.mrb[32].mxu0 %vm1169_vm0, %v6984_v29 }
 0x189   : > { %5717 = vmatprep.mubr.msk.bf16.mxu0 %vm1169_vm0, %v7006_v49 }
 0x190   : > { %5718 = vmatmul.mubr.msk.bf16.gmra.mrb[36].mxu0 %vm1169_vm0, %v7029_v11 }
 0x191   : > { %5721 = vmatprep.mubr.msk.bf16.mxu0 %vm1169_vm0, %v7053_v39 }
 0x198   : > { %5722 = vmatmul.mubr.msk.bf16.gmra.mrb[40].mxu0 %vm1169_vm0, %v7077_v0 }
 0x199   : > { %5725 = vmatprep.mubr.msk.bf16.mxu0 %vm1169_vm0, %v7097_v25 }
 0x1a0   : > { %5726 = vmatmul.mubr.msk.bf16.gmra.mrb[44].mxu0 %vm1169_vm0, %v7110_v43 }
 0x1ba   : > { %v7132_v6 = vpop.permute.xlu0 %1636 }
 0x1bb   : > { %6009 = vmatprep.subr.msk.bf16.mxu1 %vm1169_vm0, %v7132_v6 }
 0x1c2   : > { %v7170_v10 = vpop.permute.xlu1 %1638 }
 0x25b   : > { %v5715_v8 = vpop.f32.mrb[32].mxu0 }
 0x25c   : > { %1319 = vmax.xlane.f32.xlu1 %v5715_v8  ;;  %v1252_v46 = vpop.f32.mrb[33].mxu0 }
 0x25d   : > { %1315 = vmax.xlane.f32.xlu0 %v1252_v46  ;;  %v5716_v47 = vpop.f32.mrb[34].mxu0 }
 0x25e   : > { %v1255_v48 = vpop.f32.mrb[35].mxu0 }
 0x260   : > { %1321 = vmax.xlane.f32.xlu1 %v5716_v47 }
 0x261   : > { %1317 = vmax.xlane.f32.xlu0 %v1255_v48 }
 0x263   : > { %v5719_v53 = vpop.f32.mrb[36].mxu0 }
 0x264   : > { %v7136_v54 = vpop.f32.mrb[37].mxu0 }
 0x265   : > { %1327 = vmax.xlane.f32.xlu0 %v5719_v53  ;;  %v7138_v55 = vpop.f32.mrb[38].mxu0 }
 0x266   : > { %1329 = vmax.xlane.f32.xlu1 %v7138_v55  ;;  %v7141_v56 = vpop.f32.mrb[39].mxu0 }
 0x269   : > { %1323 = vmax.xlane.f32.xlu0 %v7136_v54 }
 0x26a   : > { %1325 = vmax.xlane.f32.xlu1 %v7141_v56 }
 0x26b   : > { %v7145_v57 = vpop.f32.mrb[40].mxu0 }
 0x26c   : > { %v7147_v58 = vpop.f32.mrb[41].mxu0 }
 0x26d   : > { %1335 = vmax.xlane.f32.xlu0 %v7145_v57  ;;  %v7150_v59 = vpop.f32.mrb[42].mxu0 }
 0x26e   : > { %1337 = vmax.xlane.f32.xlu1 %v7150_v59  ;;  %v7153_v60 = vpop.f32.mrb[43].mxu0 }
 0x271   : > { %1331 = vmax.xlane.f32.xlu0 %v7147_v58 }
 0x272   : > { %1333 = vmax.xlane.f32.xlu1 %v7153_v60 }
 0x273   : > { %v5727_v61 = vpop.f32.mrb[44].mxu0 }
 0x274   : > { %v7157_v62 = vpop.f32.mrb[45].mxu0 }
 0x275   : > { %1343 = vmax.xlane.f32.xlu0 %v5727_v61  ;;  %v7159_v63 = vpop.f32.mrb[46].mxu0 }
 0x276   : > { %v7161_v9 = vpop.f32.mrb[47].mxu0 }
 0x279   : > { %1339 = vmax.xlane.f32.xlu0 %v7157_v62 }
 0x283   : > { %1642 = vrot.lane.b32.xlu1 %v7034_v13, %s6649_s1 }
 0x28f   : > { %1640 = vrot.lane.b32.xlu0 %v7010_v51, %s6649_s1 }
 0x2a7   : > { %1345 = vmax.xlane.f32.xlu1 %v7159_v63 }
 0x2ab   : > { %1341 = vmax.xlane.f32.xlu1 %v7161_v9 }
 0x2e9   : > { %v1320_v31 = vpop.xlane.xlu1 %1319 }
 0x2ea   : > { %v1349_v15 = vsub.f32 %v5715_v8, %v1320_v31  ;;  %v1316_v19 = vpop.xlane.xlu0 %1315 }
 0x2eb   : > { %v1347_v20 = vsub.f32 %v1252_v46, %v1316_v19 }
 0x2ec   : > { %v1367_v21 = vmul.f32 1.442695, %v1349_v15 }
 0x2ed   : > { %v1363_v22 = vmul.f32 1.442695, %v1347_v20  ;;  %v1322_v23 = vpop.xlane.xlu1 %1321 }
 0x2ee   : > { %6232 = vpow2.f32 %v1367_v21  ;;  %v1350_v27 = vsub.f32 %v5716_v47, %v1322_v23  ;;  %v1318_v28 = vpop.xlane.xlu0 %1317 }
 0x2ef   : > { %v1348_v32 = vsub.f32 %v1255_v48, %v1318_v28  ;;  %6234 = vpow2.f32 %v1363_v22 }
 0x2f0   : > { %v1369_v33 = vmul.f32 1.442695, %v1350_v27 }
 0x2f1   : > { %v1365_v34 = vmul.f32 1.442695, %v1348_v32 }
 0x2f2   : > { %6236 = vpow2.f32 %v1369_v33  ;;  %v1328_v45 = vpop.xlane.xlu0 %1327 }
 0x2f3   : > { %6238 = vpow2.f32 %v1365_v34  ;;  %v1330_v47 = vpop.xlane.xlu1 %1329  ;;  %v1353_v15 = vsub.f32 %v5719_v53, %v1328_v45 }
 0x2f4   : > { %v1354_v27 = vsub.f32 %v7138_v55, %v1330_v47 }
 0x2f5   : > { %v1375_v21 = vmul.f32 1.442695, %v1353_v15 }
 0x2f6   : > { %v1324_v8 = vpop.xlane.xlu0 %1323  ;;  %v1377_v5 = vmul.f32 1.442695, %v1354_v27 }
 0x2f7   : > { %v1326_v31 = vpop.xlane.xlu1 %1325  ;;  %v1351_v19 = vsub.f32 %v7136_v54, %v1324_v8  ;;  %6240 = vpow2.f32 %v1375_v21 }
 0x2f8   : > { %v7172_v35 = vpop.eup %6232  ;;  %v1352_v22 = vsub.f32 %v7141_v56, %v1326_v31 }
 0x2f9   : > { %1399 = vadd.xlane.f32.xlu0 %v7172_v35  ;;  %v7175_v36 = vpop.eup %6234  ;;  %v1371_v28 = vmul.f32 1.442695, %v1351_v19 }
 0x2fa   : > { %v1336_v46 = vpop.xlane.xlu0 %1335  ;;  %v1373_v32 = vmul.f32 1.442695, %v1352_v22 }
 0x2fb   : > { %v1338_v23 = vpop.xlane.xlu1 %1337  ;;  %6242 = vpow2.f32 %v1371_v28  ;;  %v1357_v24 = vsub.f32 %v7145_v57, %v1336_v46 }
 0x2fc   : > { %v7177_v37 = vpop.eup %6236  ;;  %6244 = vpow2.f32 %v1373_v32  ;;  %v1358_v57 = vsub.f32 %v7150_v59, %v1338_v23 }
 0x2fd   : > { %1395 = vadd.xlane.f32.xlu0 %v7175_v36  ;;  %1401 = vadd.xlane.f32.xlu1 %v7177_v37  ;;  %v7181_v38 = vpop.eup %6238  ;;  %6246 = vpow2.f32 %v1377_v5  ;;  %v1383_v45 = vmul.f32 1.442695, %v1357_v24 }
 0x2fe   : > { %v1332_v48 = vpop.xlane.xlu0 %1331 }
 0x2ff   : > { %v1334_v3 = vpop.xlane.xlu1 %1333  ;;  %v1355_v56 = vsub.f32 %v7147_v58, %v1332_v48  ;;  %v1385_v58 = vmul.f32 1.442695, %v1358_v57 }
 0x300   : > { %v1356_v48 = vsub.f32 %v7153_v60, %v1334_v3 }
 0x301   : > { %1397 = vadd.xlane.f32.xlu1 %v7181_v38  ;;  %v7196_v47 = vpop.eup %6240 }
 0x302   : > { %v1344_v20 = vpop.xlane.xlu0 %1343 }
 0x303   : > { %v1361_v33 = vsub.f32 %v5727_v61, %v1344_v20  ;;  %v7194_v8 = vpop.permute.xlu1 %1642  ;;  %v1379_v61 = vmul.f32 1.442695, %v1355_v56 }
 0x305   : > { %v1391_v53 = vmul.f32 1.442695, %v1361_v33  ;;  %v7200_v46 = vpop.eup %6242 }
 0x306   : > { %v1340_v34 = vpop.xlane.xlu0 %1339  ;;  %v7202_v5 = vpop.eup %6244 }
 0x307   : > { %v1359_v54 = vsub.f32 %v7157_v62, %v1340_v34  ;;  %6248 = vpow2.f32 %v1391_v53  ;;  %v7208_v15 = vpop.eup %6246 }
 0x308   : > { %6250 = vpow2.f32 %v1383_v45 }
 0x309   : > { %v1387_v55 = vmul.f32 1.442695, %v1359_v54 }
 0x30a   : > { %v1641_v32 = vpop.permute.xlu0 %1640 }
 0x30b   : > { %6252 = vpow2.f32 %v1387_v55 }
 0x30c   : > { %6254 = vpow2.f32 %v1379_v61 }
 0x311   : > { %v7210_v19 = vpop.eup %6248 }
 0x312   : > { %1646 = vrot.lane.b32.xlu1 %v7082_v4, %s6649_s1  ;;  %v7215_v21 = vpop.eup %6250 }
 0x313   : > { %1644 = vrot.lane.b32.xlu0 %v7058_v41, %s6649_s1 }
 0x315   : > { %v7217_v22 = vpop.eup %6252 }
 0x316   : > { %v7221_v60 = vpop.eup %6254 }
 0x332   : > { %1407 = vadd.xlane.f32.xlu0 %v7196_v47 }
 0x334   : > { %v1346_v62 = vpop.xlane.xlu1 %1345 }
 0x335   : > { %v1362_v24 = vsub.f32 %v7159_v63, %v1346_v62  ;;  %v1381_v63 = vmul.f32 1.442695, %v1356_v48 }
 0x336   : > { %1405 = vadd.xlane.f32.xlu0 %v7202_v5  ;;  %1403 = vadd.xlane.f32.xlu1 %v7200_v46 }
 0x337   : > { %v1393_v31 = vmul.f32 1.442695, %v1362_v24 }
 0x338   : > { %v1342_v59 = vpop.xlane.xlu1 %1341 }
 0x339   : > { %6256 = vpow2.f32 %v1393_v31  ;;  %v1360_v20 = vsub.f32 %v7161_v9, %v1342_v59  ;;  %v1677_v59 = vsel %vm1169_vm0, %v7132_v6, 0 }
 0x33a   : > { %1423 = vadd.xlane.f32.xlu0 %v7210_v19  ;;  %1409 = vadd.xlane.f32.xlu1 %v7208_v15  ;;  %6258 = vpow2.f32 %v1385_v58 }
 0x33b   : > { %6260 = vpow2.f32 %v1381_v63  ;;  %v1389_v3 = vmul.f32 1.442695, %v1360_v20 }
 0x33d   : > { %6262 = vpow2.f32 %v1389_v3 }
 0x33e   : > { %1419 = vadd.xlane.f32.xlu0 %v7217_v22  ;;  %1415 = vadd.xlane.f32.xlu1 %v7215_v21 }
 0x342   : > { %1411 = vadd.xlane.f32.xlu1 %v7221_v60 }
 0x343   : > { %v7224_v23 = vpop.eup %6256 }
 0x344   : > { %1425 = vadd.xlane.f32.xlu0 %v7224_v23  ;;  %v7227_v9 = vpop.eup %6258 }
 0x345   : > { %v7230_v27 = vpop.eup %6260 }
 0x346   : > { %1417 = vadd.xlane.f32.xlu1 %v7227_v9 }
 0x347   : > { %v7233_v28 = vpop.eup %6262 }
 0x34a   : > { %1413 = vadd.xlane.f32.xlu1 %v7230_v27 }
 0x34e   : > { %1421 = vadd.xlane.f32.xlu1 %v7233_v28 }
 0x35a   : > { %1648 = vrot.lane.b32.xlu0 %v7100_v26, %s6649_s1 }
 0x35e   : > { %1612 = vrot.lane.b32.xlu0 %v6967_v16, %s6649_s1 }
 0x35f   : > { %1650 = vrot.lane.b32.xlu1 %v7112_v44, %s6649_s1 }
 0x362   : > { %1616 = vrot.lane.b32.xlu0 %v7006_v49, %s6649_s1 }
 0x363   : > { %1614 = vrot.lane.b32.xlu1 %v6984_v29, %s6649_s1 }
 0x366   : > { %1620 = vrot.lane.b32.xlu0 %v7053_v39, %s6649_s1 }
 0x367   : > { %1618 = vrot.lane.b32.xlu1 %v7029_v11, %s6649_s1 }
 0x36a   : > { %1624 = vrot.lane.b32.xlu0 %v7097_v25, %s6649_s1 }
 0x36b   : > { %1622 = vrot.lane.b32.xlu1 %v7077_v0, %s6649_s1 }
 0x36e   : > { %1957 = vrot.lane.b32.xlu0 %v7012_v52, %s6649_s1 }
 0x36f   : > { %1626 = vrot.lane.b32.xlu1 %v7110_v43, %s6649_s1 }
 0x372   : > { %1961 = vrot.lane.b32.xlu0 %v7036_v14, %s6649_s1 }
 0x373   : > { %1959 = vrot.lane.b32.xlu1 %v7008_v50, %s6649_s1 }
 0x376   : > { %1965 = vrot.lane.b32.xlu0 %v7060_v42, %s6649_s1 }
 0x377   : > { %1963 = vrot.lane.b32.xlu1 %v7031_v12, %s6649_s1 }
 0x37a   : > { %1969 = vrot.lane.b32.xlu0 %v7084_v7, %s6649_s1 }
 0x37b   : > { %1967 = vrot.lane.b32.xlu1 %v7055_v40, %s6649_s1 }
 0x37e   : > { %2183 = vrot.lane.b32.xlu0 %v6969_v17, %s6650_s2 }
 0x37f   : > { %1971 = vrot.lane.b32.xlu1 %v7079_v1, %s6649_s1 }
 0x383   : > { %2185 = vrot.lane.b32.xlu1 %v6986_v30, %s6650_s2 }
 0x386   : > { %v1400_v33 = vpop.xlane.xlu0 %1399 }
 0x38a   : > { %v1396_v34 = vpop.xlane.xlu0 %1395  ;;  %v1402_v53 = vpop.xlane.xlu1 %1401 }
 0x38b   : > { %6264 = vrcp.f32 %v1402_v53 }
 0x38c   : > { %6266 = vrcp.f32 %v1396_v34 }
 0x38d   : > { %6268 = vrcp.f32 %v1400_v33 }
 0x38e   : > { %v1398_v54 = vpop.xlane.xlu1 %1397  ;;  %v1645_v6 = vpop.permute.xlu0 %1644 }
 0x38f   : > { %6270 = vrcp.f32 %v1398_v54 }
 0x395   : > { %v6265_v45 = vpop.eup %6264 }
 0x396   : > { %v6267_v56 = vpop.eup %6266  ;;  %v1446_v61 = vmul.f32 %v6265_v45, %v7177_v37  ;;  %v1680_v37 = vsel %vm1169_vm0, %v7170_v10, 0 }
 0x397   : > { %v6269_v55 = vpop.eup %6268  ;;  %v1443_v62 = vmul.f32 %v6267_v56, %v7175_v36  ;;  %v1683_v36 = vsel %vm1169_vm0, %v1641_v32, 0 }
 0x398   : > { %v1445_v58 = vmul.f32 %v6269_v55, %v7172_v35  ;;  %v1686_v35 = vsel %vm1169_vm0, %v7194_v8, 0 }
 0x399   : > { %v6271_v57 = vpop.eup %6270 }
 0x39a   : > { %v1444_v24 = vmul.f32 %v6271_v57, %v7181_v38  ;;  %v1460_v31 = vpack.c.bf16 %v1446_v61, %v1445_v58  ;;  %v1647_v38 = vpop.permute.xlu1 %1646 }
 0x39b   : > { %v1692_v33 = vsel %vm1169_vm0, %v1647_v38, 0 }
 0x39c   : > { %v1459_v48 = vpack.c.bf16 %v1444_v24, %v1443_v62 }
 0x39e   : > { %5745 = vmatprep.mubr.bf16.mxu1 %v1459_v48 }
 0x39f   : > { %5746 = vmatmul.mubr.bf16.vlgmr.msra.gmra.mrb[16].mxu1 %v1460_v31 }
 0x3a0   : > { %5762 = vmatpush3.bf16.xpose.msra.mxu1 %v1677_v59 }
 0x3a1   : > { %6010 = vmatprep.subr.msk.bf16.mxu1 %vm1169_vm0, %v7170_v10  ;;  %v1689_v10 = vsel %vm1169_vm0, %v1645_v6, 0 }
 0x3a8   : > { %5764 = vmatpush3.bf16.xpose.msra.mxu1 %v1680_v37 }
 0x3a9   : > { %6011 = vmatprep.subr.msk.bf16.mxu1 %vm1169_vm0, %v1641_v32 }
 0x3b0   : > { %5766 = vmatpush3.bf16.xpose.msra.mxu1 %v1683_v36 }
 0x3b1   : > { %6012 = vmatprep.subr.msk.bf16.mxu1 %vm1169_vm0, %v7194_v8 }
 0x3b8   : > { %5768 = vmatpush3.bf16.xpose.msra.mxu1 %v1686_v35 }
 0x3b9   : > { %6013 = vmatprep.subr.msk.bf16.mxu1 %vm1169_vm0, %v1645_v6 }
 0x3bf   : > { %v1408_v63 = vpop.xlane.xlu0 %1407 }
 0x3c0   : > { %5770 = vmatpush3.bf16.xpose.msra.mxu1 %v1689_v10 }
 0x3c1   : > { %6014 = vmatprep.subr.msk.bf16.mxu1 %vm1169_vm0, %v1647_v38 }
 0x3c3   : > { %v1406_v20 = vpop.xlane.xlu0 %1405  ;;  %v1404_v3 = vpop.xlane.xlu1 %1403 }
 0x3c4   : > { %6272 = vrcp.f32 %v1406_v20 }
 0x3c5   : > { %6274 = vrcp.f32 %v1404_v3 }
 0x3c6   : > { %6276 = vrcp.f32 %v1408_v63 }
 0x3c7   : > { %v1424_v32 = vpop.xlane.xlu0 %1423  ;;  %v1410_v8 = vpop.xlane.xlu1 %1409 }
 0x3c8   : > { %5772 = vmatpush3.bf16.xpose.msra.mxu1 %v1692_v33  ;;  %6278 = vrcp.f32 %v1410_v8 }
 0x3cb   : > { %v1416_v34 = vpop.xlane.xlu1 %1415  ;;  %v1420_v53 = vpop.xlane.xlu0 %1419 }
 0x3ce   : > { %v6273_v54 = vpop.eup %6272 }
 0x3cf   : > { %v6275_v45 = vpop.eup %6274  ;;  %v1412_v56 = vpop.xlane.xlu1 %1411  ;;  %v1448_v55 = vmul.f32 %v6273_v54, %v7202_v5 }
 0x3d0   : > { %v1447_v57 = vmul.f32 %v6275_v45, %v7200_v46  ;;  %v6277_v61 = vpop.eup %6276 }
 0x3d1   : > { %v1426_v62 = vpop.xlane.xlu0 %1425  ;;  %v1449_v31 = vmul.f32 %v6277_v61, %v7196_v47 }
 0x3d2   : > { %v1461_v24 = vpack.c.bf16 %v1448_v55, %v1447_v57  ;;  %v6279_v58 = vpop.eup %6278 }
 0x3d3   : > { %v1418_v48 = vpop.xlane.xlu1 %1417  ;;  %v1450_v59 = vmul.f32 %v6279_v58, %v7208_v15 }
 0x3d4   : > { %5749 = vmatprep.mubr.bf16.mxu1 %v1461_v24  ;;  %6280 = vrcp.f32 %v1418_v48 }
 0x3d5   : > { %v1649_v37 = vpop.permute.xlu0 %1648  ;;  %6282 = vrcp.f32 %v1412_v56  ;;  %v1462_v36 = vpack.c.bf16 %v1450_v59, %v1449_v31 }
 0x3d6   : > { %6015 = vmatprep.subr.msk.bf16.mxu1 %vm1169_vm0, %v1649_v37  ;;  %v1695_v5 = vsel %vm1169_vm0, %v1649_v37, 0  ;;  %6284 = vrcp.f32 %v1416_v34 }
 0x3d7   : > { %5774 = vmatpush3.bf16.xpose.msra.mxu1 %v1695_v5  ;;  %v1414_v46 = vpop.xlane.xlu1 %1413 }
 0x3d8   : > { %5750 = vmatmul.mubr.bf16.gmra.mrb[20].mxu1 %v1462_v36  ;;  %6286 = vrcp.f32 %v1414_v46 }
 0x3d9   : > { %v1613_v35 = vpop.permute.xlu0 %1612  ;;  %6288 = vrcp.f32 %v1420_v53 }
 0x3db   : > { %v1422_v6 = vpop.xlane.xlu1 %1421 }
 0x3dc   : > { %6290 = vrcp.f32 %v1422_v6 }
 0x3dd   : > { %6292 = vrcp.f32 %v1426_v62  ;;  %v1617_v47 = vpop.permute.xlu0 %1616 }
 0x3de   : > { %v6281_v15 = vpop.eup %6280  ;;  %6294 = vrcp.f32 %v1424_v32 }
 0x3df   : > { %v1651_v38 = vpop.permute.xlu1 %1650  ;;  %v6283_v63 = vpop.eup %6282  ;;  %v1454_v8 = vmul.f32 %v6281_v15, %v7227_v9 }
 0x3e0   : > { %6016 = vmatprep.subr.msk.bf16.mxu1 %vm1169_vm0, %v1651_v38  ;;  %v1698_v10 = vsel %vm1169_vm0, %v1651_v38, 0  ;;  %v6285_v20 = vpop.eup %6284  ;;  %v1451_v53 = vmul.f32 %v6283_v63, %v7221_v60 }
 0x3e1   : > { %v1621_v3 = vpop.permute.xlu0 %1620  ;;  %5776 = vmatpush3.bf16.xpose.msra.mxu1 %v1698_v10  ;;  %v1453_v32 = vmul.f32 %v6285_v20, %v7215_v21 }
 0x3e2   : > { %v6287_v33 = vpop.eup %6286 }
 0x3e3   : > { %v1615_v34 = vpop.permute.xlu1 %1614  ;;  %v1452_v54 = vmul.f32 %v6287_v33, %v7230_v27  ;;  %v6289_v45 = vpop.eup %6288  ;;  %v1464_v61 = vpack.c.bf16 %v1454_v8, %v1453_v32 }
 0x3e4   : > { %v1455_v58 = vmul.f32 %v6289_v45, %v7217_v22 }
 0x3e5   : > { %v1625_v56 = vpop.permute.xlu0 %1624  ;;  %v1463_v55 = vpack.c.bf16 %v1452_v54, %v1451_v53 }
 0x3e6   : > { %v6291_v57 = vpop.eup %6290 }
 0x3e7   : > { %v6293_v62 = vpop.eup %6292  ;;  %5753 = vmatprep.mubr.bf16.mxu1 %v1463_v55  ;;  %v1619_v24 = vpop.permute.xlu1 %1618  ;;  %v1456_v48 = vmul.f32 %v6291_v57, %v7233_v28 }
 0x3e8   : > { %5754 = vmatmul.mubr.bf16.gmra.mrb[24].mxu1 %v1464_v61  ;;  %v6295_v9 = vpop.eup %6294  ;;  %v1458_v27 = vmul.f32 %v6293_v62, %v7224_v23 }
 0x3e9   : > { %v1958_v31 = vpop.permute.xlu0 %1957  ;;  %v1465_v60 = vpack.c.bf16 %v1456_v48, %v1455_v58  ;;  %v1457_v59 = vmul.f32 %v6295_v9, %v7210_v19 }
 0x3ea   : > { %5793 = vmatprep.subr.bf16.mxu0 %v1958_v31 }
 0x3eb   : > { %5757 = vmatprep.mubr.bf16.mxu1 %v1465_v60  ;;  %v1623_v21 = vpop.permute.xlu1 %1622  ;;  %5794 = vmatpush3.bf16.msra.mxu0 %v1958_v31  ;;  %v1466_v37 = vpack.c.bf16 %v1458_v27, %v1457_v59 }
 0x3ed   : > { %v1962_v28 = vpop.permute.xlu0 %1961 }
 0x3ef   : > { %v1627_v36 = vpop.permute.xlu1 %1626 }
 0x3f0   : > { %5758 = vmatmul.mubr.bf16.gmra.mrb[28].mxu1 %v1466_v37 }
 0x3f1   : > { %5777 = vmatprep.mubr.msk.bf16.mxu1 %vm1169_vm0, %v1613_v35  ;;  %v1966_v23 = vpop.permute.xlu0 %1965 }
 0x3f3   : > { %v1960_v22 = vpop.permute.xlu1 %1959 }
 0x3f4   : > { %5795 = vmatprep.subr.bf16.mxu0 %v1960_v22 }
 0x3f5   : > { %5796 = vmatpush3.bf16.msra.mxu0 %v1960_v22  ;;  %v1970_v46 = vpop.permute.xlu0 %1969 }
 0x3f6   : > { %5797 = vmatprep.subr.bf16.mxu0 %v1962_v28 }
 0x3f7   : > { %v1964_v5 = vpop.permute.xlu1 %1963 }
 0x3f8   : > { %5778 = vmatmul.mubr.msk.bf16.vlgmr.msra.gmra.mrb[32].mxu1 %vm1169_vm0, %v1615_v34 }
 0x3f9   : > { %5781 = vmatprep.mubr.msk.bf16.mxu1 %vm1169_vm0, %v1617_v47  ;;  %5798 = vmatpush3.bf16.msra.mxu0 %v1962_v28  ;;  %v7319_v6 = vpop.permute.xlu0 %2183 }
 0x3fa   : > { %5799 = vmatprep.subr.bf16.mxu0 %v1964_v5 }
 0x3fb   : > { %v1968_v19 = vpop.permute.xlu1 %1967 }
 0x3fd   : > { %5800 = vmatpush3.bf16.msra.mxu0 %v1964_v5 }
 0x3fe   : > { %5801 = vmatprep.subr.bf16.mxu0 %v1966_v23 }
 0x3ff   : > { %v1972_v35 = vpop.permute.xlu1 %1971 }
 0x400   : > { %5782 = vmatmul.mubr.msk.bf16.gmra.mrb[36].mxu1 %vm1169_vm0, %v1619_v24 }
 0x401   : > { %5785 = vmatprep.mubr.msk.bf16.mxu1 %vm1169_vm0, %v1621_v3  ;;  %5802 = vmatpush3.bf16.msra.mxu0 %v1966_v23 }
 0x402   : > { %5803 = vmatprep.subr.bf16.mxu0 %v1968_v19 }
 0x405   : > { %5804 = vmatpush3.bf16.msra.mxu0 %v1968_v19 }
 0x406   : > { %5805 = vmatprep.subr.bf16.mxu0 %v1970_v46 }
 0x408   : > { %5786 = vmatmul.mubr.msk.bf16.gmra.mrb[40].mxu1 %vm1169_vm0, %v1623_v21 }
 0x409   : > { %5789 = vmatprep.mubr.msk.bf16.mxu1 %vm1169_vm0, %v1625_v56  ;;  %5806 = vmatpush3.bf16.msra.mxu0 %v1970_v46 }
 0x40a   : > { %5807 = vmatprep.subr.bf16.mxu0 %v1972_v35 }
 0x40d   : > { %5808 = vmatpush3.bf16.msra.mxu0 %v1972_v35 }
 0x40e   : > { %6017 = vmatprep.subr.msk.bf16.mxu0 %vm1169_vm0, %v7319_v6 }
 0x410   : > { %5790 = vmatmul.mubr.msk.bf16.gmra.mrb[44].mxu1 %vm1169_vm0, %v1627_v36 }
 0x472   : > { %v5747_v47 = vpop.f32.mrb[16].mxu1 }
 0x473   : > { %v1501_v15 = vpop.f32.mrb[17].mxu1 }
 0x474   : > { %v5748_v38 = vpop.f32.mrb[18].mxu1 }
 0x475   : > { %v1565_v63 = vpack.c.bf16 %v5748_v38, %v5747_v47  ;;  %v1504_v10 = vpop.f32.mrb[19].mxu1 }
 0x476   : > { %v1564_v20 = vpack.c.bf16 %v1504_v10, %v1501_v15 }
 0x477   : > { %1573 = vst.msk [vmem:[#allocation3 + $0x8] sm:$0xff] %vm1169_vm0, %v1565_v63  ;;  %v7369_v63 = vpop.permute.xlu1 %2185 }
 0x478   : > { %1572 = vst.msk [vmem:[#allocation3] sm:$0xff] %vm1169_vm0, %v1564_v20 }
 0x4ab   : > { %v5751_v3 = vpop.f32.mrb[20].mxu1 }
 0x4ac   : > { %v1517_v33 = vpop.f32.mrb[21].mxu1 }
 0x4ad   : > { %v5752_v8 = vpop.f32.mrb[22].mxu1 }
 0x4ae   : > { %v1567_v34 = vpack.c.bf16 %v5752_v8, %v5751_v3  ;;  %v1520_v53 = vpop.f32.mrb[23].mxu1 }
 0x4af   : > { %v1566_v54 = vpack.c.bf16 %v1520_v53, %v1517_v33 }
 0x4b0   : > { %1575 = vst.msk [vmem:[#allocation3 + $0x18] sm:$0xff] %vm1169_vm0, %v1567_v34 }
 0x4b1   : > { %1574 = vst.msk [vmem:[#allocation3 + $0x10] sm:$0xff] %vm1169_vm0, %v1566_v54 }
 0x4bb   : > { %v5755_v45 = vpop.f32.mrb[24].mxu1 }
 0x4bc   : > { %v1533_v32 = vpop.f32.mrb[25].mxu1 }
 0x4bd   : > { %v5756_v56 = vpop.f32.mrb[26].mxu1 }
 0x4be   : > { %v1569_v55 = vpack.c.bf16 %v5756_v56, %v5755_v45  ;;  %v1536_v57 = vpop.f32.mrb[27].mxu1 }
 0x4bf   : > { %v1568_v61 = vpack.c.bf16 %v1536_v57, %v1533_v32 }
 0x4c0   : > { %1577 = vst.msk [vmem:[#allocation3 + $0x28] sm:$0xff] %vm1169_vm0, %v1569_v55 }
 0x4c1   : > { %1576 = vst.msk [vmem:[#allocation3 + $0x20] sm:$0xff] %vm1169_vm0, %v1568_v61 }
 0x4c3   : > { %v5759_v62 = vpop.f32.mrb[28].mxu1 }
 0x4c4   : > { %v1549_v24 = vpop.f32.mrb[29].mxu1 }
 0x4c5   : > { %v5760_v58 = vpop.f32.mrb[30].mxu1 }
 0x4c6   : > { %v1571_v48 = vpack.c.bf16 %v5760_v58, %v5759_v62  ;;  %v1552_v9 = vpop.f32.mrb[31].mxu1 }
 0x4c7   : > { %v1570_v31 = vpack.c.bf16 %v1552_v9, %v1549_v24 }
 0x4c8   : > { %1579 = vst.msk [vmem:[#allocation3 + $0x38] sm:$0xff] %vm1169_vm0, %v1571_v48 }
 0x4c9   : > { %1578 = vst.msk [vmem:[#allocation3 + $0x30] sm:$0xff] %vm1169_vm0, %v1570_v31 }
 0x4cb   : > { %v5779_v60 = vpop.f32.mrb[32].mxu1 }
 0x4cc   : > { %1801 = vmax.xlane.f32.xlu0 %v5779_v60  ;;  %v1734_v27 = vpop.f32.mrb[33].mxu1 }
 0x4cd   : > { %v5780_v21 = vpop.f32.mrb[34].mxu1 }
 0x4ce   : > { %v1737_v59 = vpop.f32.mrb[35].mxu1 }
 0x4cf   : > { %1799 = vmax.xlane.f32.xlu1 %v1737_v59 }
 0x4d0   : > { %1797 = vmax.xlane.f32.xlu0 %v1734_v27 }
 0x4d3   : > { %v5783_v37 = vpop.f32.mrb[36].mxu1 }
 0x4d4   : > { %1803 = vmax.xlane.f32.xlu0 %v5780_v21  ;;  %v7332_v36 = vpop.f32.mrb[37].mxu1 }
 0x4d5   : > { %v7334_v22 = vpop.f32.mrb[38].mxu1 }
 0x4d6   : > { %1811 = vmax.xlane.f32.xlu1 %v7334_v22  ;;  %v7337_v28 = vpop.f32.mrb[39].mxu1 }
 0x4d8   : > { %1809 = vmax.xlane.f32.xlu0 %v5783_v37 }
 0x4da   : > { %1807 = vmax.xlane.f32.xlu1 %v7337_v28 }
 0x4db   : > { %v7340_v5 = vpop.f32.mrb[40].mxu1 }
 0x4dc   : > { %1805 = vmax.xlane.f32.xlu0 %v7332_v36  ;;  %v7343_v23 = vpop.f32.mrb[41].mxu1 }
 0x4dd   : > { %v7345_v19 = vpop.f32.mrb[42].mxu1 }
 0x4de   : > { %1819 = vmax.xlane.f32.xlu1 %v7345_v19  ;;  %v7348_v46 = vpop.f32.mrb[43].mxu1 }
 0x4e0   : > { %1817 = vmax.xlane.f32.xlu0 %v7340_v5 }
 0x4e2   : > { %1815 = vmax.xlane.f32.xlu1 %v7348_v46 }
 0x4e3   : > { %v7352_v35 = vpop.f32.mrb[44].mxu1 }
 0x4e4   : > { %1813 = vmax.xlane.f32.xlu0 %v7343_v23  ;;  %v7355_v47 = vpop.f32.mrb[45].mxu1 }
 0x4e5   : > { %v7357_v15 = vpop.f32.mrb[46].mxu1 }
 0x4e6   : > { %v7359_v38 = vpop.f32.mrb[47].mxu1 }
 0x4e8   : > { %1825 = vmax.xlane.f32.xlu0 %v7352_v35 }
 0x4ec   : > { %1821 = vmax.xlane.f32.xlu0 %v7355_v47 }
 0x4f3   : > { %2189 = vrot.lane.b32.xlu1 %v7034_v13, %s6650_s2 }
 0x502   : > { %2187 = vrot.lane.b32.xlu0 %v7010_v51, %s6650_s2 }
 0x517   : > { %1827 = vmax.xlane.f32.xlu1 %v7357_v15 }
 0x51b   : > { %1823 = vmax.xlane.f32.xlu1 %v7359_v38 }
 0x559   : > { %v1802_v10 = vpop.xlane.xlu0 %1801 }
 0x55a   : > { %v1831_v20 = vsub.f32 %v5779_v60, %v1802_v10 }
 0x55c   : > { %v1849_v3 = vmul.f32 1.442695, %v1831_v20  ;;  %v1800_v33 = vpop.xlane.xlu1 %1799 }
 0x55d   : > { %v1830_v8 = vsub.f32 %v1737_v59, %v1800_v33  ;;  %v1798_v34 = vpop.xlane.xlu0 %1797 }
 0x55e   : > { %6296 = vpow2.f32 %v1849_v3  ;;  %v1829_v53 = vsub.f32 %v1734_v27, %v1798_v34 }
 0x55f   : > { %v1847_v54 = vmul.f32 1.442695, %v1830_v8 }
 0x560   : > { %v1845_v45 = vmul.f32 1.442695, %v1829_v53 }
 0x561   : > { %6298 = vpow2.f32 %v1847_v54  ;;  %v1804_v32 = vpop.xlane.xlu0 %1803 }
 0x562   : > { %6300 = vpow2.f32 %v1845_v45  ;;  %v1832_v56 = vsub.f32 %v5780_v21, %v1804_v32 }
 0x563   : > { %v1812_v9 = vpop.xlane.xlu1 %1811 }
 0x564   : > { %v1851_v55 = vmul.f32 1.442695, %v1832_v56  ;;  %v1836_v8 = vsub.f32 %v7334_v22, %v1812_v9 }
 0x565   : > { %v1810_v58 = vpop.xlane.xlu0 %1809 }
 0x566   : > { %6302 = vpow2.f32 %v1851_v55  ;;  %v1835_v60 = vsub.f32 %v5783_v37, %v1810_v58  ;;  %v1859_v45 = vmul.f32 1.442695, %v1836_v8 }
 0x567   : > { %v1808_v27 = vpop.xlane.xlu1 %1807 }
 0x568   : > { %v7371_v57 = vpop.eup %6296  ;;  %v1857_v59 = vmul.f32 1.442695, %v1835_v60  ;;  %v1834_v20 = vsub.f32 %v7337_v28, %v1808_v27 }
 0x569   : > { %1881 = vadd.xlane.f32.xlu1 %v7371_v57  ;;  %v1806_v48 = vpop.xlane.xlu0 %1805 }
 0x56a   : > { %v1833_v10 = vsub.f32 %v7332_v36, %v1806_v48  ;;  %6304 = vpow2.f32 %v1857_v59  ;;  %v1855_v53 = vmul.f32 1.442695, %v1834_v20 }
 0x56b   : > { %v7374_v61 = vpop.eup %6298  ;;  %v1820_v3 = vpop.xlane.xlu1 %1819 }
 0x56c   : > { %v7376_v62 = vpop.eup %6300  ;;  %1879 = vadd.xlane.f32.xlu0 %v7374_v61  ;;  %v1853_v34 = vmul.f32 1.442695, %v1833_v10  ;;  %v1840_v22 = vsub.f32 %v7345_v19, %v1820_v3 }
 0x56d   : > { %1877 = vadd.xlane.f32.xlu1 %v7376_v62  ;;  %v1818_v31 = vpop.xlane.xlu0 %1817 }
 0x56e   : > { %v1839_v54 = vsub.f32 %v7340_v5, %v1818_v31  ;;  %6306 = vpow2.f32 %v1853_v34  ;;  %v1867_v31 = vmul.f32 1.442695, %v1840_v22 }
 0x56f   : > { %v1816_v32 = vpop.xlane.xlu1 %1815  ;;  %6308 = vpow2.f32 %v1855_v53 }
 0x570   : > { %v7380_v24 = vpop.eup %6302  ;;  %v1865_v56 = vmul.f32 1.442695, %v1839_v54  ;;  %6310 = vpow2.f32 %v1859_v45 }
 0x571   : > { %1883 = vadd.xlane.f32.xlu1 %v7380_v24  ;;  %v1814_v21 = vpop.xlane.xlu0 %1813 }
 0x572   : > { %v1837_v36 = vsub.f32 %v7343_v23, %v1814_v21  ;;  %6312 = vpow2.f32 %v1865_v56  ;;  %v1838_v23 = vsub.f32 %v7348_v46, %v1816_v32 }
 0x573   : > { %v7397_v5 = vpop.permute.xlu1 %2189 }
 0x574   : > { %v1861_v48 = vmul.f32 1.442695, %v1837_v36  ;;  %v7395_v9 = vpop.eup %6304  ;;  %v1863_v21 = vmul.f32 1.442695, %v1838_v23 }
 0x575   : > { %v1826_v33 = vpop.xlane.xlu0 %1825 }
 0x576   : > { %v1843_v37 = vsub.f32 %v7352_v35, %v1826_v33 }
 0x578   : > { %v1873_v28 = vmul.f32 1.442695, %v1843_v37  ;;  %v7401_v60 = vpop.eup %6306 }
 0x579   : > { %v1822_v55 = vpop.xlane.xlu0 %1821 }
 0x57a   : > { %v1841_v58 = vsub.f32 %v7355_v47, %v1822_v55  ;;  %6314 = vpow2.f32 %v1873_v28  ;;  %v7403_v47 = vpop.eup %6308 }
 0x57b   : > { %6316 = vpow2.f32 %v1861_v48  ;;  %v7408_v10 = vpop.eup %6310 }
 0x57c   : > { %v1869_v35 = vmul.f32 1.442695, %v1841_v58  ;;  %v7410_v46 = vpop.eup %6312 }
 0x57d   : > { %v2188_v32 = vpop.permute.xlu0 %2187 }
 0x57e   : > { %6318 = vpow2.f32 %v1869_v35 }
 0x57f   : > { %6320 = vpow2.f32 %v1867_v31 }
 0x582   : > { %2193 = vrot.lane.b32.xlu1 %v7082_v4, %s6650_s2  ;;  %2191 = vrot.lane.b32.xlu0 %v7058_v41, %s6650_s2 }
 0x584   : > { %v7415_v33 = vpop.eup %6314 }
 0x585   : > { %v7417_v8 = vpop.eup %6316 }
 0x588   : > { %v7421_v34 = vpop.eup %6318 }
 0x589   : > { %v7423_v53 = vpop.eup %6320 }
 0x5a1   : > { %1889 = vadd.xlane.f32.xlu0 %v7395_v9 }
 0x5a4   : > { %v1828_v27 = vpop.xlane.xlu1 %1827 }
 0x5a5   : > { %v1844_v19 = vsub.f32 %v7357_v15, %v1828_v27  ;;  %1885 = vadd.xlane.f32.xlu0 %v7401_v60 }
 0x5a6   : > { %1887 = vadd.xlane.f32.xlu1 %v7403_v47 }
 0x5a7   : > { %v1875_v59 = vmul.f32 1.442695, %v1844_v19  ;;  %v2224_v19 = vsel %vm1169_vm0, %v7319_v6, 0 }
 0x5a8   : > { %v1824_v20 = vpop.xlane.xlu1 %1823 }
 0x5a9   : > { %6322 = vpow2.f32 %v1875_v59  ;;  %v1842_v3 = vsub.f32 %v7359_v38, %v1824_v20  ;;  %1891 = vadd.xlane.f32.xlu0 %v7408_v10 }
 0x5aa   : > { %1897 = vadd.xlane.f32.xlu1 %v7410_v46  ;;  %6324 = vpow2.f32 %v1863_v21 }
 0x5ab   : > { %v1871_v15 = vmul.f32 1.442695, %v1842_v3 }
 0x5ad   : > { %1905 = vadd.xlane.f32.xlu0 %v7415_v33  ;;  %6326 = vpow2.f32 %v1871_v15 }
 0x5ae   : > { %1893 = vadd.xlane.f32.xlu1 %v7417_v8 }
 0x5b1   : > { %1901 = vadd.xlane.f32.xlu0 %v7421_v34 }
 0x5b2   : > { %1899 = vadd.xlane.f32.xlu1 %v7423_v53 }
 0x5b3   : > { %v7427_v38 = vpop.eup %6322 }
 0x5b4   : > { %v7429_v54 = vpop.eup %6324 }
 0x5b5   : > { %1907 = vadd.xlane.f32.xlu0 %v7427_v38 }
 0x5b6   : > { %1895 = vadd.xlane.f32.xlu1 %v7429_v54 }
 0x5b7   : > { %v7433_v45 = vpop.eup %6326 }
 0x5ba   : > { %1903 = vadd.xlane.f32.xlu1 %v7433_v45 }
 0x5cb   : > { %2195 = vrot.lane.b32.xlu0 %v7100_v26, %s6650_s2  ;;  %2197 = vrot.lane.b32.xlu1 %v7112_v44, %s6650_s2 }
 0x5cf   : > { %2159 = vrot.lane.b32.xlu0 %v6967_v16, %s6650_s2  ;;  %2161 = vrot.lane.b32.xlu1 %v6984_v29, %s6650_s2 }
 0x5d3   : > { %2163 = vrot.lane.b32.xlu0 %v7006_v49, %s6650_s2  ;;  %2165 = vrot.lane.b32.xlu1 %v7029_v11, %s6650_s2 }
 0x5d7   : > { %2167 = vrot.lane.b32.xlu0 %v7053_v39, %s6650_s2  ;;  %2169 = vrot.lane.b32.xlu1 %v7077_v0, %s6650_s2 }
 0x5db   : > { %2171 = vrot.lane.b32.xlu0 %v7097_v25, %s6650_s2  ;;  %2173 = vrot.lane.b32.xlu1 %v7110_v43, %s6650_s2 }
 0x5df   : > { %2504 = vrot.lane.b32.xlu0 %v7012_v52, %s6650_s2  ;;  %2506 = vrot.lane.b32.xlu1 %v7008_v50, %s6650_s2 }
 0x5e3   : > { %2508 = vrot.lane.b32.xlu0 %v7036_v14, %s6650_s2  ;;  %2510 = vrot.lane.b32.xlu1 %v7031_v12, %s6650_s2 }
 0x5e7   : > { %2512 = vrot.lane.b32.xlu0 %v7060_v42, %s6650_s2  ;;  %2514 = vrot.lane.b32.xlu1 %v7055_v40, %s6650_s2 }
 0x5eb   : > { %2516 = vrot.lane.b32.xlu0 %v7084_v7, %s6650_s2  ;;  %2518 = vrot.lane.b32.xlu1 %v7079_v1, %s6650_s2 }
 0x5ef   : > { %2730 = vrot.lane.b32.xlu0 %v6969_v17, %s6651_s15  ;;  %2732 = vrot.lane.b32.xlu1 %v6986_v30, %s6651_s15 }
 0x5f6   : > { %v1882_v37 = vpop.xlane.xlu1 %1881 }
 0x5f9   : > { %v1880_v56 = vpop.xlane.xlu0 %1879 }
 0x5fa   : > { %6328 = vrcp.f32 %v1880_v56  ;;  %v1878_v36 = vpop.xlane.xlu1 %1877 }
 0x5fb   : > { %6330 = vrcp.f32 %v1878_v36 }
 0x5fc   : > { %6332 = vrcp.f32 %v1882_v37 }
 0x5fd   : > { %v2192_v6 = vpop.permute.xlu0 %2191 }
 0x5fe   : > { %v1884_v55 = vpop.xlane.xlu1 %1883  ;;  %v2236_v21 = vsel %vm1169_vm0, %v2192_v6, 0 }
 0x5ff   : > { %6334 = vrcp.f32 %v1884_v55 }
 0x604   : > { %v6329_v28 = vpop.eup %6328 }
 0x605   : > { %v6331_v58 = vpop.eup %6330  ;;  %v1926_v22 = vmul.f32 %v6329_v28, %v7374_v61  ;;  %v2227_v61 = vsel %vm1169_vm0, %v7369_v63, 0 }
 0x606   : > { %v1925_v48 = vmul.f32 %v6331_v58, %v7376_v62  ;;  %v6333_v35 = vpop.eup %6332  ;;  %v2233_v62 = vsel %vm1169_vm0, %v7397_v5, 0 }
 0x607   : > { %v1927_v30 = vmul.f32 %v6333_v35, %v7371_v57  ;;  %v2230_v57 = vsel %vm1169_vm0, %v2188_v32, 0 }
 0x608   : > { %v1941_v17 = vpack.c.bf16 %v1926_v22, %v1925_v48 }
 0x609   : > { %v6335_v31 = vpop.eup %6334 }
 0x60a   : > { %v1928_v23 = vmul.f32 %v6335_v31, %v7380_v24  ;;  %5809 = vmatprep.mubr.bf16.mxu0 %v1941_v17 }
 0x60c   : > { %v1942_v27 = vpack.c.bf16 %v1928_v23, %v1927_v30 }
 0x60e   : > { %5810 = vmatmul.mubr.bf16.vlgmr.msra.gmra.mrb[48].mxu0 %v1942_v27 }
 0x60f   : > { %5826 = vmatpush3.bf16.xpose.msra.mxu0 %v2224_v19 }
 0x610   : > { %6018 = vmatprep.subr.msk.bf16.mxu0 %vm1169_vm0, %v7369_v63  ;;  %v2194_v63 = vpop.permute.xlu1 %2193 }
 0x611   : > { %v2239_v15 = vsel %vm1169_vm0, %v2194_v63, 0 }
 0x617   : > { %5828 = vmatpush3.bf16.xpose.msra.mxu0 %v2227_v61 }
 0x618   : > { %6019 = vmatprep.subr.msk.bf16.mxu0 %vm1169_vm0, %v2188_v32 }
 0x61f   : > { %5830 = vmatpush3.bf16.xpose.msra.mxu0 %v2230_v57 }
 0x620   : > { %6020 = vmatprep.subr.msk.bf16.mxu0 %vm1169_vm0, %v7397_v5 }
 0x627   : > { %5832 = vmatpush3.bf16.xpose.msra.mxu0 %v2233_v62 }
 0x628   : > { %6021 = vmatprep.subr.msk.bf16.mxu0 %vm1169_vm0, %v2192_v6 }
 0x62e   : > { %v1890_v24 = vpop.xlane.xlu0 %1889 }
 0x62f   : > { %5834 = vmatpush3.bf16.xpose.msra.mxu0 %v2236_v21 }
 0x630   : > { %6022 = vmatprep.subr.msk.bf16.mxu0 %vm1169_vm0, %v2194_v63 }
 0x632   : > { %v1886_v59 = vpop.xlane.xlu0 %1885 }
 0x633   : > { %6336 = vrcp.f32 %v1886_v59  ;;  %v1888_v20 = vpop.xlane.xlu1 %1887 }
 0x634   : > { %6338 = vrcp.f32 %v1888_v20 }
 0x635   : > { %6340 = vrcp.f32 %v1890_v24 }
 0x636   : > { %v1892_v3 = vpop.xlane.xlu0 %1891 }
 0x637   : > { %6342 = vrcp.f32 %v1892_v3  ;;  %5836 = vmatpush3.bf16.xpose.msra.mxu0 %v2239_v15  ;;  %v1898_v5 = vpop.xlane.xlu1 %1897 }
 0x63a   : > { %v1906_v32 = vpop.xlane.xlu0 %1905 }
 0x63b   : > { %v1894_v37 = vpop.xlane.xlu1 %1893 }
 0x63d   : > { %v6337_v56 = vpop.eup %6336 }
 0x63e   : > { %v6339_v36 = vpop.eup %6338  ;;  %v1902_v55 = vpop.xlane.xlu0 %1901  ;;  %v1929_v28 = vmul.f32 %v6337_v56, %v7401_v60 }
 0x63f   : > { %v6341_v58 = vpop.eup %6340  ;;  %v1900_v22 = vpop.xlane.xlu1 %1899  ;;  %v1930_v48 = vmul.f32 %v6339_v36, %v7403_v47 }
 0x640   : > { %6344 = vrcp.f32 %v1900_v22  ;;  %v1931_v30 = vmul.f32 %v6341_v58, %v7395_v9 }
 0x641   : > { %v6343_v35 = vpop.eup %6342  ;;  %v1943_v17 = vpack.c.bf16 %v1930_v48, %v1929_v28  ;;  %6346 = vrcp.f32 %v1894_v37 }
 0x642   : > { %v1908_v31 = vpop.xlane.xlu0 %1907  ;;  %v1932_v23 = vmul.f32 %v6343_v35, %v7408_v10  ;;  %6348 = vrcp.f32 %v1898_v5 }
 0x643   : > { %5813 = vmatprep.mubr.bf16.mxu0 %v1943_v17  ;;  %v1896_v27 = vpop.xlane.xlu1 %1895 }
 0x644   : > { %6350 = vrcp.f32 %v1896_v27  ;;  %v1944_v19 = vpack.c.bf16 %v1932_v23, %v1931_v30 }
 0x645   : > { %6352 = vrcp.f32 %v1902_v55 }
 0x646   : > { %v2196_v60 = vpop.permute.xlu0 %2195  ;;  %5814 = vmatmul.mubr.bf16.gmra.mrb[52].mxu0 %v1944_v19 }
 0x647   : > { %6023 = vmatprep.subr.msk.bf16.mxu0 %vm1169_vm0, %v2196_v60  ;;  %v1904_v47 = vpop.xlane.xlu1 %1903  ;;  %v2242_v61 = vsel %vm1169_vm0, %v2196_v60, 0 }
 0x648   : > { %6354 = vrcp.f32 %v1904_v47  ;;  %5838 = vmatpush3.bf16.xpose.msra.mxu0 %v2242_v61 }
 0x649   : > { %6356 = vrcp.f32 %v1908_v31 }
 0x64a   : > { %v2160_v57 = vpop.permute.xlu0 %2159  ;;  %v6345_v9 = vpop.eup %6344  ;;  %6358 = vrcp.f32 %v1906_v32 }
 0x64b   : > { %v2198_v10 = vpop.permute.xlu1 %2197  ;;  %v6347_v62 = vpop.eup %6346  ;;  %v1936_v63 = vmul.f32 %v6345_v9, %v7423_v53 }
 0x64c   : > { %6024 = vmatprep.subr.msk.bf16.mxu0 %vm1169_vm0, %v2198_v10  ;;  %v6349_v6 = vpop.eup %6348  ;;  %v2245_v20 = vsel %vm1169_vm0, %v2198_v10, 0  ;;  %v1933_v3 = vmul.f32 %v6347_v62, %v7417_v8 }
 0x64d   : > { %v1935_v32 = vmul.f32 %v6349_v6, %v7410_v46 }
 0x64e   : > { %v6351_v24 = vpop.eup %6350  ;;  %v2164_v21 = vpop.permute.xlu0 %2163 }
 0x64f   : > { %v2162_v59 = vpop.permute.xlu1 %2161  ;;  %v1934_v15 = vmul.f32 %v6351_v24, %v7429_v54  ;;  %v6353_v5 = vpop.eup %6352  ;;  %v1946_v55 = vpack.c.bf16 %v1936_v63, %v1935_v32 }
 0x650   : > { %5840 = vmatpush3.bf16.xpose.msra.mxu0 %v2245_v20  ;;  %v1937_v53 = vmul.f32 %v6353_v5, %v7421_v34 }
 0x651   : > { %v1945_v37 = vpack.c.bf16 %v1934_v15, %v1933_v3 }
 0x652   : > { %v6355_v56 = vpop.eup %6354  ;;  %v2168_v36 = vpop.permute.xlu0 %2167 }
 0x653   : > { %v6357_v28 = vpop.eup %6356  ;;  %5817 = vmatprep.mubr.bf16.mxu0 %v1945_v37  ;;  %v2166_v58 = vpop.permute.xlu1 %2165  ;;  %v1938_v22 = vmul.f32 %v6355_v56, %v7433_v45 }
 0x654   : > { %5818 = vmatmul.mubr.bf16.gmra.mrb[56].mxu0 %v1946_v55  ;;  %v6359_v48 = vpop.eup %6358  ;;  %v1940_v54 = vmul.f32 %v6357_v28, %v7427_v38 }
 0x655   : > { %v1947_v8 = vpack.c.bf16 %v1938_v22, %v1937_v53  ;;  %v1939_v46 = vmul.f32 %v6359_v48, %v7415_v33 }
 0x656   : > { %v2172_v35 = vpop.permute.xlu0 %2171 }
 0x657   : > { %5821 = vmatprep.mubr.bf16.mxu0 %v1947_v8  ;;  %v2170_v17 = vpop.permute.xlu1 %2169  ;;  %v1948_v30 = vpack.c.bf16 %v1940_v54, %v1939_v46 }
 0x65a   : > { %v2505_v31 = vpop.permute.xlu0 %2504 }
 0x65b   : > { %5857 = vmatprep.subr.bf16.mxu1 %v2505_v31  ;;  %v2174_v23 = vpop.permute.xlu1 %2173 }
 0x65c   : > { %5822 = vmatmul.mubr.bf16.gmra.mrb[60].mxu0 %v1948_v30  ;;  %5858 = vmatpush3.bf16.msra.mxu1 %v2505_v31 }
 0x65d   : > { %5841 = vmatprep.mubr.msk.bf16.mxu0 %vm1169_vm0, %v2160_v57 }
 0x65e   : > { %v2509_v45 = vpop.permute.xlu0 %2508 }
 0x65f   : > { %v2507_v34 = vpop.permute.xlu1 %2506 }
 0x660   : > { %5859 = vmatprep.subr.bf16.mxu1 %v2507_v34 }
 0x661   : > { %5860 = vmatpush3.bf16.msra.mxu1 %v2507_v34 }
 0x662   : > { %5861 = vmatprep.subr.bf16.mxu1 %v2509_v45  ;;  %v2513_v33 = vpop.permute.xlu0 %2512 }
 0x663   : > { %v2511_v38 = vpop.permute.xlu1 %2510 }
 0x664   : > { %5842 = vmatmul.mubr.msk.bf16.vlgmr.msra.gmra.mrb[64].mxu0 %vm1169_vm0, %v2162_v59 }
 0x665   : > { %5845 = vmatprep.mubr.msk.bf16.mxu0 %vm1169_vm0, %v2164_v21  ;;  %5862 = vmatpush3.bf16.msra.mxu1 %v2509_v45 }
 0x666   : > { %5863 = vmatprep.subr.bf16.mxu1 %v2511_v38  ;;  %v2517_v19 = vpop.permute.xlu0 %2516 }
 0x667   : > { %v2515_v27 = vpop.permute.xlu1 %2514 }
 0x669   : > { %5864 = vmatpush3.bf16.msra.mxu1 %v2511_v38 }
 0x66a   : > { %5865 = vmatprep.subr.bf16.mxu1 %v2513_v33  ;;  %v7519_v47 = vpop.permute.xlu0 %2730 }
 0x66b   : > { %v2519_v60 = vpop.permute.xlu1 %2518 }
 0x66c   : > { %5846 = vmatmul.mubr.msk.bf16.gmra.mrb[68].mxu0 %vm1169_vm0, %v2166_v58 }
 0x66d   : > { %5849 = vmatprep.mubr.msk.bf16.mxu0 %vm1169_vm0, %v2168_v36  ;;  %5866 = vmatpush3.bf16.msra.mxu1 %v2513_v33 }
 0x66e   : > { %5867 = vmatprep.subr.bf16.mxu1 %v2515_v27 }
 0x66f   : > { %v7609_v53 = vpop.permute.xlu1 %2732 }
 0x671   : > { %5868 = vmatpush3.bf16.msra.mxu1 %v2515_v27 }
 0x672   : > { %5869 = vmatprep.subr.bf16.mxu1 %v2517_v19 }
 0x674   : > { %5850 = vmatmul.mubr.msk.bf16.gmra.mrb[72].mxu0 %vm1169_vm0, %v2170_v17 }
 0x675   : > { %5853 = vmatprep.mubr.msk.bf16.mxu0 %vm1169_vm0, %v2172_v35  ;;  %5870 = vmatpush3.bf16.msra.mxu1 %v2517_v19 }
 0x676   : > { %5871 = vmatprep.subr.bf16.mxu1 %v2519_v60 }
 0x679   : > { %5872 = vmatpush3.bf16.msra.mxu1 %v2519_v60 }
 0x67a   : > { %6025 = vmatprep.subr.msk.bf16.mxu1 %vm1169_vm0, %v7519_v47 }
 0x67c   : > { %5854 = vmatmul.mubr.msk.bf16.gmra.mrb[76].mxu0 %vm1169_vm0, %v2174_v23 }
 0x6e1   : > { %v7524_v61 = vpop.f32.mrb[48].mxu0 }
 0x6e2   : > { %v7526_v57 = vpop.f32.mrb[49].mxu0 }
 0x6e3   : > { %v7528_v9 = vpop.f32.mrb[50].mxu0 }
 0x6e4   : > { %v7532_v62 = vpop.f32.mrb[51].mxu0 }
 0x719   : > { %v7536_v24 = vpop.f32.mrb[52].mxu0 }
 0x71a   : > { %v7538_v21 = vpop.f32.mrb[53].mxu0 }
 0x71b   : > { %v7540_v63 = vpop.f32.mrb[54].mxu0 }
 0x71c   : > { %v7544_v20 = vpop.f32.mrb[55].mxu0 }
 0x727   : > { %v7548_v15 = vpop.f32.mrb[56].mxu0 }
 0x728   : > { %v7550_v5 = vpop.f32.mrb[57].mxu0 }
 0x729   : > { %8854 = vst [vmem:[#allocation23_spill] sm:$0xff] %v7550_v5  ;;  %v7552_v32 = vpop.f32.mrb[58].mxu0 }
 0x72a   : > { %v7556_v56 = vpop.f32.mrb[59].mxu0 }
 0x72b   : > { %8855 = vst [vmem:[#allocation24_spill] sm:$0xff] %v7556_v56 }
 0x72f   : > { %v7560_v55 = vpop.f32.mrb[60].mxu0 }
 0x730   : > { %8856 = vst [vmem:[#allocation25_spill] sm:$0xff] %v7560_v55  ;;  %v7562_v28 = vpop.f32.mrb[61].mxu0 }
 0x731   : > { %8857 = vst [vmem:[#allocation26_spill] sm:$0xff] %v7562_v28  ;;  %v7564_v58 = vpop.f32.mrb[62].mxu0 }
 0x732   : > { %8858 = vst [vmem:[#allocation27_spill] sm:$0xff] %v7564_v58  ;;  %v7568_v22 = vpop.f32.mrb[63].mxu0 }
 0x733   : > { %8859 = vst [vmem:[#allocation28_spill] sm:$0xff] %v7568_v22 }
 0x737   : > { %v5843_v8 = vpop.f32.mrb[64].mxu0 }
 0x738   : > { %2348 = vmax.xlane.f32.xlu0 %v5843_v8  ;;  %v2281_v35 = vpop.f32.mrb[65].mxu0 }
 0x739   : > { %v5844_v54 = vpop.f32.mrb[66].mxu0 }
 0x73a   : > { %v2284_v17 = vpop.f32.mrb[67].mxu0 }
 0x73b   : > { %2346 = vmax.xlane.f32.xlu1 %v2284_v17 }
 0x73c   : > { %2344 = vmax.xlane.f32.xlu0 %v2281_v35 }
 0x73f   : > { %v5847_v46 = vpop.f32.mrb[68].mxu0 }
 0x740   : > { %2350 = vmax.xlane.f32.xlu0 %v5844_v54  ;;  %v7572_v31 = vpop.f32.mrb[69].mxu0 }
 0x741   : > { %v7574_v30 = vpop.f32.mrb[70].mxu0 }
 0x742   : > { %2358 = vmax.xlane.f32.xlu1 %v7574_v30  ;;  %v7577_v23 = vpop.f32.mrb[71].mxu0 }
 0x744   : > { %2356 = vmax.xlane.f32.xlu0 %v5847_v46 }
 0x746   : > { %2354 = vmax.xlane.f32.xlu1 %v7577_v23 }
 0x747   : > { %v7580_v34 = vpop.f32.mrb[72].mxu0 }
 0x748   : > { %2352 = vmax.xlane.f32.xlu0 %v7572_v31  ;;  %v7583_v45 = vpop.f32.mrb[73].mxu0 }
 0x749   : > { %v7585_v38 = vpop.f32.mrb[74].mxu0 }
 0x74a   : > { %2366 = vmax.xlane.f32.xlu1 %v7585_v38  ;;  %v7588_v33 = vpop.f32.mrb[75].mxu0 }
 0x74c   : > { %2364 = vmax.xlane.f32.xlu0 %v7580_v34 }
 0x74e   : > { %2362 = vmax.xlane.f32.xlu1 %v7588_v33 }
 0x74f   : > { %v7592_v27 = vpop.f32.mrb[76].mxu0 }
 0x750   : > { %2360 = vmax.xlane.f32.xlu0 %v7583_v45  ;;  %v7595_v19 = vpop.f32.mrb[77].mxu0 }
 0x751   : > { %v7597_v60 = vpop.f32.mrb[78].mxu0 }
 0x752   : > { %v7599_v48 = vpop.f32.mrb[79].mxu0 }
 0x754   : > { %2372 = vmax.xlane.f32.xlu0 %v7592_v27 }
 0x758   : > { %2368 = vmax.xlane.f32.xlu0 %v7595_v19 }
 0x75f   : > { %2736 = vrot.lane.b32.xlu1 %v7034_v13, %s6651_s15 }
 0x76e   : > { %2734 = vrot.lane.b32.xlu0 %v7010_v51, %s6651_s15 }
 0x783   : > { %2374 = vmax.xlane.f32.xlu1 %v7597_v60 }
 0x787   : > { %2370 = vmax.xlane.f32.xlu1 %v7599_v48 }
 0x7c5   : > { %v2349_v36 = vpop.xlane.xlu0 %2348 }
 0x7c6   : > { %v2378_v37 = vsub.f32 %v5843_v8, %v2349_v36 }
 0x7c8   : > { %v2396_v3 = vmul.f32 1.442695, %v2378_v37  ;;  %v2347_v59 = vpop.xlane.xlu1 %2346 }
 0x7c9   : > { %v2377_v6 = vsub.f32 %v2284_v17, %v2347_v59  ;;  %v2345_v10 = vpop.xlane.xlu0 %2344 }
 0x7ca   : > { %6360 = vpow2.f32 %v2396_v3  ;;  %v2376_v18 = vsub.f32 %v2281_v35, %v2345_v10 }
 0x7cb   : > { %v2394_v2 = vmul.f32 1.442695, %v2377_v6 }
 0x7cc   : > { %v2392_v28 = vmul.f32 1.442695, %v2376_v18 }
 0x7cd   : > { %6362 = vpow2.f32 %v2394_v2  ;;  %v2351_v13 = vpop.xlane.xlu0 %2350 }
 0x7ce   : > { %6364 = vpow2.f32 %v2392_v28  ;;  %v2379_v51 = vsub.f32 %v5844_v54, %v2351_v13 }
 0x7cf   : > { %v2359_v6 = vpop.xlane.xlu1 %2358 }
 0x7d0   : > { %v2398_v22 = vmul.f32 1.442695, %v2379_v51  ;;  %v2383_v13 = vsub.f32 %v7574_v30, %v2359_v6 }
 0x7d1   : > { %v2357_v18 = vpop.xlane.xlu0 %2356 }
 0x7d2   : > { %6366 = vpow2.f32 %v2398_v22  ;;  %v2382_v3 = vsub.f32 %v5847_v46, %v2357_v18  ;;  %v2406_v5 = vmul.f32 1.442695, %v2383_v13 }
 0x7d3   : > { %v2355_v36 = vpop.xlane.xlu1 %2354 }
 0x7d4   : > { %v7611_v55 = vpop.eup %6360  ;;  %v2404_v22 = vmul.f32 1.442695, %v2382_v3  ;;  %v2381_v35 = vsub.f32 %v7577_v23, %v2355_v36 }
 0x7d5   : > { %2428 = vadd.xlane.f32.xlu1 %v7611_v55  ;;  %v2353_v2 = vpop.xlane.xlu0 %2352 }
 0x7d6   : > { %v2380_v8 = vsub.f32 %v7572_v31, %v2353_v2  ;;  %6368 = vpow2.f32 %v2404_v22  ;;  %v2402_v51 = vmul.f32 1.442695, %v2381_v35 }
 0x7d7   : > { %v7614_v58 = vpop.eup %6362  ;;  %v2367_v54 = vpop.xlane.xlu1 %2366 }
 0x7d8   : > { %v7616_v37 = vpop.eup %6364  ;;  %2426 = vadd.xlane.f32.xlu0 %v7614_v58  ;;  %v2387_v30 = vsub.f32 %v7585_v38, %v2367_v54 }
 0x7d9   : > { %2424 = vadd.xlane.f32.xlu1 %v7616_v37  ;;  %v2365_v59 = vpop.xlane.xlu0 %2364 }
 0x7db   : > { %v2363_v56 = vpop.xlane.xlu1 %2362 }
 0x7dc   : > { %v7620_v10 = vpop.eup %6366 }
 0x7dd   : > { %2430 = vadd.xlane.f32.xlu1 %v7620_v10  ;;  %v2361_v28 = vpop.xlane.xlu0 %2360 }
 0x7de   : > { %v2384_v31 = vsub.f32 %v7583_v45, %v2361_v28  ;;  %v2385_v45 = vsub.f32 %v7588_v33, %v2363_v56 }
 0x7e0   : > { %v2408_v6 = vmul.f32 1.442695, %v2384_v31  ;;  %v7635_v36 = vpop.eup %6368  ;;  %v2410_v22 = vmul.f32 1.442695, %v2385_v45  ;;  %v2771_v31 = vsel %vm1169_vm0, %v7519_v47, 0 }
 0x7e1   : > { %v2373_v17 = vpop.xlane.xlu0 %2372 }
 0x7e2   : > { %v2390_v46 = vsub.f32 %v7592_v27, %v2373_v17 }
 0x7e4   : > { %v2420_v23 = vmul.f32 1.442695, %v2390_v46 }
 0x7e5   : > { %v2369_v2 = vpop.xlane.xlu0 %2368 }
 0x7e6   : > { %v2388_v3 = vsub.f32 %v7595_v19, %v2369_v2 }
 0x7e8   : > { %v2416_v27 = vmul.f32 1.442695, %v2388_v3 }
 0x7ee   : > { %2740 = vrot.lane.b32.xlu1 %v7082_v4, %s6651_s15  ;;  %2738 = vrot.lane.b32.xlu0 %v7058_v41, %s6651_s15  ;;  %v2400_v4 = vmul.f32 1.442695, %v2380_v8  ;;  %v2386_v41 = vsub.f32 %v7580_v34, %v2365_v59  ;;  %v7637_v34 = vpop.permute.xlu1 %2736  ;;  %v2414_v59 = vmul.f32 1.442695, %v2387_v30 }
 0x7f0   : > { %6370 = vpow2.f32 %v2400_v4  ;;  %v2412_v18 = vmul.f32 1.442695, %v2386_v41 }
 0x7f1   : > { %6372 = vpow2.f32 %v2402_v51 }
 0x7f2   : > { %6374 = vpow2.f32 %v2406_v5 }
 0x7f3   : > { %6376 = vpow2.f32 %v2412_v18 }
 0x7f4   : > { %6378 = vpow2.f32 %v2420_v23 }
 0x7f5   : > { %6380 = vpow2.f32 %v2408_v6 }
 0x7f6   : > { %6382 = vpow2.f32 %v2416_v27 }
 0x7f7   : > { %6384 = vpow2.f32 %v2414_v59 }
 0x7fa   : > { %v7641_v5 = vpop.eup %6370 }
 0x7fb   : > { %v7643_v19 = vpop.eup %6372 }
 0x7fc   : > { %v7648_v35 = vpop.eup %6374 }
 0x7fd   : > { %v7650_v56 = vpop.eup %6376 }
 0x7fe   : > { %v7655_v17 = vpop.eup %6378 }
 0x7ff   : > { %v7657_v13 = vpop.eup %6380 }
 0x800   : > { %v7661_v4 = vpop.eup %6382 }
 0x801   : > { %v7663_v51 = vpop.eup %6384 }
 0x80d   : > { %2436 = vadd.xlane.f32.xlu0 %v7635_v36 }
 0x810   : > { %v2375_v28 = vpop.xlane.xlu1 %2374 }
 0x811   : > { %v2391_v38 = vsub.f32 %v7597_v60, %v2375_v28  ;;  %2432 = vadd.xlane.f32.xlu0 %v7641_v5 }
 0x812   : > { %2434 = vadd.xlane.f32.xlu1 %v7643_v19 }
 0x813   : > { %v2422_v8 = vmul.f32 1.442695, %v2391_v38 }
 0x814   : > { %v2371_v54 = vpop.xlane.xlu1 %2370 }
 0x815   : > { %6386 = vpow2.f32 %v2422_v8  ;;  %v2389_v33 = vsub.f32 %v7599_v48, %v2371_v54  ;;  %2438 = vadd.xlane.f32.xlu0 %v7648_v35 }
 0x816   : > { %2444 = vadd.xlane.f32.xlu1 %v7650_v56  ;;  %6388 = vpow2.f32 %v2410_v22 }
 0x817   : > { %v2418_v60 = vmul.f32 1.442695, %v2389_v33 }
 0x819   : > { %2452 = vadd.xlane.f32.xlu0 %v7655_v17  ;;  %6390 = vpow2.f32 %v2418_v60 }
 0x81a   : > { %2440 = vadd.xlane.f32.xlu1 %v7657_v13 }
 0x81d   : > { %2448 = vadd.xlane.f32.xlu0 %v7661_v4 }
 0x81e   : > { %2446 = vadd.xlane.f32.xlu1 %v7663_v51 }
 0x81f   : > { %v7667_v48 = vpop.eup %6386 }
 0x820   : > { %v7669_v41 = vpop.eup %6388 }
 0x821   : > { %2454 = vadd.xlane.f32.xlu0 %v7667_v48 }
 0x822   : > { %2442 = vadd.xlane.f32.xlu1 %v7669_v41 }
 0x823   : > { %v7673_v46 = vpop.eup %6390 }
 0x826   : > { %2450 = vadd.xlane.f32.xlu1 %v7673_v46 }
 0x837   : > { %2742 = vrot.lane.b32.xlu0 %v7100_v26, %s6651_s15  ;;  %2744 = vrot.lane.b32.xlu1 %v7112_v44, %s6651_s15 }
 0x83b   : > { %2706 = vrot.lane.b32.xlu0 %v6967_v16, %s6651_s15  ;;  %2708 = vrot.lane.b32.xlu1 %v6984_v29, %s6651_s15  ;;  %v2735_v16 = vpop.permute.xlu0 %2734 }
 0x83f   : > { %2710 = vrot.lane.b32.xlu0 %v7006_v49, %s6651_s15  ;;  %2712 = vrot.lane.b32.xlu1 %v7029_v11, %s6651_s15 }
 0x843   : > { %2714 = vrot.lane.b32.xlu0 %v7053_v39, %s6651_s15  ;;  %2716 = vrot.lane.b32.xlu1 %v7077_v0, %s6651_s15 }
 0x847   : > { %2718 = vrot.lane.b32.xlu0 %v7097_v25, %s6651_s15  ;;  %2720 = vrot.lane.b32.xlu1 %v7110_v43, %s6651_s15 }
 0x84b   : > { %3051 = vrot.lane.b32.xlu0 %v7012_v52, %s6651_s15  ;;  %3053 = vrot.lane.b32.xlu1 %v7008_v50, %s6651_s15 }
 0x84f   : > { %3055 = vrot.lane.b32.xlu0 %v7036_v14, %s6651_s15 }
 0x853   : > { %3057 = vrot.lane.b32.xlu0 %v7031_v12, %s6651_s15 }
 0x862   : > { %v2429_v29 = vpop.xlane.xlu1 %2428 }
 0x865   : > { %v2427_v49 = vpop.xlane.xlu0 %2426 }
 0x866   : > { %6392 = vrcp.f32 %v2427_v49  ;;  %v2425_v11 = vpop.xlane.xlu1 %2424 }
 0x867   : > { %6394 = vrcp.f32 %v2425_v11 }
 0x868   : > { %6396 = vrcp.f32 %v2429_v29 }
 0x869   : > { %v2739_v47 = vpop.permute.xlu0 %2738 }
 0x86a   : > { %v2431_v39 = vpop.xlane.xlu1 %2430  ;;  %v2783_v2 = vsel %vm1169_vm0, %v2739_v47, 0 }
 0x86b   : > { %6398 = vrcp.f32 %v2431_v39 }
 0x870   : > { %v6393_v0 = vpop.eup %6392 }
 0x871   : > { %v6395_v52 = vpop.eup %6394  ;;  %v2473_v25 = vmul.f32 %v6393_v0, %v7614_v58  ;;  %v2774_v58 = vsel %vm1169_vm0, %v7609_v53, 0 }
 0x872   : > { %v2472_v50 = vmul.f32 %v6395_v52, %v7616_v37  ;;  %v6397_v26 = vpop.eup %6396  ;;  %v2780_v37 = vsel %vm1169_vm0, %v7637_v34, 0 }
 0x873   : > { %v2474_v12 = vmul.f32 %v6397_v26, %v7611_v55  ;;  %v2777_v55 = vsel %vm1169_vm0, %v2735_v16, 0 }
 0x874   : > { %v2488_v14 = vpack.c.bf16 %v2473_v25, %v2472_v50 }
 0x875   : > { %v6399_v43 = vpop.eup %6398 }
 0x876   : > { %v2475_v44 = vmul.f32 %v6399_v43, %v7620_v10  ;;  %5873 = vmatprep.mubr.bf16.mxu1 %v2488_v14 }
 0x878   : > { %v2489_v18 = vpack.c.bf16 %v2475_v44, %v2474_v12 }
 0x87a   : > { %5874 = vmatmul.mubr.bf16.vlgmr.msra.gmra.mrb[48].mxu1 %v2489_v18 }
 0x87b   : > { %5890 = vmatpush3.bf16.xpose.msra.mxu1 %v2771_v31 }
 0x87c   : > { %6026 = vmatprep.subr.msk.bf16.mxu1 %vm1169_vm0, %v7609_v53  ;;  %v2741_v53 = vpop.permute.xlu1 %2740 }
 0x87d   : > { %v2786_v6 = vsel %vm1169_vm0, %v2741_v53, 0 }
 0x883   : > { %5892 = vmatpush3.bf16.xpose.msra.mxu1 %v2774_v58 }
 0x884   : > { %6027 = vmatprep.subr.msk.bf16.mxu1 %vm1169_vm0, %v2735_v16 }
 0x88b   : > { %5894 = vmatpush3.bf16.xpose.msra.mxu1 %v2777_v55 }
 0x88c   : > { %6028 = vmatprep.subr.msk.bf16.mxu1 %vm1169_vm0, %v7637_v34 }
 0x893   : > { %5896 = vmatpush3.bf16.xpose.msra.mxu1 %v2780_v37 }
 0x894   : > { %6029 = vmatprep.subr.msk.bf16.mxu1 %vm1169_vm0, %v2739_v47 }
 0x89a   : > { %v2437_v10 = vpop.xlane.xlu0 %2436 }
 0x89b   : > { %5898 = vmatpush3.bf16.xpose.msra.mxu1 %v2783_v2 }
 0x89c   : > { %6030 = vmatprep.subr.msk.bf16.mxu1 %vm1169_vm0, %v2741_v53 }
 0x89e   : > { %v2433_v23 = vpop.xlane.xlu0 %2432 }
 0x89f   : > { %6400 = vrcp.f32 %v2433_v23  ;;  %v2435_v3 = vpop.xlane.xlu1 %2434 }
 0x8a0   : > { %6402 = vrcp.f32 %v2435_v3 }
 0x8a1   : > { %6404 = vrcp.f32 %v2437_v10 }
 0x8a2   : > { %v2439_v30 = vpop.xlane.xlu0 %2438 }
 0x8a3   : > { %6406 = vrcp.f32 %v2439_v30  ;;  %5900 = vmatpush3.bf16.xpose.msra.mxu1 %v2786_v6  ;;  %v2445_v34 = vpop.xlane.xlu1 %2444 }
 0x8a6   : > { %v2453_v27 = vpop.xlane.xlu0 %2452 }
 0x8a7   : > { %v2441_v59 = vpop.xlane.xlu1 %2440 }
 0x8a9   : > { %v6401_v45 = vpop.eup %6400 }
 0x8aa   : > { %v6403_v28 = vpop.eup %6402  ;;  %v2449_v38 = vpop.xlane.xlu0 %2448  ;;  %v2476_v22 = vmul.f32 %v6401_v45, %v7641_v5 }
 0x8ab   : > { %v6405_v8 = vpop.eup %6404  ;;  %v2447_v54 = vpop.xlane.xlu1 %2446  ;;  %v2477_v33 = vmul.f32 %v6403_v28, %v7643_v19 }
 0x8ac   : > { %6408 = vrcp.f32 %v2447_v54  ;;  %v2478_v49 = vmul.f32 %v6405_v8, %v7635_v36 }
 0x8ad   : > { %v6407_v60 = vpop.eup %6406  ;;  %v2490_v16 = vpack.c.bf16 %v2477_v33, %v2476_v22  ;;  %6410 = vrcp.f32 %v2441_v59 }
 0x8ae   : > { %v2455_v29 = vpop.xlane.xlu0 %2454  ;;  %v2479_v11 = vmul.f32 %v6407_v60, %v7648_v35  ;;  %6412 = vrcp.f32 %v2445_v34 }
 0x8af   : > { %5877 = vmatprep.mubr.bf16.mxu1 %v2490_v16  ;;  %v2443_v39 = vpop.xlane.xlu1 %2442 }
 0x8b0   : > { %6414 = vrcp.f32 %v2443_v39  ;;  %v2491_v0 = vpack.c.bf16 %v2479_v11, %v2478_v49 }
 0x8b1   : > { %6416 = vrcp.f32 %v2449_v38 }
 0x8b2   : > { %v2743_v5 = vpop.permute.xlu0 %2742  ;;  %5878 = vmatmul.mubr.bf16.gmra.mrb[52].mxu1 %v2491_v0 }
 0x8b3   : > { %6031 = vmatprep.subr.msk.bf16.mxu1 %vm1169_vm0, %v2743_v5  ;;  %v2451_v19 = vpop.xlane.xlu1 %2450  ;;  %v2789_v52 = vsel %vm1169_vm0, %v2743_v5, 0 }
 0x8b4   : > { %6418 = vrcp.f32 %v2451_v19  ;;  %5902 = vmatpush3.bf16.xpose.msra.mxu1 %v2789_v52 }
 0x8b5   : > { %6420 = vrcp.f32 %v2455_v29 }
 0x8b6   : > { %v2707_v25 = vpop.permute.xlu0 %2706  ;;  %v6409_v36 = vpop.eup %6408  ;;  %6422 = vrcp.f32 %v2453_v27 }
 0x8b7   : > { %v2745_v35 = vpop.permute.xlu1 %2744  ;;  %v6411_v50 = vpop.eup %6410  ;;  %v2483_v12 = vmul.f32 %v6409_v36, %v7663_v51 }
 0x8b8   : > { %6032 = vmatprep.subr.msk.bf16.mxu1 %vm1169_vm0, %v2745_v35  ;;  %v6413_v26 = vpop.eup %6412  ;;  %v2792_v18 = vsel %vm1169_vm0, %v2745_v35, 0  ;;  %v2480_v31 = vmul.f32 %v6411_v50, %v7657_v13 }
 0x8b9   : > { %v2482_v37 = vmul.f32 %v6413_v26, %v7650_v56 }
 0x8ba   : > { %v6415_v14 = vpop.eup %6414  ;;  %v2711_v43 = vpop.permute.xlu0 %2710 }
 0x8bb   : > { %v2709_v44 = vpop.permute.xlu1 %2708  ;;  %v2481_v58 = vmul.f32 %v6415_v14, %v7669_v41  ;;  %v6417_v55 = vpop.eup %6416  ;;  %v2493_v53 = vpack.c.bf16 %v2483_v12, %v2482_v37 }
 0x8bc   : > { %5904 = vmatpush3.bf16.xpose.msra.mxu1 %v2792_v18  ;;  %v2484_v51 = vmul.f32 %v6417_v55, %v7661_v4 }
 0x8bd   : > { %v2492_v47 = vpack.c.bf16 %v2481_v58, %v2480_v31 }
 0x8be   : > { %v6419_v10 = vpop.eup %6418  ;;  %v2715_v2 = vpop.permute.xlu0 %2714 }
 0x8bf   : > { %v6421_v23 = vpop.eup %6420  ;;  %5881 = vmatprep.mubr.bf16.mxu1 %v2492_v47  ;;  %v2713_v3 = vpop.permute.xlu1 %2712  ;;  %v2485_v30 = vmul.f32 %v6419_v10, %v7673_v46 }
 0x8c0   : > { %5882 = vmatmul.mubr.bf16.gmra.mrb[56].mxu1 %v2493_v53  ;;  %v6423_v6 = vpop.eup %6422  ;;  %v2487_v41 = vmul.f32 %v6421_v23, %v7667_v48 }
 0x8c1   : > { %v2494_v13 = vpack.c.bf16 %v2485_v30, %v2484_v51  ;;  %v2486_v56 = vmul.f32 %v6423_v6, %v7655_v17  ;;  %v8860_v17 = vmov 0  }
 0x8c2   : > { %v2719_v34 = vpop.permute.xlu0 %2718 }
 0x8c3   : > { %5885 = vmatprep.mubr.bf16.mxu1 %v2494_v13  ;;  %v2717_v27 = vpop.permute.xlu1 %2716  ;;  %v2495_v45 = vpack.c.bf16 %v2487_v41, %v2486_v56 }
 0x8c6   : > { %v3052_v59 = vpop.permute.xlu0 %3051 }
 0x8c7   : > { %5921 = vmatprep.subr.bf16.mxu0 %v3052_v59  ;;  %v2721_v28 = vpop.permute.xlu1 %2720 }
 0x8c8   : > { %5886 = vmatmul.mubr.bf16.gmra.mrb[60].mxu1 %v2495_v45  ;;  %5922 = vmatpush3.bf16.msra.mxu0 %v3052_v59 }
 0x8c9   : > { %5905 = vmatprep.mubr.msk.bf16.mxu1 %vm1169_vm0, %v2707_v25 }
 0x8ca   : > { %v3056_v4 = vpop.permute.xlu0 %3055 }
 0x8cb   : > { %v3054_v46 = vpop.permute.xlu1 %3053 }
 0x8cc   : > { %5923 = vmatprep.subr.bf16.mxu0 %v3054_v46 }
 0x8cd   : > { %5924 = vmatpush3.bf16.msra.mxu0 %v3054_v46 }
 0x8ce   : > { %5925 = vmatprep.subr.bf16.mxu0 %v3056_v4  ;;  %v3058_v48 = vpop.permute.xlu0 %3057 }
 0x8d0   : > { %5906 = vmatmul.mubr.msk.bf16.vlgmr.msra.gmra.mrb[64].mxu1 %vm1169_vm0, %v2709_v44 }
 0x8d1   : > { %5909 = vmatprep.mubr.msk.bf16.mxu1 %vm1169_vm0, %v2711_v43  ;;  %5926 = vmatpush3.bf16.msra.mxu0 %v3056_v4 }
 0x8d2   : > { %5927 = vmatprep.subr.bf16.mxu0 %v3058_v48 }
 0x8d5   : > { %5928 = vmatpush3.bf16.msra.mxu0 %v3058_v48 }
 0x8d8   : > { %5910 = vmatmul.mubr.msk.bf16.gmra.mrb[68].mxu1 %vm1169_vm0, %v2713_v3 }
 0x8d9   : > { %5913 = vmatprep.mubr.msk.bf16.mxu1 %vm1169_vm0, %v2715_v2 }
 0x8e0   : > { %5914 = vmatmul.mubr.msk.bf16.gmra.mrb[72].mxu1 %vm1169_vm0, %v2717_v27 }
 0x8e1   : > { %5917 = vmatprep.mubr.msk.bf16.mxu1 %vm1169_vm0, %v2719_v34 }
 0x8e8   : > { %5918 = vmatmul.mubr.msk.bf16.gmra.mrb[76].mxu1 %vm1169_vm0, %v2721_v28 }
 0x8e9   : > { %3922 = vmatprep.mubr.bf16.mxu1 %v8860_v17 }
 0x94d   : > { %v7749_v38 = vpop.f32.mrb[48].mxu1 }
 0x94e   : > { %v7751_v22 = vpop.f32.mrb[49].mxu1 }
 0x94f   : > { %v7753_v8 = vpop.f32.mrb[50].mxu1 }
 0x950   : > { %v7757_v33 = vpop.f32.mrb[51].mxu1 }
 0x951   : > { %v2625_v60 = vpack.c.bf16 %v7757_v33, %v7751_v22 }
 0x985   : > { %v7761_v16 = vpop.f32.mrb[52].mxu1 }
 0x986   : > { %v7763_v29 = vpop.f32.mrb[53].mxu1 }
 0x987   : > { %v7765_v49 = vpop.f32.mrb[54].mxu1 }
 0x988   : > { %v7769_v39 = vpop.f32.mrb[55].mxu1 }
 0x993   : > { %v7773_v5 = vpop.f32.mrb[56].mxu1 }
 0x994   : > { %v7775_v19 = vpop.f32.mrb[57].mxu1 }
 0x995   : > { %v7777_v52 = vpop.f32.mrb[58].mxu1 }
 0x996   : > { %v7781_v36 = vpop.f32.mrb[59].mxu1 }
 0x99b   : > { %v7785_v50 = vpop.f32.mrb[60].mxu1 }
 0x99c   : > { %v7787_v26 = vpop.f32.mrb[61].mxu1 }
 0x99d   : > { %v7789_v14 = vpop.f32.mrb[62].mxu1 }
 0x99e   : > { %v7793_v12 = vpop.f32.mrb[63].mxu1 }
 0x9a3   : > { %v5907_v18 = vpop.f32.mrb[64].mxu1 }
 0x9a4   : > { %2895 = vmax.xlane.f32.xlu0 %v5907_v18  ;;  %v2828_v31 = vpop.f32.mrb[65].mxu1 }
 0x9a5   : > { %v5908_v58 = vpop.f32.mrb[66].mxu1 }
 0x9a6   : > { %v2831_v55 = vpop.f32.mrb[67].mxu1 }
 0x9a7   : > { %2893 = vmax.xlane.f32.xlu1 %v2831_v55 }
 0x9a8   : > { %2891 = vmax.xlane.f32.xlu0 %v2828_v31 }
 0x9ab   : > { %v5911_v37 = vpop.f32.mrb[68].mxu1 }
 0x9ac   : > { %2897 = vmax.xlane.f32.xlu0 %v5908_v58  ;;  %v2844_v47 = vpop.f32.mrb[69].mxu1 }
 0x9ad   : > { %v5912_v10 = vpop.f32.mrb[70].mxu1 }
 0x9ae   : > { %2905 = vmax.xlane.f32.xlu1 %v5912_v10  ;;  %v2847_v2 = vpop.f32.mrb[71].mxu1 }
 0x9b0   : > { %2903 = vmax.xlane.f32.xlu0 %v5911_v37 }
 0x9b2   : > { %2901 = vmax.xlane.f32.xlu1 %v2847_v2 }
 0x9b3   : > { %v7797_v53 = vpop.f32.mrb[72].mxu1 }
 0x9b4   : > { %2899 = vmax.xlane.f32.xlu0 %v2844_v47  ;;  %v7799_v23 = vpop.f32.mrb[73].mxu1 }
 0x9b5   : > { %v7801_v3 = vpop.f32.mrb[74].mxu1 }
 0x9b6   : > { %2913 = vmax.xlane.f32.xlu1 %v7801_v3  ;;  %v7804_v51 = vpop.f32.mrb[75].mxu1 }
 0x9b8   : > { %2911 = vmax.xlane.f32.xlu0 %v7797_v53 }
 0x9ba   : > { %2909 = vmax.xlane.f32.xlu1 %v7804_v51 }
 0x9bb   : > { %v7808_v30 = vpop.f32.mrb[76].mxu1 }
 0x9bc   : > { %2907 = vmax.xlane.f32.xlu0 %v7799_v23  ;;  %v7811_v6 = vpop.f32.mrb[77].mxu1 }
 0x9bd   : > { %v7813_v13 = vpop.f32.mrb[78].mxu1 }
 0x9be   : > { %v7815_v34 = vpop.f32.mrb[79].mxu1 }
 0x9c0   : > { %2919 = vmax.xlane.f32.xlu0 %v7808_v30 }
 0x9c4   : > { %2915 = vmax.xlane.f32.xlu0 %v7811_v6 }
 0x9cb   : > { %3061 = vrot.lane.b32.xlu1 %v7055_v40, %s6651_s15 }
 0x9da   : > { %3059 = vrot.lane.b32.xlu0 %v7060_v42, %s6651_s15 }
 0x9ef   : > { %2921 = vmax.xlane.f32.xlu1 %v7813_v13 }
 0x9f3   : > { %2917 = vmax.xlane.f32.xlu1 %v7815_v34 }
 0xa31   : > { %v2896_v41 = vpop.xlane.xlu0 %2895 }
 0xa32   : > { %v2925_v27 = vsub.f32 %v5907_v18, %v2896_v41 }
 0xa34   : > { %v2943_v56 = vmul.f32 1.442695, %v2925_v27  ;;  %v2894_v45 = vpop.xlane.xlu1 %2893 }
 0xa35   : > { %v2892_v59 = vpop.xlane.xlu0 %2891  ;;  %v2924_v46 = vsub.f32 %v2831_v55, %v2894_v45 }
 0xa36   : > { %6424 = vpow2.f32 %v2943_v56  ;;  %v2923_v28 = vsub.f32 %v2828_v31, %v2892_v59 }
 0xa37   : > { %v2941_v35 = vmul.f32 1.442695, %v2924_v46 }
 0xa38   : > { %v2939_v4 = vmul.f32 1.442695, %v2923_v28 }
 0xa39   : > { %v2898_v48 = vpop.xlane.xlu0 %2897 }
 0xa3a   : > { %6426 = vpow2.f32 %v2939_v4  ;;  %v2926_v44 = vsub.f32 %v5908_v58, %v2898_v48 }
 0xa3b   : > { %v2906_v40 = vpop.xlane.xlu1 %2905 }
 0xa3c   : > { %v2945_v43 = vmul.f32 1.442695, %v2926_v44  ;;  %v2930_v42 = vsub.f32 %v5912_v10, %v2906_v40 }
 0xa3d   : > { %v2904_v25 = vpop.xlane.xlu0 %2903 }
 0xa3e   : > { %6428 = vpow2.f32 %v2945_v43  ;;  %v2929_v0 = vsub.f32 %v5911_v37, %v2904_v25  ;;  %v2953_v41 = vmul.f32 1.442695, %v2930_v42 }
 0xa3f   : > { %v2902_v11 = vpop.xlane.xlu1 %2901  ;;  %6430 = vpow2.f32 %v2941_v35 }
 0xa40   : > { %v7825_v54 = vpop.eup %6424  ;;  %v2951_v18 = vmul.f32 1.442695, %v2929_v0  ;;  %v2928_v31 = vsub.f32 %v2847_v2, %v2902_v11 }
 0xa41   : > { %v2900_v27 = vpop.xlane.xlu0 %2899  ;;  %2975 = vadd.xlane.f32.xlu1 %v7825_v54 }
 0xa42   : > { %6432 = vpow2.f32 %v2951_v18  ;;  %v2927_v55 = vsub.f32 %v2844_v47, %v2900_v27  ;;  %v2949_v25 = vmul.f32 1.442695, %v2928_v31 }
 0xa43   : > { %6434 = vpow2.f32 %v2953_v41  ;;  %v2914_v37 = vpop.xlane.xlu1 %2913 }
 0xa44   : > { %v7828_v58 = vpop.eup %6426  ;;  %v2947_v44 = vmul.f32 1.442695, %v2927_v55  ;;  %v2934_v40 = vsub.f32 %v7801_v3, %v2914_v37 }
 0xa45   : > { %v2912_v10 = vpop.xlane.xlu0 %2911  ;;  %2971 = vadd.xlane.f32.xlu1 %v7828_v58 }
 0xa46   : > { %6436 = vpow2.f32 %v2947_v44  ;;  %v2961_v41 = vmul.f32 1.442695, %v2934_v40  ;;  %v2933_v27 = vsub.f32 %v7797_v53, %v2912_v10 }
 0xa47   : > { %6438 = vpow2.f32 %v2949_v25  ;;  %v2910_v59 = vpop.xlane.xlu1 %2909 }
 0xa48   : > { %v7831_v43 = vpop.eup %6428  ;;  %v2932_v42 = vsub.f32 %v7804_v51, %v2910_v59  ;;  %v2959_v44 = vmul.f32 1.442695, %v2933_v27 }
 0xa49   : > { %v2908_v0 = vpop.xlane.xlu0 %2907  ;;  %2977 = vadd.xlane.f32.xlu1 %v7831_v43  ;;  %v7834_v35 = vpop.eup %6430 }
 0xa4a   : > { %v2931_v48 = vsub.f32 %v7799_v23, %v2908_v0  ;;  %v2957_v31 = vmul.f32 1.442695, %v2932_v42 }
 0xa4b   : > { %v3062_v46 = vpop.permute.xlu1 %3061 }
 0xa4c   : > { %v7836_v11 = vpop.eup %6432  ;;  %v2955_v18 = vmul.f32 1.442695, %v2931_v48  ;;  %v8863_v48 = vpack.c.bf16 %v7753_v8, %v7749_v38 }
 0xa4d   : > { %v2920_v47 = vpop.xlane.xlu0 %2919  ;;  %2983 = vadd.xlane.f32.xlu0 %v7836_v11  ;;  %2973 = vadd.xlane.f32.xlu1 %v7834_v35  ;;  %v7840_v2 = vpop.eup %6434 }
 0xa4e   : > { %6440 = vpow2.f32 %v2955_v18  ;;  %v2937_v3 = vsub.f32 %v7808_v30, %v2920_v47 }
 0xa4f   : > { %6442 = vpow2.f32 %v2961_v41 }
 0xa50   : > { %v7842_v56 = vpop.eup %6436  ;;  %6444 = vpow2.f32 %v2957_v31  ;;  %v2967_v10 = vmul.f32 1.442695, %v2937_v3 }
 0xa51   : > { %v2916_v45 = vpop.xlane.xlu0 %2915  ;;  %2979 = vadd.xlane.f32.xlu1 %v7842_v56  ;;  %2985 = vadd.xlane.f32.xlu0 %v7840_v2  ;;  %v7846_v28 = vpop.eup %6438  ;;  %6446 = vpow2.f32 %v2959_v44 }
 0xa55   : > { %v3060_v4 = vpop.permute.xlu0 %3059  ;;  %2981 = vadd.xlane.f32.xlu0 %v7846_v28 }
 0xa56   : > { %5929 = vmatprep.subr.bf16.mxu0 %v3060_v4 }
 0xa57   : > { %5930 = vmatpush3.bf16.msra.mxu0 %v3060_v4  ;;  %v8861_v4 = vpack.c.bf16 %v7528_v9, %v7524_v61 }
 0xa58   : > { %5931 = vmatprep.subr.bf16.mxu0 %v3062_v46  ;;  %v7861_v37 = vpop.eup %6440 }
 0xa59   : > { %v7864_v59 = vpop.eup %6442 }
 0xa5b   : > { %5932 = vmatpush3.bf16.msra.mxu0 %v3062_v46  ;;  %v8862_v46 = vpack.c.bf16 %v7532_v62, %v7526_v57 }
 0xa62   : > { %3065 = vrot.lane.b32.xlu1 %v7079_v1, %s6651_s15  ;;  %v2935_v1 = vsub.f32 %v7811_v6, %v2916_v45  ;;  %v7866_v6 = vpop.eup %6444 }
 0xa63   : > { %v7870_v30 = vpop.eup %6446 }
 0xa64   : > { %v2963_v51 = vmul.f32 1.442695, %v2935_v1 }
 0xa6b   : > { %3063 = vrot.lane.b32.xlu0 %v7084_v7, %s6651_s15 }
 0xa7c   : > { %v2922_v55 = vpop.xlane.xlu1 %2921 }
 0xa7d   : > { %v2938_v7 = vsub.f32 %v7813_v13, %v2922_v55 }
 0xa7f   : > { %v2969_v53 = vmul.f32 1.442695, %v2938_v7 }
 0xa80   : > { %v2918_v25 = vpop.xlane.xlu1 %2917 }
 0xa81   : > { %v2936_v23 = vsub.f32 %v7815_v34, %v2918_v25 }
 0xa83   : > { %v2965_v0 = vmul.f32 1.442695, %v2936_v23 }
 0xa85   : > { %6448 = vpow2.f32 %v2965_v0 }
 0xa86   : > { %2987 = vadd.xlane.f32.xlu1 %v7861_v37  ;;  %6450 = vpow2.f32 %v2963_v51 }
 0xa87   : > { %6452 = vpow2.f32 %v2969_v53 }
 0xa88   : > { %6454 = vpow2.f32 %v2967_v10 }
 0xa8a   : > { %2993 = vadd.xlane.f32.xlu1 %v7864_v59  ;;  %2989 = vadd.xlane.f32.xlu0 %v7866_v6 }
 0xa8e   : > { %2991 = vadd.xlane.f32.xlu0 %v7870_v30 }
 0xa8f   : > { %v7873_v13 = vpop.eup %6448 }
 0xa90   : > { %2997 = vadd.xlane.f32.xlu1 %v7873_v13  ;;  %v7876_v34 = vpop.eup %6450 }
 0xa91   : > { %v7879_v47 = vpop.eup %6452 }
 0xa92   : > { %2995 = vadd.xlane.f32.xlu0 %v7876_v34  ;;  %v7882_v45 = vpop.eup %6454 }
 0xa94   : > { %3001 = vadd.xlane.f32.xlu1 %v7879_v47 }
 0xa96   : > { %2999 = vadd.xlane.f32.xlu0 %v7882_v45 }
 0xaa5   : > { %2096 = vrot.lane.b32.xlu1 %v8861_v4, %s6651_s15 }
 0xaa9   : > { %2641 = vrot.lane.b32.xlu1 %v2625_v60, %s6650_s2 }
 0xaac   : > { %2094 = vrot.lane.b32.xlu0 %v8862_v46, %s6651_s15 }
 0xaad   : > { %2643 = vrot.lane.b32.xlu1 %v8863_v48, %s6650_s2 }
 0xace   : > { %v2976_v40 = vpop.xlane.xlu1 %2975 }
 0xad2   : > { %v2972_v42 = vpop.xlane.xlu1 %2971 }
 0xad3   : > { %6456 = vrcp.f32 %v2972_v42 }
 0xad6   : > { %v2978_v18 = vpop.xlane.xlu1 %2977 }
 0xad7   : > { %6458 = vrcp.f32 %v2978_v18 }
 0xada   : > { %v2984_v61 = vpop.xlane.xlu0 %2983  ;;  %v2974_v9 = vpop.xlane.xlu1 %2973 }
 0xadb   : > { %6460 = vrcp.f32 %v2974_v9 }
 0xadc   : > { %6462 = vrcp.f32 %v2976_v40 }
 0xadd   : > { %v6457_v57 = vpop.eup %6456 }
 0xade   : > { %v2986_v22 = vpop.xlane.xlu0 %2985  ;;  %v2980_v33 = vpop.xlane.xlu1 %2979  ;;  %v3019_v8 = vmul.f32 %v6457_v57, %v7828_v58 }
 0xadf   : > { %6464 = vrcp.f32 %v2980_v33 }
 0xae1   : > { %v6459_v62 = vpop.eup %6458 }
 0xae2   : > { %v2982_v60 = vpop.xlane.xlu0 %2981  ;;  %v3066_v55 = vpop.permute.xlu1 %3065  ;;  %v3022_v44 = vmul.f32 %v6459_v62, %v7831_v43 }
 0xae3   : > { %6466 = vrcp.f32 %v2982_v60 }
 0xae4   : > { %6468 = vrcp.f32 %v2986_v22 }
 0xae5   : > { %v6461_v41 = vpop.eup %6460  ;;  %6470 = vrcp.f32 %v2984_v61 }
 0xae6   : > { %v3064_v38 = vpop.permute.xlu0 %3063  ;;  %v3020_v27 = vmul.f32 %v6461_v41, %v7834_v35  ;;  %v6463_v31 = vpop.eup %6462 }
 0xae7   : > { %5933 = vmatprep.subr.bf16.mxu0 %v3064_v38  ;;  %v3021_v7 = vmul.f32 %v6463_v31, %v7825_v54 }
 0xae8   : > { %5934 = vmatpush3.bf16.msra.mxu0 %v3064_v38  ;;  %v3035_v1 = vpack.c.bf16 %v3020_v27, %v3019_v8 }
 0xae9   : > { %5935 = vmatprep.subr.bf16.mxu0 %v3066_v55  ;;  %v6465_v25 = vpop.eup %6464  ;;  %v3036_v3 = vpack.c.bf16 %v3022_v44, %v3021_v7 }
 0xaea   : > { %5937 = vmatprep.mubr.bf16.mxu0 %v3035_v1  ;;  %v3023_v0 = vmul.f32 %v6465_v25, %v7842_v56 }
 0xaec   : > { %5936 = vmatpush3.bf16.msra.mxu0 %v3066_v55 }
 0xaed   : > { %v6467_v23 = vpop.eup %6466 }
 0xaee   : > { %v6469_v51 = vpop.eup %6468  ;;  %v3024_v58 = vmul.f32 %v6467_v23, %v7846_v28 }
 0xaef   : > { %5938 = vmatmul.mubr.bf16.vlgmr.msra.gmra.mrb[80].mxu0 %v3036_v3  ;;  %v6471_v35 = vpop.eup %6470  ;;  %v3026_v10 = vmul.f32 %v6469_v51, %v7840_v2  ;;  %v6145_v3 = vld [vmem:[%s6819_s18 + $0x8] sm:$0xff]   ;;  %v6147_v51 = vld [vmem:[%s6819_s18 + $0x18] sm:$0xff]  }
 0xaf0   : > { %v3037_v53 = vpack.c.bf16 %v3024_v58, %v3023_v0  ;;  %v3025_v43 = vmul.f32 %v6471_v35, %v7836_v11  ;;  %v6148_v0 = vld [vmem:[%s6819_s18 + $0x20] sm:$0xff]   ;;  %v6151_v58 = vld [vmem:[%s6819_s18 + $0x38] sm:$0xff]  }
 0xaf2   : > { %5941 = vmatprep.mubr.bf16.mxu0 %v3037_v53  ;;  %v3038_v4 = vpack.c.bf16 %v3026_v10, %v3025_v43 }
 0xaf7   : > { %5942 = vmatmul.mubr.bf16.gmra.mrb[84].mxu0 %v3038_v4 }
 0xb13   : > { %v2988_v54 = vpop.xlane.xlu1 %2987 }
 0xb14   : > { %6472 = vrcp.f32 %v2988_v54 }
 0xb17   : > { %v2990_v46 = vpop.xlane.xlu0 %2989  ;;  %v2994_v48 = vpop.xlane.xlu1 %2993 }
 0xb18   : > { %6474 = vrcp.f32 %v2990_v46 }
 0xb19   : > { %6476 = vrcp.f32 %v2994_v48  ;;  %v8864_v48 = vpack.c.bf16 %v7540_v63, %v7536_v24  ;;  %v8867_v24 = vpack.c.bf16 %v7769_v39, %v7763_v29  ;;  %v8869_v63 = vld [vmem:[#allocation24_spill] sm:$0xff]  ;;  %v8873_v29 = vpack.c.bf16 %v7781_v36, %v7775_v19  ;;  %v8878_v36 = vld [vmem:[#allocation26_spill] sm:$0xff] }
 0xb1a   : > { %v8877_v19 = vld [vmem:[#allocation28_spill] sm:$0xff] }
 0xb1b   : > { %v2992_v40 = vpop.xlane.xlu0 %2991 }
 0xb1c   : > { %6478 = vrcp.f32 %v2992_v40 }
 0xb1d   : > { %v2998_v56 = vpop.xlane.xlu1 %2997 }
 0xb1e   : > { %6480 = vrcp.f32 %v2998_v56  ;;  %v6473_v42 = vpop.eup %6472  ;;  %v8865_v56 = vpack.c.bf16 %v7544_v20, %v7538_v21  ;;  %v8868_v21 = vpack.c.bf16 %v7552_v32, %v7548_v15  ;;  %v8870_v20 = vld [vmem:[#allocation23_spill] sm:$0xff] }
 0xb1f   : > { %v2996_v28 = vpop.xlane.xlu0 %2995  ;;  %v3027_v11 = vmul.f32 %v6473_v42, %v7861_v37 }
 0xb20   : > { %6482 = vrcp.f32 %v2996_v28 }
 0xb21   : > { %v3002_v18 = vpop.xlane.xlu1 %3001 }
 0xb22   : > { %v6475_v2 = vpop.eup %6474  ;;  %6484 = vrcp.f32 %v3002_v18 }
 0xb23   : > { %v3000_v61 = vpop.xlane.xlu0 %2999  ;;  %v3028_v9 = vmul.f32 %v6475_v2, %v7866_v6  ;;  %v6477_v22 = vpop.eup %6476 }
 0xb24   : > { %6486 = vrcp.f32 %v3000_v61  ;;  %v3030_v38 = vmul.f32 %v6477_v22, %v7864_v59  ;;  %v8866_v61 = vpack.c.bf16 %v7765_v49, %v7761_v16  ;;  %v8872_v16 = vpack.c.bf16 %v7777_v52, %v7773_v5  ;;  %v8875_v5 = vld [vmem:[#allocation25_spill] sm:$0xff] }
 0xb25   : > { %v2097_v33 = vpop.permute.xlu1 %2096  ;;  %v3039_v60 = vpack.c.bf16 %v3028_v9, %v3027_v11  ;;  %v8871_v11 = vpack.c.bf16 %v8869_v63, %v8870_v20  ;;  %v3399_v20 = vld [vmem:[%s6867_s24 + $0x10] sm:$0xff] }
 0xb26   : > { %v6479_v57 = vpop.eup %6478  ;;  %2120 = vst.msk [vmem:[#allocation3 + $0x8] sm:$0xff] %vm2118_vm1, %v2097_v33 }
 0xb27   : > { %v2095_v62 = vpop.permute.xlu0 %2094  ;;  %5945 = vmatprep.mubr.bf16.mxu0 %v3039_v60  ;;  %v3029_v41 = vmul.f32 %v6479_v57, %v7870_v30  ;;  %v8874_v60 = vld [vmem:[#allocation27_spill] sm:$0xff] }
 0xb28   : > { %v6481_v8 = vpop.eup %6480  ;;  %2119 = vst.msk [vmem:[#allocation3] sm:$0xff] %vm2118_vm1, %v2095_v62  ;;  %v8876_v52 = vpack.c.bf16 %v8874_v60, %v8875_v5  ;;  %v8879_v62 = vpack.c.bf16 %v8877_v19, %v8878_v36  ;;  %v3402_v5 = vld [vmem:[%s6867_s24 + $0x28] sm:$0xff]  ;;  %v3403_v36 = vld [vmem:[%s6867_s24 + $0x30] sm:$0xff] }
 0xb29   : > { %v2642_v37 = vpop.permute.xlu1 %2641  ;;  %v3040_v27 = vpack.c.bf16 %v3030_v38, %v3029_v41  ;;  %v3032_v55 = vmul.f32 %v6481_v8, %v7873_v13  ;;  %v6146_v13 = vld [vmem:[%s6819_s18 + $0x10] sm:$0xff]  }
 0xb2a   : > { %v6483_v6 = vpop.eup %6482  ;;  %2666 = vst.msk [vmem:[#allocation3] sm:$0xff] %vm2665_vm2, %v2642_v37 }
 0xb2b   : > { %5946 = vmatmul.mubr.bf16.gmra.mrb[88].mxu0 %v3040_v27  ;;  %v3031_v31 = vmul.f32 %v6483_v6, %v7876_v34  ;;  %v6144_v34 = vld [vmem:[%s6819_s18] sm:$0xff]   ;;  %v8880_v27 = vpack.c.bf16 %v7789_v14, %v7785_v50  ;;  %v8881_v6 = vpack.c.bf16 %v7793_v12, %v7787_v26 }
 0xb2c   : > { %v6485_v44 = vpop.eup %6484  ;;  %5953 = vmatprep.subr.bf16.mxu0 %v6144_v34 }
 0xb2d   : > { %v2644_v30 = vpop.permute.xlu1 %2643  ;;  %v3041_v1 = vpack.c.bf16 %v3032_v55, %v3031_v31  ;;  %v3034_v7 = vmul.f32 %v6485_v44, %v7879_v47  ;;  %5954 = vmatpush3.bf16.msra.mxu0 %v6144_v34  ;;  %v6149_v47 = vld [vmem:[%s6819_s18 + $0x28] sm:$0xff]  }
 0xb2e   : > { %v6487_v59 = vpop.eup %6486  ;;  %2667 = vst.msk [vmem:[#allocation3 + $0x8] sm:$0xff] %vm2665_vm2, %v2644_v30  ;;  %5955 = vmatprep.subr.bf16.mxu0 %v6145_v3 }
 0xb2f   : > { %5949 = vmatprep.mubr.bf16.mxu0 %v3041_v1  ;;  %v3033_v25 = vmul.f32 %v6487_v59, %v7882_v45  ;;  %v6150_v45 = vld [vmem:[%s6819_s18 + $0x30] sm:$0xff]  }
 0xb31   : > { %v3042_v23 = vpack.c.bf16 %v3034_v7, %v3033_v25  ;;  %5956 = vmatpush3.bf16.msra.mxu0 %v6145_v3 }
 0xb32   : > { %5957 = vmatprep.subr.bf16.mxu0 %v6146_v13 }
 0xb33   : > { %5950 = vmatmul.mubr.bf16.gmra.mrb[92].mxu0 %v3042_v23 }
 0xb35   : > { %5958 = vmatpush3.bf16.msra.mxu0 %v6146_v13 }
 0xb36   : > { %5959 = vmatprep.subr.bf16.mxu0 %v6147_v51 }
 0xb39   : > { %5960 = vmatpush3.bf16.msra.mxu0 %v6147_v51 }
 0xb3a   : > { %5961 = vmatprep.subr.bf16.mxu0 %v6148_v0 }
 0xb3d   : > { %5962 = vmatpush3.bf16.msra.mxu0 %v6148_v0 }
 0xb3e   : > { %5963 = vmatprep.subr.bf16.mxu0 %v6149_v47 }
 0xb41   : > { %5964 = vmatpush3.bf16.msra.mxu0 %v6149_v47 }
 0xb42   : > { %5965 = vmatprep.subr.bf16.mxu0 %v6150_v45 }
 0xb45   : > { %5966 = vmatpush3.bf16.msra.mxu0 %v6150_v45 }
 0xb46   : > { %5967 = vmatprep.subr.bf16.mxu0 %v6151_v58 }
 0xb49   : > { %5968 = vmatpush3.bf16.msra.mxu0 %v6151_v58 }
 0xbc2   : > { %v5939_v35 = vpop.f32.mrb[80].mxu0 }
 0xbc3   : > { %v3109_v53 = vpop.f32.mrb[81].mxu0 }
 0xbc4   : > { %v5940_v10 = vpop.f32.mrb[82].mxu0 }
 0xbc5   : > { %v3173_v43 = vpack.c.bf16 %v5940_v10, %v5939_v35  ;;  %v3112_v4 = vpop.f32.mrb[83].mxu0 }
 0xbc6   : > { %v3172_v54 = vpack.c.bf16 %v3112_v4, %v3109_v53 }
 0xbc7   : > { %3190 = vrot.lane.b32.xlu1 %v3173_v43, %s6649_s1 }
 0xbc8   : > { %3188 = vrot.lane.b32.xlu0 %v3172_v54, %s6649_s1 }
 0xbca   : > { %v5943_v46 = vpop.f32.mrb[84].mxu0 }
 0xbcb   : > { %2100 = vrot.lane.b32.xlu1 %v8864_v48, %s6651_s15  ;;  %v3125_v40 = vpop.f32.mrb[85].mxu0  ;;  %v8011_v48 = vld [vmem:[%s8882_s22] ss:$0 sm:$0xff] }
 0xbcc   : > { %2098 = vrot.lane.b32.xlu0 %v8865_v56, %s6651_s15  ;;  %v5944_v28 = vpop.f32.mrb[86].mxu0 }
 0xbcd   : > { %v3175_v42 = vpack.c.bf16 %v5944_v28, %v5943_v46  ;;  %v3128_v18 = vpop.f32.mrb[87].mxu0  ;;  %v3397_v28 = vld [vmem:[%s6867_s24] sm:$0xff] }
 0xbce   : > { %v3174_v2 = vpack.c.bf16 %v3128_v18, %v3125_v40 }
 0xbcf   : > { %2647 = vrot.lane.b32.xlu1 %v8866_v61, %s6650_s2  ;;  %v3398_v61 = vld [vmem:[%s6867_s24 + $0x8] sm:$0xff] }
 0xbd0   : > { %2645 = vrot.lane.b32.xlu0 %v8867_v24, %s6650_s2 }
 0xbd3   : > { %3194 = vrot.lane.b32.xlu1 %v3175_v42, %s6649_s1 }
 0xbd4   : > { %3192 = vrot.lane.b32.xlu0 %v3174_v2, %s6649_s1 }
 0xbd7   : > { %2104 = vrot.lane.b32.xlu1 %v8868_v21, %s6651_s15 }
 0xbd8   : > { %2102 = vrot.lane.b32.xlu0 %v8871_v11, %s6651_s15 }
 0xbdb   : > { %2651 = vrot.lane.b32.xlu1 %v8872_v16, %s6650_s2 }
 0xbdc   : > { %2649 = vrot.lane.b32.xlu0 %v8873_v29, %s6650_s2 }
 0xbfe   : > { %v5947_v49 = vpop.f32.mrb[88].mxu0 }
 0xbff   : > { %v3141_v39 = vpop.f32.mrb[89].mxu0 }
 0xc00   : > { %v5948_v9 = vpop.f32.mrb[90].mxu0 }
 0xc01   : > { %v3177_v15 = vpack.c.bf16 %v5948_v9, %v5947_v49  ;;  %v3144_v32 = vpop.f32.mrb[91].mxu0  ;;  %v3400_v49 = vld [vmem:[%s6867_s24 + $0x18] sm:$0xff] }
 0xc02   : > { %v3176_v22 = vpack.c.bf16 %v3144_v32, %v3141_v39  ;;  %v3401_v32 = vld [vmem:[%s6867_s24 + $0x20] sm:$0xff] }
 0xc03   : > { %3198 = vrot.lane.b32.xlu1 %v3177_v15, %s6649_s1 }
 0xc04   : > { %3196 = vrot.lane.b32.xlu0 %v3176_v22, %s6649_s1 }
 0xc06   : > { %v5951_v33 = vpop.f32.mrb[92].mxu0 }
 0xc07   : > { %2108 = vrot.lane.b32.xlu1 %v8876_v52, %s6651_s15  ;;  %v3157_v57 = vpop.f32.mrb[93].mxu0 }
 0xc08   : > { %2106 = vrot.lane.b32.xlu0 %v8879_v62, %s6651_s15  ;;  %v5952_v41 = vpop.f32.mrb[94].mxu0 }
 0xc09   : > { %v3179_v38 = vpack.c.bf16 %v5952_v41, %v5951_v33  ;;  %v3160_v8 = vpop.f32.mrb[95].mxu0 }
 0xc0a   : > { %v3178_v37 = vpack.c.bf16 %v3160_v8, %v3157_v57 }
 0xc0b   : > { %2655 = vrot.lane.b32.xlu1 %v8880_v27, %s6650_s2 }
 0xc0c   : > { %2653 = vrot.lane.b32.xlu0 %v8881_v6, %s6650_s2 }
 0xc0f   : > { %3202 = vrot.lane.b32.xlu1 %v3179_v38, %s6649_s1  ;;  %v3404_v38 = vld [vmem:[%s6867_s24 + $0x38] sm:$0xff] }
 0xc10   : > { %3200 = vrot.lane.b32.xlu0 %v3178_v37, %s6649_s1  ;;  %s5017_s1 = sshll.u32 %s6867_s24, 4  ;;  %s8722_s1 = int_to_ptr.vmem [resolvable:$true] %s5017_s1 }
 0xc11   : > { %s6552_s13 = scalar_lea.vmem %s8722_s1, 2048 }
 0xc12   : > { %p6553_p1 = scmp.ne.s32.totalorder %s8722_s1, %s6552_s13 }
 0xc14   : > { %p6554_p2 = pnand %p6553_p1, %p6774_p3 }
 0xc16   : > { %p6555_p4 = pneg %p6554_p2 }
 0xc39   : > { %v3191_v31 = vpop.permute.xlu1 %3190 }
 0xc3a   : > { %3214 = vst.msk [vmem:[#allocation3 + $0x8] sm:$0xff] %vm3212_vm3, %v3191_v31  ;;  %v3189_v55 = vpop.permute.xlu0 %3188  ;;  %v3405_v31 = vld [vmem:[%s6867_s24 + $0x40] sm:$0xff] }
 0xc3b   : > { %3213 = vst.msk [vmem:[#allocation3] sm:$0xff] %vm3212_vm3, %v3189_v55 }
 0xc3d   : > { %v2101_v44 = vpop.permute.xlu1 %2100 }
 0xc3e   : > { %2122 = vst.msk [vmem:[#allocation3 + $0x18] sm:$0xff] %vm2118_vm1, %v2101_v44  ;;  %v2099_v50 = vpop.permute.xlu0 %2098 }
 0xc3f   : > { %2121 = vst.msk [vmem:[#allocation3 + $0x10] sm:$0xff] %vm2118_vm1, %v2099_v50 }
 0xc41   : > { %v2648_v14 = vpop.permute.xlu1 %2647  ;;  %v3222_v30 = vld [vmem:[#allocation3 + $0x8] sm:$0xff] }
 0xc42   : > { %2669 = vst.msk [vmem:[#allocation3 + $0x18] sm:$0xff] %vm2665_vm2, %v2648_v14  ;;  %v2646_v26 = vpop.permute.xlu0 %2645  ;;  %v3221_v12 = vld [vmem:[#allocation3] sm:$0xff]  ;;  %v3406_v14 = vld [vmem:[%s6867_s24 + $0x48] sm:$0xff] }
 0xc43   : > { %2668 = vst.msk [vmem:[#allocation3 + $0x10] sm:$0xff] %vm2665_vm2, %v2646_v26  ;;  %5969 = vmatprep.mubr.bf16.mxu0 %v3221_v12 }
 0xc44   : > { %5970 = vmatmul.mubr.bf16.vlgmr.msra.gmra.mrb[96].mxu0 %v3222_v30 }
 0xc45   : > { %v3195_v1 = vpop.permute.xlu1 %3194 }
 0xc46   : > { %3216 = vst.msk [vmem:[#allocation3 + $0x18] sm:$0xff] %vm3212_vm3, %v3195_v1  ;;  %v3193_v59 = vpop.permute.xlu0 %3192  ;;  %v3407_v1 = vld [vmem:[%s6867_s24 + $0x50] sm:$0xff] }
 0xc47   : > { %3215 = vst.msk [vmem:[#allocation3 + $0x10] sm:$0xff] %vm3212_vm3, %v3193_v59 }
 0xc49   : > { %v2105_v25 = vpop.permute.xlu1 %2104 }
 0xc4a   : > { %2124 = vst.msk [vmem:[#allocation3 + $0x28] sm:$0xff] %vm2118_vm1, %v2105_v25  ;;  %v2103_v7 = vpop.permute.xlu0 %2102 }
 0xc4b   : > { %2123 = vst.msk [vmem:[#allocation3 + $0x20] sm:$0xff] %vm2118_vm1, %v2103_v7  ;;  %v3408_v7 = vld [vmem:[%s6867_s24 + $0x58] sm:$0xff] }
 0xc4d   : > { %v2652_v23 = vpop.permute.xlu1 %2651  ;;  %v3224_v13 = vld [vmem:[#allocation3 + $0x18] sm:$0xff] }
 0xc4e   : > { %2671 = vst.msk [vmem:[#allocation3 + $0x28] sm:$0xff] %vm2665_vm2, %v2652_v23  ;;  %v2650_v34 = vpop.permute.xlu0 %2649  ;;  %v3223_v3 = vld [vmem:[#allocation3 + $0x10] sm:$0xff] }
 0xc4f   : > { %2670 = vst.msk [vmem:[#allocation3 + $0x20] sm:$0xff] %vm2665_vm2, %v2650_v34  ;;  %5973 = vmatprep.mubr.bf16.mxu0 %v3223_v3 }
 0xc50   : > { %5974 = vmatmul.mubr.bf16.gmra.mrb[100].mxu0 %v3224_v13 }
 0xc75   : > { %v3199_v51 = vpop.permute.xlu1 %3198 }
 0xc76   : > { %3218 = vst.msk [vmem:[#allocation3 + $0x28] sm:$0xff] %vm3212_vm3, %v3199_v51  ;;  %v3197_v0 = vpop.permute.xlu0 %3196  ;;  %v3409_v51 = vld [vmem:[%s6867_s24 + $0x60] sm:$0xff] }
 0xc77   : > { %3217 = vst.msk [vmem:[#allocation3 + $0x20] sm:$0xff] %vm3212_vm3, %v3197_v0 }
 0xc79   : > { %v2109_v47 = vpop.permute.xlu1 %2108 }
 0xc7a   : > { %2126 = vst.msk [vmem:[#allocation3 + $0x38] sm:$0xff] %vm2118_vm1, %v2109_v47  ;;  %v2107_v45 = vpop.permute.xlu0 %2106 }
 0xc7b   : > { %2125 = vst.msk [vmem:[#allocation3 + $0x30] sm:$0xff] %vm2118_vm1, %v2107_v45 }
 0xc7d   : > { %v2656_v58 = vpop.permute.xlu1 %2655  ;;  %v3226_v10 = vld [vmem:[#allocation3 + $0x28] sm:$0xff] }
 0xc7e   : > { %2673 = vst.msk [vmem:[#allocation3 + $0x38] sm:$0xff] %vm2665_vm2, %v2656_v58  ;;  %v2654_v35 = vpop.permute.xlu0 %2653  ;;  %v3225_v53 = vld [vmem:[#allocation3 + $0x20] sm:$0xff]  ;;  %v3410_v58 = vld [vmem:[%s6867_s24 + $0x68] sm:$0xff] }
 0xc7f   : > { %2672 = vst.msk [vmem:[#allocation3 + $0x30] sm:$0xff] %vm2665_vm2, %v2654_v35  ;;  %5977 = vmatprep.mubr.bf16.mxu0 %v3225_v53 }
 0xc80   : > { %5978 = vmatmul.mubr.bf16.gmra.mrb[104].mxu0 %v3226_v10 }
 0xc81   : > { %v3203_v43 = vpop.permute.xlu1 %3202 }
 0xc82   : > { %3220 = vst.msk [vmem:[#allocation3 + $0x38] sm:$0xff] %vm3212_vm3, %v3203_v43  ;;  %v3201_v4 = vpop.permute.xlu0 %3200  ;;  %v3411_v43 = vld [vmem:[%s6867_s24 + $0x70] sm:$0xff] }
 0xc83   : > { %3219 = vst.msk [vmem:[#allocation3 + $0x30] sm:$0xff] %vm3212_vm3, %v3201_v4 }
 0xc89   : > { %v3228_v46 = vld [vmem:[#allocation3 + $0x38] sm:$0xff] }
 0xc8a   : > { %v3227_v54 = vld [vmem:[#allocation3 + $0x30] sm:$0xff] }
 0xc8b   : > { %5981 = vmatprep.mubr.bf16.mxu0 %v3227_v54 }
 0xc8c   : > { %5982 = vmatmul.mubr.bf16.gmra.mrb[108].mxu0 %v3228_v46  ;;  %v3412_v46 = vld [vmem:[%s6867_s24 + $0x78] sm:$0xff] }
 0xc8d   : > { %4035 = vmatprep.mubr.bf16.mxu0 %v8860_v17 }
 0xd17   : > { %v5971_v40 = vpop.f32.mrb[96].mxu0 }
 0xd18   : > { %v3334_v56 = vpop.f32.mrb[97].mxu0  ;;  %v3343_v24 = vadd.f32 %v5971_v40, %v8011_v48 }
 0xd19   : > { %v3335_v42 = vadd.f32 %v8011_v48, %v3334_v56  ;;  %v5972_v18 = vpop.f32.mrb[98].mxu0 }
 0xd1a   : > { %v3337_v2 = vpop.f32.mrb[99].mxu0  ;;  %v8024_v16 = vadd.f32 %v3399_v20, %v3343_v24  ;;  %v3346_v29 = vadd.f32 %v5972_v18, %v8011_v48  ;;  %v6157_v18 = vld [vmem:[%s6843_s26 + $0xc] ss:$16 sps:$4 sm:$0xff]   ;;  %v6158_v24 = vld [vmem:[%s6843_s26 + $0x20] ss:$16 sps:$4 sm:$0xff]  }
 0xd1b   : > { %v8017_v21 = vadd.f32 %v3397_v28, %v3335_v42  ;;  %v3338_v63 = vadd.f32 %v8011_v48, %v3337_v2  ;;  %v6152_v28 = vld [vmem:[%s6843_s26] ss:$16 sps:$4 sm:$0xff]   ;;  %v6154_v42 = vld [vmem:[%s6843_s26 + $0x4] ss:$16 sps:$4 sm:$0xff]   ;;  %4003 = vmatprep.subr.bf16.mxu0 %v6157_v18 }
 0xd1c   : > { %v8030_v39 = vadd.f32 %v3400_v49, %v3346_v29  ;;  %v6160_v2 = vld [vmem:[%s6843_s26 + $0x24] ss:$16 sps:$4 sm:$0xff]   ;;  %3890 = vmatprep.subr.bf16.mxu1 %v6154_v42  ;;  %v6188_v18 = vld [vmem:[%s6843_s26 + $0xc0] ss:$16 sps:$4 sm:$0xff]  }
 0xd1d   : > { %v8021_v11 = vadd.f32 %v3398_v61, %v3338_v63  ;;  %3429 = vadd.xlane.f32.xlu0 %v8017_v21  ;;  %v6163_v61 = vld [vmem:[%s6843_s26 + $0x2c] ss:$16 sps:$4 sm:$0xff]   ;;  %3891 = vmatpush1.bf16.msra.mxu1 %v6152_v28  ;;  %v6161_v63 = vld [vmem:[%s6843_s26 + $0x28] ss:$16 sps:$4 sm:$0xff]   ;;  %v6190_v42 = vld [vmem:[%s6843_s26 + $0xc4] ss:$16 sps:$4 sm:$0xff]  }
 0xd1e   : > { %3892 = vmatprep.subr.bf16.mxu1 %v6160_v2  ;;  %v6185_v28 = vld [vmem:[%s6843_s26 + $0xa8] ss:$16 sps:$4 sm:$0xff]  }
 0xd1f   : > { %3431 = vadd.xlane.f32.xlu1 %v8021_v11  ;;  %v6191_v2 = vld [vmem:[%s6843_s26 + $0xc8] ss:$16 sps:$4 sm:$0xff]  }
 0xd21   : > { %3433 = vadd.xlane.f32.xlu0 %v8024_v16  ;;  %3893 = vmatpush1.bf16.msra.mxu1 %v6158_v24  ;;  %v6199_v24 = vld [vmem:[%s6843_s26 + $0xec] ss:$16 sps:$4 sm:$0xff]  }
 0xd23   : > { %v5975_v9 = vpop.f32.mrb[100].mxu0 }
 0xd24   : > { %v3350_v15 = vpop.f32.mrb[101].mxu0  ;;  %v3359_v52 = vadd.f32 %v5975_v9, %v8011_v48 }
 0xd25   : > { %v3351_v22 = vadd.f32 %v8011_v48, %v3350_v15  ;;  %3435 = vadd.xlane.f32.xlu0 %v8030_v39  ;;  %v5976_v33 = vpop.f32.mrb[102].mxu0 }
 0xd26   : > { %v3353_v60 = vpop.f32.mrb[103].mxu0  ;;  %v3362_v62 = vadd.f32 %v5976_v33, %v8011_v48  ;;  %v8046_v8 = vadd.f32 %v3403_v36, %v3359_v52 }
 0xd27   : > { %v8037_v57 = vadd.f32 %v3401_v32, %v3351_v22  ;;  %v3354_v19 = vadd.f32 %v8011_v48, %v3353_v60 }
 0xd28   : > { %v8049_v37 = vadd.f32 %v3404_v38, %v3362_v62 }
 0xd29   : > { %v8042_v41 = vadd.f32 %v3402_v5, %v3354_v19  ;;  %3437 = vadd.xlane.f32.xlu0 %v8037_v57 }
 0xd2b   : > { %3439 = vadd.xlane.f32.xlu1 %v8042_v41 }
 0xd2d   : > { %3441 = vadd.xlane.f32.xlu0 %v8046_v8 }
 0xd2f   : > { %3443 = vadd.xlane.f32.xlu1 %v8049_v37 }
 0xd53   : > { %v5979_v27 = vpop.f32.mrb[104].mxu0 }
 0xd54   : > { %v3366_v6 = vpop.f32.mrb[105].mxu0  ;;  %v3375_v26 = vadd.f32 %v5979_v27, %v8011_v48 }
 0xd55   : > { %v3367_v55 = vadd.f32 %v8011_v48, %v3366_v6  ;;  %v5980_v44 = vpop.f32.mrb[106].mxu0 }
 0xd56   : > { %v3369_v50 = vpop.f32.mrb[107].mxu0  ;;  %v3378_v59 = vadd.f32 %v5980_v44, %v8011_v48  ;;  %v8066_v23 = vadd.f32 %v3407_v1, %v3375_v26 }
 0xd57   : > { %v8057_v12 = vadd.f32 %v3405_v31, %v3367_v55  ;;  %v3370_v30 = vadd.f32 %v8011_v48, %v3369_v50 }
 0xd58   : > { %v8069_v34 = vadd.f32 %v3408_v7, %v3378_v59  ;;  %v6166_v59 = vld [vmem:[%s6843_s26 + $0x44] ss:$16 sps:$4 sm:$0xff]   ;;  %v6169_v7 = vld [vmem:[%s6843_s26 + $0x4c] ss:$16 sps:$4 sm:$0xff]  }
 0xd59   : > { %v8062_v25 = vadd.f32 %v3406_v14, %v3370_v30  ;;  %3445 = vadd.xlane.f32.xlu0 %v8057_v12  ;;  %3894 = vmatprep.subr.bf16.mxu1 %v6166_v59 }
 0xd5b   : > { %3447 = vadd.xlane.f32.xlu1 %v8062_v25 }
 0xd5d   : > { %3449 = vadd.xlane.f32.xlu0 %v8066_v23 }
 0xd5f   : > { %3451 = vadd.xlane.f32.xlu1 %v8069_v34  ;;  %v5983_v3 = vpop.f32.mrb[108].mxu0 }
 0xd60   : > { %v3382_v13 = vpop.f32.mrb[109].mxu0  ;;  %v3391_v35 = vadd.f32 %v5983_v3, %v8011_v48  ;;  %v6167_v3 = vld [vmem:[%s6843_s26 + $0x48] ss:$16 sps:$4 sm:$0xff]  }
 0xd61   : > { %v3383_v0 = vadd.f32 %v8011_v48, %v3382_v13  ;;  %v5984_v47 = vpop.f32.mrb[110].mxu0 }
 0xd62   : > { %v3385_v45 = vpop.f32.mrb[111].mxu0  ;;  %v3394_v4 = vadd.f32 %v5984_v47, %v8011_v48  ;;  %v8086_v40 = vadd.f32 %v3411_v43, %v3391_v35  ;;  %v6173_v47 = vld [vmem:[%s6843_s26 + $0x68] ss:$16 sps:$4 sm:$0xff]   ;;  %v6176_v35 = vld [vmem:[%s6843_s26 + $0x80] ss:$16 sps:$4 sm:$0xff]  }
 0xd63   : > { %v8077_v53 = vadd.f32 %v3409_v51, %v3383_v0  ;;  %v3386_v10 = vadd.f32 %v8011_v48, %v3385_v45  ;;  %v6155_v48 = vld [vmem:[%s6843_s26 + $0x8] ss:$16 sps:$4 sm:$0xff]   ;;  %v6175_v51 = vld [vmem:[%s6843_s26 + $0x6c] ss:$16 sps:$4 sm:$0xff]   ;;  %v6170_v0 = vld [vmem:[%s6843_s26 + $0x60] ss:$16 sps:$4 sm:$0xff]  }
 0xd64   : > { %v8089_v56 = vadd.f32 %v3412_v46, %v3394_v4  ;;  %4004 = vmatpush1.bf16.msra.mxu0 %v6155_v48  ;;  %v6178_v45 = vld [vmem:[%s6843_s26 + $0x84] ss:$16 sps:$4 sm:$0xff]   ;;  %v6187_v4 = vld [vmem:[%s6843_s26 + $0xac] ss:$16 sps:$4 sm:$0xff]   ;;  %v6182_v46 = vld [vmem:[%s6843_s26 + $0xa0] ss:$16 sps:$4 sm:$0xff]  }
 0xd65   : > { %v8082_v54 = vadd.f32 %v3410_v58, %v3386_v10  ;;  %3453 = vadd.xlane.f32.xlu0 %v8077_v53  ;;  %4005 = vmatprep.subr.bf16.mxu0 %v6163_v61  ;;  %v6181_v58 = vld [vmem:[%s6843_s26 + $0x8c] ss:$16 sps:$4 sm:$0xff]   ;;  %v6179_v10 = vld [vmem:[%s6843_s26 + $0x88] ss:$16 sps:$4 sm:$0xff]   ;;  %v6184_v43 = vld [vmem:[%s6843_s26 + $0xa4] ss:$16 sps:$4 sm:$0xff]  }
 0xd66   : > { %v6193_v48 = vld [vmem:[%s6843_s26 + $0xcc] ss:$16 sps:$4 sm:$0xff]   ;;  %v6196_v61 = vld [vmem:[%s6843_s26 + $0xe4] ss:$16 sps:$4 sm:$0xff]  }
 0xd67   : > { %3455 = vadd.xlane.f32.xlu1 %v8082_v54 }
 0xd68   : > { %4006 = vmatpush1.bf16.msra.mxu0 %v6161_v63  ;;  %v6194_v63 = vld [vmem:[%s6843_s26 + $0xe0] ss:$16 sps:$4 sm:$0xff]  }
 0xd69   : > { %3457 = vadd.xlane.f32.xlu0 %v8086_v40  ;;  %4007 = vmatprep.subr.bf16.mxu0 %v6169_v7 }
 0xd6b   : > { %3459 = vadd.xlane.f32.xlu1 %v8089_v56 }
 0xd6c   : > { %4008 = vmatpush1.bf16.msra.mxu0 %v6167_v3 }
 0xd6d   : > { %4009 = vmatprep.subr.bf16.mxu0 %v6175_v51 }
 0xd70   : > { %4010 = vmatpush1.bf16.msra.mxu0 %v6173_v47 }
 0xd71   : > { %4011 = vmatprep.subr.bf16.mxu0 %v6181_v58 }
 0xd74   : > { %4012 = vmatpush1.bf16.msra.mxu0 %v6179_v10 }
 0xd75   : > { %4013 = vmatprep.subr.bf16.mxu0 %v6187_v4 }
 0xd78   : > { %4014 = vmatpush1.bf16.msra.mxu0 %v6185_v28 }
 0xd79   : > { %4015 = vmatprep.subr.bf16.mxu0 %v6193_v48 }
 0xd7c   : > { %4016 = vmatpush1.bf16.msra.mxu0 %v6191_v2 }
 0xd7d   : > { %4017 = vmatprep.subr.bf16.mxu0 %v6199_v24 }
 0xdaa   : > { %v3430_v20 = vpop.xlane.xlu0 %3429 }
 0xdab   : > { %v3462_v29 = vmul.f32 0.0078125, %v3430_v20  ;;  %v6197_v20 = vld [vmem:[%s6843_s26 + $0xe8] ss:$16 sps:$4 sm:$0xff]  }
 0xdac   : > { %v3432_v49 = vpop.xlane.xlu1 %3431  ;;  %4018 = vmatpush1.bf16.msra.mxu0 %v6197_v20 }
 0xdad   : > { %v8102_v9 = vsub.f32 %v8017_v21, %v3462_v29  ;;  %v3463_v15 = vmul.f32 0.0078125, %v3432_v49 }
 0xdae   : > { %v3434_v32 = vpop.xlane.xlu0 %3433 }
 0xdaf   : > { %v8105_v22 = vsub.f32 %v8021_v11, %v3463_v15  ;;  %v3464_v33 = vmul.f32 0.0078125, %v3434_v32  ;;  %v3494_v60 = vmul.f32 %v8102_v9, %v8102_v9 }
 0xdb1   : > { %v8110_v5 = vsub.f32 %v8024_v16, %v3464_v33  ;;  %3510 = vadd.xlane.f32.xlu0 %v3494_v60  ;;  %v3495_v52 = vmul.f32 %v8105_v22, %v8105_v22 }
 0xdb2   : > { %v3436_v19 = vpop.xlane.xlu0 %3435 }
 0xdb3   : > { %v3465_v36 = vmul.f32 0.0078125, %v3436_v19  ;;  %3512 = vadd.xlane.f32.xlu1 %v3495_v52  ;;  %v3496_v21 = vmul.f32 %v8110_v5, %v8110_v5 }
 0xdb5   : > { %v8117_v11 = vsub.f32 %v8030_v39, %v3465_v36  ;;  %3514 = vadd.xlane.f32.xlu0 %v3496_v21 }
 0xdb6   : > { %v3438_v62 = vpop.xlane.xlu0 %3437 }
 0xdb7   : > { %v3466_v38 = vmul.f32 0.0078125, %v3438_v62  ;;  %v3497_v16 = vmul.f32 %v8117_v11, %v8117_v11 }
 0xdb8   : > { %v3440_v27 = vpop.xlane.xlu1 %3439 }
 0xdb9   : > { %v8122_v6 = vsub.f32 %v8037_v57, %v3466_v38  ;;  %v3467_v31 = vmul.f32 0.0078125, %v3440_v27  ;;  %3516 = vadd.xlane.f32.xlu1 %v3497_v16 }
 0xdba   : > { %v3442_v55 = vpop.xlane.xlu0 %3441 }
 0xdbb   : > { %v8125_v39 = vsub.f32 %v8042_v41, %v3467_v31  ;;  %v3468_v44 = vmul.f32 0.0078125, %v3442_v55  ;;  %v3498_v50 = vmul.f32 %v8122_v6, %v8122_v6 }
 0xdbc   : > { %v3444_v14 = vpop.xlane.xlu1 %3443 }
 0xdbd   : > { %v8130_v26 = vsub.f32 %v8046_v8, %v3468_v44  ;;  %v3469_v30 = vmul.f32 0.0078125, %v3444_v14  ;;  %3518 = vadd.xlane.f32.xlu0 %v3498_v50  ;;  %v3499_v57 = vmul.f32 %v8125_v39, %v8125_v39  ;;  %v6164_v8 = vld [vmem:[%s6843_s26 + $0x40] ss:$16 sps:$4 sm:$0xff]  }
 0xdbe   : > { %3895 = vmatpush1.bf16.msra.mxu1 %v6164_v8 }
 0xdbf   : > { %v8135_v1 = vsub.f32 %v8049_v37, %v3469_v30  ;;  %3520 = vadd.xlane.f32.xlu1 %v3499_v57  ;;  %v3500_v41 = vmul.f32 %v8130_v26, %v8130_v26  ;;  %v6172_v37 = vld [vmem:[%s6843_s26 + $0x64] ss:$16 sps:$4 sm:$0xff]   ;;  %s8883_s26 = scalar_lea.vmem %s8786_s5, %s6801_s30  ;;  %s8890_s30 = sld [smem:[#allocation9_spill]] }
 0xdc0   : > { %3896 = vmatprep.subr.bf16.mxu1 %v6172_v37  ;;  %v8215_v2 = vld [vmem:[%s8883_s26] ss:$0 sm:$0xff]  ;;  %s6652_s26 = smov [#allocation5]  }
 0xdc1   : > { %3522 = vadd.xlane.f32.xlu0 %v3500_v41  ;;  %v3501_v13 = vmul.f32 %v8135_v1, %v8135_v1  ;;  %s6556_s19 = sshll.u32 %s6652_s26, 4  ;;  %s6557_s19 = int_to_ptr.vmem [resolvable:$false] %s6556_s19 }
 0xdc2   : > { %3897 = vmatpush1.bf16.msra.mxu1 %v6170_v0  ;;  %s6558_s23 = scalar_lea.vmem %s6557_s19, 4096  ;;  %p6559_p5 = scmp.lt.s32.totalorder %s8722_s1, %s6557_s19 }
 0xdc3   : > { %3524 = vadd.xlane.f32.xlu1 %v3501_v13  ;;  %3898 = vmatprep.subr.bf16.mxu1 %v6178_v45  ;;  %v6200_v13 = vld [vmem:[%s6853_s28 + $0x40] sm:$0xff]   ;;  %p6560_p6 = scmp.lt.s32.totalorder %s6558_s23, %s6552_s13 }
 0xdc5   : > { %s8893_s22 = sand.u32 1, %s8890_s30   ;;  %p6561_p7 = por %p6560_p6, %p6559_p5 }
 0xdc6   : > { %3899 = vmatpush1.bf16.msra.mxu1 %v6176_v35  ;;  %s8729_s25 = scalar_lea.sflag [#allocation6], %s8893_s22 }
 0xdc7   : > { %3900 = vmatprep.subr.bf16.mxu1 %v6184_v43  ;;  %p6562_p8 = pnand %p6561_p7, %p6555_p4 }
 0xdca   : > { %3901 = vmatpush1.bf16.msra.mxu1 %v6182_v46 }
 0xdcb   : > { %3902 = vmatprep.subr.bf16.mxu1 %v6190_v42 }
 0xdce   : > { %3903 = vmatpush1.bf16.msra.mxu1 %v6188_v18 }
 0xdcf   : > { %3904 = vmatprep.subr.bf16.mxu1 %v6196_v61 }
 0xdd2   : > { %3905 = vmatpush1.bf16.msra.mxu1 %v6194_v63 }
 0xdd3   : > { %5537 = vmatprep.subr.bf16.mxu1 %v6200_v13  ;;  %v6206_v13 = vld [vmem:[%s6853_s28 + $0x8] sm:$0xff]  }
 0xde6   : > { %v3446_v29 = vpop.xlane.xlu0 %3445 }
 0xde7   : > { %v3470_v49 = vmul.f32 0.0078125, %v3446_v29 }
 0xde8   : > { %v3448_v15 = vpop.xlane.xlu1 %3447 }
 0xde9   : > { %v8166_v32 = vsub.f32 %v8057_v12, %v3470_v49  ;;  %v3471_v33 = vmul.f32 0.0078125, %v3448_v15 }
 0xdea   : > { %v3450_v60 = vpop.xlane.xlu0 %3449 }
 0xdeb   : > { %v8169_v52 = vsub.f32 %v8062_v25, %v3471_v33  ;;  %v3472_v19 = vmul.f32 0.0078125, %v3450_v60  ;;  %v3502_v36 = vmul.f32 %v8166_v32, %v8166_v32  ;;  %v8223_v33 = vld [vmem:[%s8884_s14] ss:$0 sm:$0xff] }
 0xdec   : > { %v3452_v21 = vpop.xlane.xlu1 %3451 }
 0xded   : > { %v8174_v62 = vsub.f32 %v8066_v23, %v3472_v19  ;;  %v3473_v38 = vmul.f32 0.0078125, %v3452_v21  ;;  %3526 = vadd.xlane.f32.xlu0 %v3502_v36  ;;  %v3503_v16 = vmul.f32 %v8169_v52, %v8169_v52 }
 0xdef   : > { %v8179_v12 = vsub.f32 %v8069_v34, %v3473_v38  ;;  %3528 = vadd.xlane.f32.xlu1 %v3503_v16  ;;  %v3504_v25 = vmul.f32 %v8174_v62, %v8174_v62 }
 0xdf1   : > { %3530 = vadd.xlane.f32.xlu0 %v3504_v25  ;;  %v3505_v27 = vmul.f32 %v8179_v12, %v8179_v12 }
 0xdf2   : > { %v3454_v31 = vpop.xlane.xlu0 %3453 }
 0xdf3   : > { %v3474_v55 = vmul.f32 0.0078125, %v3454_v31  ;;  %3532 = vadd.xlane.f32.xlu1 %v3505_v27 }
 0xdf4   : > { %v3456_v23 = vpop.xlane.xlu1 %3455 }
 0xdf5   : > { %v8186_v44 = vsub.f32 %v8077_v53, %v3474_v55  ;;  %v3475_v50 = vmul.f32 0.0078125, %v3456_v23 }
 0xdf6   : > { %v3458_v14 = vpop.xlane.xlu0 %3457 }
 0xdf7   : > { %v8189_v34 = vsub.f32 %v8082_v54, %v3475_v50  ;;  %v3476_v30 = vmul.f32 0.0078125, %v3458_v14  ;;  %v3506_v57 = vmul.f32 %v8186_v44, %v8186_v44 }
 0xdf8   : > { %v3460_v41 = vpop.xlane.xlu1 %3459 }
 0xdf9   : > { %v8194_v59 = vsub.f32 %v8086_v40, %v3476_v30  ;;  %v3477_v7 = vmul.f32 0.0078125, %v3460_v41  ;;  %3534 = vadd.xlane.f32.xlu0 %v3506_v57  ;;  %v3507_v53 = vmul.f32 %v8189_v34, %v8189_v34  ;;  %v8207_v40 = vld [vmem:[%s6853_s28 + $0xc0] sm:$0xff]   ;;  %v6204_v41 = vld [vmem:[%s6853_s28 + $0x48] sm:$0xff]  }
 0xdfa   : > { %5601 = vmatprep.subr.bf16.mxu0 %v8207_v40  ;;  %v6201_v57 = vld [vmem:[%s6853_s28] sm:$0xff]  }
 0xdfb   : > { %v8199_v8 = vsub.f32 %v8089_v56, %v3477_v7  ;;  %3536 = vadd.xlane.f32.xlu1 %v3507_v53  ;;  %v3508_v54 = vmul.f32 %v8194_v59, %v8194_v59  ;;  %v8242_v7 = vld [vmem:[%s6853_s28 + $0xc8] sm:$0xff]  }
 0xdfd   : > { %3538 = vadd.xlane.f32.xlu0 %v3508_v54  ;;  %v3509_v3 = vmul.f32 %v8199_v8, %v8199_v8 }
 0xdff   : > { %3540 = vadd.xlane.f32.xlu1 %v3509_v3 }
 0xe3e   : > { %v3511_v37 = vpop.xlane.xlu0 %3510 }
 0xe3f   : > { %v3542_v51 = vmul.f32 0.0078125, %v3511_v37  ;;  %v8253_v37 = vld [vmem:[%s6853_s28 + $0x88] sm:$0xff]  }
 0xe40   : > { %v3513_v0 = vpop.xlane.xlu1 %3512 }
 0xe41   : > { %v3558_v56 = vadd.f32 1e-05, %v3542_v51  ;;  %v3543_v47 = vmul.f32 0.0078125, %v3513_v0  ;;  %v6208_v0 = vld [vmem:[%s6853_s28 + $0x50] sm:$0xff]  }
 0xe42   : > { %v3515_v45 = vpop.xlane.xlu0 %3514 }
 0xe43   : > { %6488 = vrsqrt.f32 %v3558_v56  ;;  %v3559_v58 = vadd.f32 1e-05, %v3543_v47  ;;  %v3544_v35 = vmul.f32 0.0078125, %v3515_v45  ;;  %v8258_v56 = vld [vmem:[%s6853_s28 + $0xd0] sm:$0xff]  }
 0xe45   : > { %6490 = vrsqrt.f32 %v3559_v58  ;;  %v3560_v10 = vadd.f32 1e-05, %v3544_v35 }
 0xe46   : > { %v3517_v43 = vpop.xlane.xlu1 %3516 }
 0xe47   : > { %6492 = vrsqrt.f32 %v3560_v10  ;;  %v3545_v4 = vmul.f32 0.0078125, %v3517_v43 }
 0xe49   : > { %v3561_v46 = vadd.f32 1e-05, %v3545_v4  ;;  %v6210_v4 = vld [vmem:[%s6853_s28 + $0x10] sm:$0xff]  }
 0xe4a   : > { %v3519_v28 = vpop.xlane.xlu0 %3518 }
 0xe4b   : > { %6494 = vrsqrt.f32 %v3561_v46  ;;  %v3546_v42 = vmul.f32 0.0078125, %v3519_v28  ;;  %v8269_v46 = vld [vmem:[%s6853_s28 + $0x90] sm:$0xff]  }
 0xe4c   : > { %v3521_v48 = vpop.xlane.xlu1 %3520 }
 0xe4d   : > { %v6489_v18 = vpop.eup %6488  ;;  %v3562_v61 = vadd.f32 1e-05, %v3546_v42  ;;  %v3547_v24 = vmul.f32 0.0078125, %v3521_v48  ;;  %v8274_v42 = vld [vmem:[%s6853_s28 + $0xd8] sm:$0xff]  }
 0xe4e   : > { %v3590_v63 = vmul.f32 %v6489_v18, %v8102_v9  ;;  %v3523_v20 = vpop.xlane.xlu0 %3522 }
 0xe4f   : > { %v6491_v29 = vpop.eup %6490  ;;  %6496 = vrsqrt.f32 %v3562_v61  ;;  %v3563_v49 = vadd.f32 1e-05, %v3547_v24  ;;  %v3548_v15 = vmul.f32 0.0078125, %v3523_v20  ;;  %v6216_v20 = vld [vmem:[%s6853_s28 + $0x60] sm:$0xff]  }
 0xe50   : > { %v3613_v60 = vmul.f32 %v8215_v2, %v3590_v63  ;;  %v3591_v19 = vmul.f32 %v6491_v29, %v8105_v22  ;;  %v3525_v36 = vpop.xlane.xlu1 %3524  ;;  %v6214_v63 = vld [vmem:[%s6853_s28 + $0x18] sm:$0xff]   ;;  %v8293_v29 = vld [vmem:[%s6853_s28 + $0xe0] sm:$0xff]  }
 0xe51   : > { %v6493_v21 = vpop.eup %6492  ;;  %6498 = vrsqrt.f32 %v3563_v49  ;;  %v3564_v9 = vadd.f32 1e-05, %v3548_v15  ;;  %v3549_v38 = vmul.f32 0.0078125, %v3525_v36  ;;  %v6220_v36 = vld [vmem:[%s6853_s28 + $0x68] sm:$0xff]  }
 0xe52   : > { %v3614_v16 = vmul.f32 %v8215_v2, %v3591_v19  ;;  %v3636_v25 = vadd.f32 %v8223_v33, %v3613_v60  ;;  %v3592_v27 = vmul.f32 %v6493_v21, %v8110_v5  ;;  %v8238_v5 = vld [vmem:[%s6853_s28 + $0x80] sm:$0xff]   ;;  %v8306_v21 = vld [vmem:[%s6853_s28 + $0xe8] sm:$0xff]  }
 0xe53   : > { %6500 = vrsqrt.f32 %v3564_v9  ;;  %v3565_v31 = vadd.f32 1e-05, %v3549_v38  ;;  %v6218_v60 = vld [vmem:[%s6853_s28 + $0x20] sm:$0xff]  }
 0xe54   : > { %v3637_v22 = vadd.f32 %v8223_v33, %v3614_v16  ;;  %3660 = vst [vmem:[%s6867_s24] sm:$0xff] %v3636_v25  ;;  %v3615_v55 = vmul.f32 %v8215_v2, %v3592_v27  ;;  %v8301_v19 = vld [vmem:[%s6853_s28 + $0xa0] sm:$0xff]  }
 0xe55   : > { %v6495_v23 = vpop.eup %6494  ;;  %6502 = vrsqrt.f32 %v3565_v31 }
 0xe56   : > { %v3652_v50 = vpack.c.bf16 %v3637_v22, %v3636_v25  ;;  %3661 = vst [vmem:[%s6867_s24 + $0x8] sm:$0xff] %v3637_v22  ;;  %v3593_v14 = vmul.f32 %v6495_v23, %v8117_v11  ;;  %v3638_v30 = vadd.f32 %v8223_v33, %v3615_v55 }
 0xe58   : > { %3923 = vmatmul.mubr.bf16.vlgmr.msra.gmra.mrb[80].mxu1 %v3652_v50  ;;  %4036 = vmatmul.mubr.bf16.vlgmr.msra.gmra.mrb[112].mxu0 %v3652_v50  ;;  %v3616_v53 = vmul.f32 %v8215_v2, %v3593_v14  ;;  %3662 = vst [vmem:[%s6867_s24 + $0x10] sm:$0xff] %v3638_v30 }
 0xe59   : > { %v6497_v54 = vpop.eup %6496  ;;  %3932 = vmatprep.mubr.bf16.mxu1 %v8860_v17  ;;  %4045 = vmatprep.mubr.bf16.mxu0 %v8860_v17 }
 0xe5a   : > { %v3639_v11 = vadd.f32 %v8223_v33, %v3616_v53  ;;  %v3594_v3 = vmul.f32 %v6497_v54, %v8122_v6  ;;  %5538 = vmatpush3.bf16.msra.mxu1 %v6201_v57  ;;  %5602 = vmatpush3.bf16.msra.mxu0 %v8238_v5 }
 0xe5b   : > { %v6499_v51 = vpop.eup %6498  ;;  %5539 = vmatprep.subr.bf16.mxu1 %v6204_v41  ;;  %5603 = vmatprep.subr.bf16.mxu0 %v8242_v7 }
 0xe5c   : > { %3663 = vst [vmem:[%s6867_s24 + $0x18] sm:$0xff] %v3639_v11  ;;  %v3595_v6 = vmul.f32 %v6499_v51, %v8125_v39  ;;  %v3617_v47 = vmul.f32 %v8215_v2, %v3594_v3  ;;  %v3653_v58 = vpack.c.bf16 %v3639_v11, %v3638_v30  ;;  %v6212_v39 = vld [vmem:[%s6853_s28 + $0x58] sm:$0xff]  }
 0xe5d   : > { %v6501_v45 = vpop.eup %6500 }
 0xe5e   : > { %v3618_v35 = vmul.f32 %v8215_v2, %v3595_v6  ;;  %v3640_v10 = vadd.f32 %v8223_v33, %v3617_v47  ;;  %v3596_v43 = vmul.f32 %v6501_v45, %v8130_v26  ;;  %5540 = vmatpush3.bf16.msra.mxu1 %v6206_v13  ;;  %5604 = vmatpush3.bf16.msra.mxu0 %v8253_v37 }
 0xe5f   : > { %v6503_v28 = vpop.eup %6502  ;;  %5541 = vmatprep.subr.bf16.mxu1 %v6208_v0  ;;  %5605 = vmatprep.subr.bf16.mxu0 %v8258_v56 }
 0xe60   : > { %3933 = vmatmul.mubr.bf16.gmra.mrb[84].mxu1 %v3653_v58  ;;  %4046 = vmatmul.mubr.bf16.gmra.mrb[116].mxu0 %v3653_v58  ;;  %v3641_v26 = vadd.f32 %v8223_v33, %v3618_v35  ;;  %3664 = vst [vmem:[%s6867_s24 + $0x20] sm:$0xff] %v3640_v10  ;;  %v3597_v48 = vmul.f32 %v6503_v28, %v8135_v1  ;;  %v8288_v1 = vld [vmem:[%s6853_s28 + $0x98] sm:$0xff]  }
 0xe61   : > { %v3619_v18 = vmul.f32 %v8215_v2, %v3596_v43  ;;  %3942 = vmatprep.mubr.bf16.mxu1 %v8860_v17  ;;  %4055 = vmatprep.mubr.bf16.mxu0 %v8860_v17 }
 0xe62   : > { %3665 = vst [vmem:[%s6867_s24 + $0x28] sm:$0xff] %v3641_v26  ;;  %v3620_v61 = vmul.f32 %v8215_v2, %v3597_v48  ;;  %5542 = vmatpush3.bf16.msra.mxu1 %v6210_v4  ;;  %5606 = vmatpush3.bf16.msra.mxu0 %v8269_v46  ;;  %v3654_v15 = vpack.c.bf16 %v3641_v26, %v3640_v10 }
 0xe63   : > { %v3642_v24 = vadd.f32 %v8223_v33, %v3619_v18  ;;  %5543 = vmatprep.subr.bf16.mxu1 %v6212_v39  ;;  %5607 = vmatprep.subr.bf16.mxu0 %v8274_v42 }
 0xe64   : > { %v3643_v49 = vadd.f32 %v8223_v33, %v3620_v61 }
 0xe65   : > { %3666 = vst [vmem:[%s6867_s24 + $0x30] sm:$0xff] %v3642_v24 }
 0xe66   : > { %3667 = vst [vmem:[%s6867_s24 + $0x38] sm:$0xff] %v3643_v49  ;;  %5544 = vmatpush3.bf16.msra.mxu1 %v6214_v63  ;;  %5608 = vmatpush3.bf16.msra.mxu0 %v8288_v1  ;;  %v3655_v9 = vpack.c.bf16 %v3643_v49, %v3642_v24 }
 0xe67   : > { %5545 = vmatprep.subr.bf16.mxu1 %v6216_v20  ;;  %5609 = vmatprep.subr.bf16.mxu0 %v8293_v29 }
 0xe68   : > { %3943 = vmatmul.mubr.bf16.gmra.mrb[88].mxu1 %v3654_v15  ;;  %4056 = vmatmul.mubr.bf16.gmra.mrb[120].mxu0 %v3654_v15 }
 0xe69   : > { %3952 = vmatprep.mubr.bf16.mxu1 %v8860_v17  ;;  %4065 = vmatprep.mubr.bf16.mxu0 %v8860_v17 }
 0xe6a   : > { %5546 = vmatpush3.bf16.msra.mxu1 %v6218_v60  ;;  %5610 = vmatpush3.bf16.msra.mxu0 %v8301_v19 }
 0xe6b   : > { %5547 = vmatprep.subr.bf16.mxu1 %v6220_v36  ;;  %5611 = vmatprep.subr.bf16.mxu0 %v8306_v21 }
 0xe70   : > { %3953 = vmatmul.mubr.bf16.gmra.mrb[92].mxu1 %v3655_v9  ;;  %4066 = vmatmul.mubr.bf16.gmra.mrb[124].mxu0 %v3655_v9 }
 0xe71   : > { %3962 = vmatprep.mubr.bf16.mxu1 %v8860_v17  ;;  %4075 = vmatprep.mubr.bf16.mxu0 %v8860_v17 }
 0xe7a   : > { %v3527_v38 = vpop.xlane.xlu0 %3526 }
 0xe7b   : > { %v3550_v16 = vmul.f32 0.0078125, %v3527_v38 }
 0xe7c   : > { %v3529_v25 = vpop.xlane.xlu1 %3528 }
 0xe7d   : > { %v3566_v27 = vadd.f32 1e-05, %v3550_v16  ;;  %v3551_v31 = vmul.f32 0.0078125, %v3529_v25 }
 0xe7e   : > { %v3531_v22 = vpop.xlane.xlu0 %3530 }
 0xe7f   : > { %6504 = vrsqrt.f32 %v3566_v27  ;;  %v3567_v55 = vadd.f32 1e-05, %v3551_v31  ;;  %v3552_v23 = vmul.f32 0.0078125, %v3531_v22 }
 0xe80   : > { %v3533_v50 = vpop.xlane.xlu1 %3532 }
 0xe81   : > { %6506 = vrsqrt.f32 %v3567_v55  ;;  %v3568_v14 = vadd.f32 1e-05, %v3552_v23  ;;  %v3553_v30 = vmul.f32 0.0078125, %v3533_v50 }
 0xe83   : > { %6508 = vrsqrt.f32 %v3568_v14  ;;  %v3569_v57 = vadd.f32 1e-05, %v3553_v30  ;;  %v8354_v30 = vld [vmem:[%s6853_s28 + $0xa8] sm:$0xff]  }
 0xe84   : > { %5612 = vmatpush3.bf16.msra.mxu0 %v8354_v30 }
 0xe85   : > { %6510 = vrsqrt.f32 %v3569_v57  ;;  %v8359_v57 = vld [vmem:[%s6853_s28 + $0xf0] sm:$0xff]  }
 0xe86   : > { %v3535_v41 = vpop.xlane.xlu0 %3534  ;;  %5613 = vmatprep.subr.bf16.mxu0 %v8359_v57 }
 0xe87   : > { %v3554_v53 = vmul.f32 0.0078125, %v3535_v41  ;;  %v6226_v41 = vld [vmem:[%s6853_s28 + $0x30] sm:$0xff]  }
 0xe88   : > { %v3537_v54 = vpop.xlane.xlu1 %3536 }
 0xe89   : > { %v6505_v11 = vpop.eup %6504  ;;  %v3570_v3 = vadd.f32 1e-05, %v3554_v53  ;;  %v3555_v13 = vmul.f32 0.0078125, %v3537_v54  ;;  %v8363_v53 = vld [vmem:[%s6853_s28 + $0xb0] sm:$0xff]   ;;  %v8369_v54 = vld [vmem:[%s6853_s28 + $0xf8] sm:$0xff]  }
 0xe8a   : > { %v3539_v51 = vpop.xlane.xlu0 %3538  ;;  %v3598_v0 = vmul.f32 %v6505_v11, %v8166_v32  ;;  %5614 = vmatpush3.bf16.msra.mxu0 %v8363_v53  ;;  %v6230_v11 = vld [vmem:[%s6853_s28 + $0x38] sm:$0xff]  }
 0xe8b   : > { %v6507_v6 = vpop.eup %6506  ;;  %6512 = vrsqrt.f32 %v3570_v3  ;;  %v3571_v47 = vadd.f32 1e-05, %v3555_v13  ;;  %v3556_v45 = vmul.f32 0.0078125, %v3539_v51  ;;  %v8373_v3 = vld [vmem:[%s6853_s28 + $0xb8] sm:$0xff]   ;;  %5615 = vmatprep.subr.bf16.mxu0 %v8369_v54  ;;  %v3708_v13 = vld [vmem:[%s6848_s0] sm:$0xf] }
 0xe8c   : > { %v3541_v58 = vpop.xlane.xlu1 %3540  ;;  %v3599_v35 = vmul.f32 %v6507_v6, %v8169_v52  ;;  %v3621_v10 = vmul.f32 %v8215_v2, %v3598_v0  ;;  %v8885_v51 = vld [vmem:[#allocation22_spill] sm:$0xff] }
 0xe8d   : > { %v6509_v43 = vpop.eup %6508  ;;  %6514 = vrsqrt.f32 %v3571_v47  ;;  %v3572_v4 = vadd.f32 1e-05, %v3556_v45  ;;  %v3557_v28 = vmul.f32 0.0078125, %v3541_v58  ;;  %v3724_v0 = vsub.s32 3, %v8885_v51 }
 0xe8e   : > { %v3622_v39 = vmul.f32 %v8215_v2, %v3599_v35  ;;  %v3644_v26 = vadd.f32 %v8223_v33, %v3621_v10  ;;  %v3600_v32 = vmul.f32 %v6509_v43, %v8174_v62  ;;  %5616 = vmatpush3.bf16.msra.mxu0 %v8373_v3  ;;  %v8886_v6 = vsub.s32 0, %v8885_v51 }
 0xe8f   : > { %v6511_v48 = vpop.eup %6510  ;;  %6516 = vrsqrt.f32 %v3572_v4  ;;  %v3573_v18 = vadd.f32 1e-05, %v3557_v28  ;;  %v8887_v45 = vsub.s32 2, %v8885_v51  ;;  %v8888_v35 = vsub.s32 1, %v8885_v51 }
 0xe90   : > { %v3645_v61 = vadd.f32 %v8223_v33, %v3622_v39  ;;  %3668 = vst [vmem:[%s6867_s24 + $0x40] sm:$0xff] %v3644_v26  ;;  %v3601_v52 = vmul.f32 %v6511_v48, %v8179_v12  ;;  %v3623_v24 = vmul.f32 %v8215_v2, %v3600_v32  ;;  %v8382_v47 = vrot.slane %v3708_v13, %v8886_v6 }
 0xe91   : > { %6518 = vrsqrt.f32 %v3573_v18  ;;  %v8386_v58 = vrot.slane %v3708_v13, %v8887_v45  ;;  %v8390_v10 = vrot.slane %v3708_v13, %v8888_v35  ;;  %v8392_v43 = vrot.slane %v3708_v13, %v3724_v0 }
 0xe92   : > { %v3656_v63 = vpack.c.bf16 %v3645_v61, %v3644_v26  ;;  %3669 = vst [vmem:[%s6867_s24 + $0x48] sm:$0xff] %v3645_v61  ;;  %v3624_v20 = vmul.f32 %v8215_v2, %v3601_v52  ;;  %v3646_v49 = vadd.f32 %v8223_v33, %v3623_v24 }
 0xe94   : > { %3963 = vmatmul.mubr.bf16.gmra.mrb[96].mxu1 %v3656_v63  ;;  %4076 = vmatmul.mubr.bf16.gmra.mrb[128].mxu0 %v3656_v63  ;;  %v3647_v62 = vadd.f32 %v8223_v33, %v3624_v20  ;;  %3670 = vst [vmem:[%s6867_s24 + $0x50] sm:$0xff] %v3646_v49 }
 0xe95   : > { %v6513_v15 = vpop.eup %6512  ;;  %3972 = vmatprep.mubr.bf16.mxu1 %v8860_v17  ;;  %4085 = vmatprep.mubr.bf16.mxu0 %v8860_v17 }
 0xe96   : > { %3671 = vst [vmem:[%s6867_s24 + $0x58] sm:$0xff] %v3647_v62  ;;  %v3602_v12 = vmul.f32 %v6513_v15, %v8186_v44  ;;  %v3657_v16 = vpack.c.bf16 %v3647_v62, %v3646_v49 }
 0xe97   : > { %v6515_v60 = vpop.eup %6514 }
 0xe98   : > { %v3603_v36 = vmul.f32 %v6515_v60, %v8189_v34  ;;  %v3625_v9 = vmul.f32 %v8215_v2, %v3602_v12 }
 0xe99   : > { %v6517_v38 = vpop.eup %6516 }
 0xe9a   : > { %v3626_v25 = vmul.f32 %v8215_v2, %v3603_v36  ;;  %v3648_v27 = vadd.f32 %v8223_v33, %v3625_v9  ;;  %v3604_v31 = vmul.f32 %v6517_v38, %v8194_v59 }
 0xe9b   : > { %v6519_v22 = vpop.eup %6518 }
 0xe9c   : > { %3973 = vmatmul.mubr.bf16.gmra.mrb[100].mxu1 %v3657_v16  ;;  %4086 = vmatmul.mubr.bf16.gmra.mrb[132].mxu0 %v3657_v16  ;;  %v3649_v44 = vadd.f32 %v8223_v33, %v3626_v25  ;;  %3672 = vst [vmem:[%s6867_s24 + $0x60] sm:$0xff] %v3648_v27  ;;  %v3605_v34 = vmul.f32 %v6519_v22, %v8199_v8 }
 0xe9d   : > { %v3627_v55 = vmul.f32 %v8215_v2, %v3604_v31  ;;  %3982 = vmatprep.mubr.bf16.mxu1 %v8860_v17  ;;  %4095 = vmatprep.mubr.bf16.mxu0 %v8860_v17 }
 0xe9e   : > { %3673 = vst [vmem:[%s6867_s24 + $0x68] sm:$0xff] %v3649_v44  ;;  %v3628_v59 = vmul.f32 %v8215_v2, %v3605_v34  ;;  %v3658_v8 = vpack.c.bf16 %v3649_v44, %v3648_v27  ;;  %v6222_v2 = vld [vmem:[%s6853_s28 + $0x28] sm:$0xff]  }
 0xe9f   : > { %v3650_v23 = vadd.f32 %v8223_v33, %v3627_v55  ;;  %5548 = vmatpush3.bf16.msra.mxu1 %v6222_v2 }
 0xea0   : > { %v3651_v50 = vadd.f32 %v8223_v33, %v3628_v59  ;;  %v6224_v33 = vld [vmem:[%s6853_s28 + $0x70] sm:$0xff]  }
 0xea1   : > { %3674 = vst [vmem:[%s6867_s24 + $0x70] sm:$0xff] %v3650_v23  ;;  %5549 = vmatprep.subr.bf16.mxu1 %v6224_v33 }
 0xea2   : > { %3675 = vst [vmem:[%s6867_s24 + $0x78] sm:$0xff] %v3651_v50  ;;  %v3659_v14 = vpack.c.bf16 %v3651_v50, %v3650_v23 }
 0xea3   : > { %5550 = vmatpush3.bf16.msra.mxu1 %v6226_v41 }
 0xea4   : > { %3983 = vmatmul.mubr.bf16.gmra.mrb[104].mxu1 %v3658_v8  ;;  %4096 = vmatmul.mubr.bf16.gmra.mrb[136].mxu0 %v3658_v8 }
 0xea5   : > { %3992 = vmatprep.mubr.bf16.mxu1 %v8860_v17  ;;  %4105 = vmatprep.mubr.bf16.mxu0 %v8860_v17  ;;  %v6228_v17 = vld [vmem:[%s6853_s28 + $0x78] sm:$0xff]  }
 0xea6   : > { %5551 = vmatprep.subr.bf16.mxu1 %v6228_v17 }
 0xea7   : > { %5552 = vmatpush3.bf16.msra.mxu1 %v6230_v11 }
 0xea8   : > { %5985 = vmatprep.subr.bf16.mxu1 %v8207_v40 }
 0xeac   : > { %3993 = vmatmul.mubr.bf16.gmra.mrb[108].mxu1 %v3659_v14  ;;  %4106 = vmatmul.mubr.bf16.gmra.mrb[140].mxu0 %v3659_v14 }
 0xf2b   : > { %v3924_v4 = vpop.f32.mrb[80].mxu1  ;;  %v4037_v28 = vpop.f32.mrb[112].mxu0 }
 0xf2c   : > { %v3925_v40 = vadd.f32 %v3924_v4, %v8382_v47  ;;  %v4038_v39 = vadd.f32 %v4037_v28, %v8386_v58  ;;  %v3926_v26 = vpop.f32.mrb[81].mxu1  ;;  %v4039_v32 = vpop.f32.mrb[113].mxu0 }
 0xf2d   : > { %v3927_v48 = vadd.f32 %v3926_v26, %v8390_v10  ;;  %v4040_v18 = vadd.f32 %v4039_v32, %v8392_v43  ;;  %v3928_v61 = vpop.f32.mrb[82].mxu1  ;;  %v4041_v52 = vpop.f32.mrb[114].mxu0 }
 0xf2e   : > { %v3929_v24 = vadd.f32 %v3928_v61, %v8382_v47  ;;  %v4042_v63 = vadd.f32 %v4041_v52, %v8386_v58  ;;  %v3930_v20 = vpop.f32.mrb[83].mxu1  ;;  %v4043_v49 = vpop.f32.mrb[115].mxu0  ;;  %v4116_v12 = vmax.f32 %v3925_v40, 0.0  ;;  %v4118_v60 = vmax.f32 %v4038_v39, 0.0 }
 0xf2f   : > { %v3931_v62 = vadd.f32 %v3930_v20, %v8390_v10  ;;  %v4044_v15 = vadd.f32 %v4043_v49, %v8392_v43  ;;  %v4117_v38 = vmax.f32 %v3927_v48, 0.0  ;;  %v4119_v16 = vmax.f32 %v4040_v18, 0.0 }
 0xf30   : > { %v4120_v36 = vmax.f32 %v3929_v24, 0.0  ;;  %v4122_v9 = vmax.f32 %v4042_v63, 0.0 }
 0xf31   : > { %v4121_v25 = vmax.f32 %v3931_v62, 0.0  ;;  %v4123_v27 = vmax.f32 %v4044_v15, 0.0 }
 0xf32   : > { %v4180_v31 = vpack.c.bf16 %v4120_v36, %v4116_v12  ;;  %v4182_v22 = vpack.c.bf16 %v4122_v9, %v4118_v60 }
 0xf33   : > { %v4181_v44 = vpack.c.bf16 %v4121_v25, %v4117_v38  ;;  %v4183_v34 = vpack.c.bf16 %v4123_v27, %v4119_v16  ;;  %v3934_v55 = vpop.f32.mrb[84].mxu1  ;;  %v4047_v59 = vpop.f32.mrb[116].mxu0 }
 0xf34   : > { %v3935_v23 = vadd.f32 %v3934_v55, %v8382_v47  ;;  %v4048_v50 = vadd.f32 %v4047_v59, %v8386_v58  ;;  %v3936_v8 = vpop.f32.mrb[85].mxu1  ;;  %v4049_v14 = vpop.f32.mrb[117].mxu0 }
 0xf35   : > { %v3937_v2 = vadd.f32 %v3936_v8, %v8390_v10  ;;  %v4050_v33 = vadd.f32 %v4049_v14, %v8392_v43  ;;  %v3938_v41 = vpop.f32.mrb[86].mxu1  ;;  %v4051_v17 = vpop.f32.mrb[118].mxu0  ;;  %4571 = vmatprep.mubr.bf16.mxu1 %v4181_v44  ;;  %4668 = vmatprep.mubr.bf16.mxu0 %v4183_v34 }
 0xf36   : > { %v3939_v11 = vadd.f32 %v3938_v41, %v8382_v47  ;;  %v4052_v13 = vadd.f32 %v4051_v17, %v8386_v58  ;;  %v3940_v51 = vpop.f32.mrb[87].mxu1  ;;  %v4053_v0 = vpop.f32.mrb[119].mxu0  ;;  %4572 = vmatmul.mubr.bf16.vlgmr.msra.gmra.mrb[112].mxu1 %v4180_v31  ;;  %4669 = vmatmul.mubr.bf16.vlgmr.msra.gmra.mrb[144].mxu0 %v4182_v22  ;;  %v4124_v35 = vmax.f32 %v3935_v23, 0.0  ;;  %v4126_v4 = vmax.f32 %v4048_v50, 0.0 }
 0xf37   : > { %v3941_v6 = vadd.f32 %v3940_v51, %v8390_v10  ;;  %v4054_v45 = vadd.f32 %v4053_v0, %v8392_v43  ;;  %5993 = vmatpush3.bf16.msra.mxu1 %v8238_v5  ;;  %v4125_v39 = vmax.f32 %v3937_v2, 0.0  ;;  %v4127_v26 = vmax.f32 %v4050_v33, 0.0 }
 0xf38   : > { %v4128_v28 = vmax.f32 %v3939_v11, 0.0  ;;  %v4130_v40 = vmax.f32 %v4052_v13, 0.0  ;;  %5986 = vmatprep.subr.bf16.mxu1 %v8242_v7 }
 0xf39   : > { %v4129_v32 = vmax.f32 %v3941_v6, 0.0  ;;  %v4131_v48 = vmax.f32 %v4054_v45, 0.0 }
 0xf3a   : > { %v4184_v18 = vpack.c.bf16 %v4128_v28, %v4124_v35  ;;  %v4186_v61 = vpack.c.bf16 %v4130_v40, %v4126_v4 }
 0xf3b   : > { %v4185_v52 = vpack.c.bf16 %v4129_v32, %v4125_v39  ;;  %v4187_v24 = vpack.c.bf16 %v4131_v48, %v4127_v26  ;;  %v3944_v63 = vpop.f32.mrb[88].mxu1  ;;  %v4057_v20 = vpop.f32.mrb[120].mxu0  ;;  %5994 = vmatpush3.bf16.msra.mxu1 %v8253_v37 }
 0xf3c   : > { %v3945_v5 = vadd.f32 %v3944_v63, %v8382_v47  ;;  %v4058_v49 = vadd.f32 %v4057_v20, %v8386_v58  ;;  %v3946_v62 = vpop.f32.mrb[89].mxu1  ;;  %v4059_v15 = vpop.f32.mrb[121].mxu0  ;;  %5987 = vmatprep.subr.bf16.mxu1 %v8258_v56 }
 0xf3d   : > { %v3947_v7 = vadd.f32 %v3946_v62, %v8390_v10  ;;  %v4060_v12 = vadd.f32 %v4059_v15, %v8392_v43  ;;  %v3948_v60 = vpop.f32.mrb[90].mxu1  ;;  %v4061_v36 = vpop.f32.mrb[122].mxu0  ;;  %4579 = vmatprep.mubr.bf16.mxu1 %v4185_v52  ;;  %4676 = vmatprep.mubr.bf16.mxu0 %v4187_v24 }
 0xf3e   : > { %v3949_v9 = vadd.f32 %v3948_v60, %v8382_v47  ;;  %v4062_v37 = vadd.f32 %v4061_v36, %v8386_v58  ;;  %v3950_v38 = vpop.f32.mrb[91].mxu1  ;;  %v4063_v16 = vpop.f32.mrb[123].mxu0  ;;  %4580 = vmatmul.mubr.bf16.gmra.mrb[116].mxu1 %v4184_v18  ;;  %4677 = vmatmul.mubr.bf16.gmra.mrb[148].mxu0 %v4186_v61  ;;  %v4132_v27 = vmax.f32 %v3945_v5, 0.0  ;;  %v4134_v31 = vmax.f32 %v4058_v49, 0.0 }
 0xf3f   : > { %v3951_v25 = vadd.f32 %v3950_v38, %v8390_v10  ;;  %v4064_v56 = vadd.f32 %v4063_v16, %v8392_v43  ;;  %5995 = vmatpush3.bf16.msra.mxu1 %v8269_v46  ;;  %v4133_v34 = vmax.f32 %v3947_v7, 0.0  ;;  %v4135_v55 = vmax.f32 %v4060_v12, 0.0 }
 0xf40   : > { %v4136_v22 = vmax.f32 %v3949_v9, 0.0  ;;  %v4138_v44 = vmax.f32 %v4062_v37, 0.0  ;;  %5988 = vmatprep.subr.bf16.mxu1 %v8274_v42 }
 0xf41   : > { %v4137_v59 = vmax.f32 %v3951_v25, 0.0  ;;  %v4139_v23 = vmax.f32 %v4064_v56, 0.0 }
 0xf42   : > { %v4188_v50 = vpack.c.bf16 %v4136_v22, %v4132_v27  ;;  %v4190_v8 = vpack.c.bf16 %v4138_v44, %v4134_v31 }
 0xf43   : > { %v4189_v14 = vpack.c.bf16 %v4137_v59, %v4133_v34  ;;  %v4191_v2 = vpack.c.bf16 %v4139_v23, %v4135_v55  ;;  %v3954_v33 = vpop.f32.mrb[92].mxu1  ;;  %v4067_v41 = vpop.f32.mrb[124].mxu0  ;;  %5996 = vmatpush3.bf16.msra.mxu1 %v8288_v1 }
 0xf44   : > { %v3955_v46 = vadd.f32 %v3954_v33, %v8382_v47  ;;  %v4068_v17 = vadd.f32 %v4067_v41, %v8386_v58  ;;  %v3956_v11 = vpop.f32.mrb[93].mxu1  ;;  %v4069_v13 = vpop.f32.mrb[125].mxu0  ;;  %5989 = vmatprep.subr.bf16.mxu1 %v8293_v29 }
 0xf45   : > { %v3957_v42 = vadd.f32 %v3956_v11, %v8390_v10  ;;  %v4070_v51 = vadd.f32 %v4069_v13, %v8392_v43  ;;  %v3958_v0 = vpop.f32.mrb[94].mxu1  ;;  %v4071_v6 = vpop.f32.mrb[126].mxu0  ;;  %4587 = vmatprep.mubr.bf16.mxu1 %v4189_v14  ;;  %4684 = vmatprep.mubr.bf16.mxu0 %v4191_v2 }
 0xf46   : > { %v3959_v45 = vadd.f32 %v3958_v0, %v8382_v47  ;;  %v4072_v1 = vadd.f32 %v4071_v6, %v8386_v58  ;;  %v3960_v35 = vpop.f32.mrb[95].mxu1  ;;  %v4073_v4 = vpop.f32.mrb[127].mxu0  ;;  %4588 = vmatmul.mubr.bf16.gmra.mrb[120].mxu1 %v4188_v50  ;;  %4685 = vmatmul.mubr.bf16.gmra.mrb[152].mxu0 %v4190_v8  ;;  %v4140_v40 = vmax.f32 %v3955_v46, 0.0  ;;  %v4142_v39 = vmax.f32 %v4068_v17, 0.0 }
 0xf47   : > { %v3961_v28 = vadd.f32 %v3960_v35, %v8390_v10  ;;  %v4074_v29 = vadd.f32 %v4073_v4, %v8392_v43  ;;  %5997 = vmatpush3.bf16.msra.mxu1 %v8301_v19  ;;  %v4141_v48 = vmax.f32 %v3957_v42, 0.0  ;;  %v4143_v18 = vmax.f32 %v4070_v51, 0.0 }
 0xf48   : > { %v4144_v26 = vmax.f32 %v3959_v45, 0.0  ;;  %v4146_v32 = vmax.f32 %v4072_v1, 0.0  ;;  %5990 = vmatprep.subr.bf16.mxu1 %v8306_v21 }
 0xf49   : > { %v4145_v61 = vmax.f32 %v3961_v28, 0.0  ;;  %v4147_v52 = vmax.f32 %v4074_v29, 0.0 }
 0xf4a   : > { %v4192_v24 = vpack.c.bf16 %v4144_v26, %v4140_v40  ;;  %v4194_v63 = vpack.c.bf16 %v4146_v32, %v4142_v39 }
 0xf4b   : > { %v4193_v20 = vpack.c.bf16 %v4145_v61, %v4141_v48  ;;  %v4195_v5 = vpack.c.bf16 %v4147_v52, %v4143_v18  ;;  %5998 = vmatpush3.bf16.msra.mxu1 %v8354_v30 }
 0xf4c   : > { %5991 = vmatprep.subr.bf16.mxu1 %v8359_v57 }
 0xf4d   : > { %4595 = vmatprep.mubr.bf16.mxu1 %v4193_v20  ;;  %4692 = vmatprep.mubr.bf16.mxu0 %v4195_v5 }
 0xf4e   : > { %4596 = vmatmul.mubr.bf16.gmra.mrb[124].mxu1 %v4192_v24  ;;  %4693 = vmatmul.mubr.bf16.gmra.mrb[156].mxu0 %v4194_v63 }
 0xf4f   : > { %5999 = vmatpush3.bf16.msra.mxu1 %v8363_v53 }
 0xf50   : > { %5992 = vmatprep.subr.bf16.mxu1 %v8369_v54 }
 0xf53   : > { %6000 = vmatpush3.bf16.msra.mxu1 %v8373_v3 }
 0xf67   : > { %v3964_v19 = vpop.f32.mrb[96].mxu1  ;;  %v4077_v21 = vpop.f32.mrb[128].mxu0 }
 0xf68   : > { %v3965_v49 = vadd.f32 %v3964_v19, %v8382_v47  ;;  %v4078_v62 = vadd.f32 %v4077_v21, %v8386_v58  ;;  %v3966_v15 = vpop.f32.mrb[97].mxu1  ;;  %v4079_v30 = vpop.f32.mrb[129].mxu0 }
 0xf69   : > { %v3967_v57 = vadd.f32 %v3966_v15, %v8390_v10  ;;  %v4080_v7 = vadd.f32 %v4079_v30, %v8392_v43  ;;  %v3968_v12 = vpop.f32.mrb[98].mxu1  ;;  %v4081_v60 = vpop.f32.mrb[130].mxu0 }
 0xf6a   : > { %v3969_v53 = vadd.f32 %v3968_v12, %v8382_v47  ;;  %v4082_v54 = vadd.f32 %v4081_v60, %v8386_v58  ;;  %v3970_v36 = vpop.f32.mrb[99].mxu1  ;;  %v4083_v3 = vpop.f32.mrb[131].mxu0  ;;  %v4148_v38 = vmax.f32 %v3965_v49, 0.0  ;;  %v4150_v16 = vmax.f32 %v4078_v62, 0.0 }
 0xf6b   : > { %v3971_v9 = vadd.f32 %v3970_v36, %v8390_v10  ;;  %v4084_v37 = vadd.f32 %v4083_v3, %v8392_v43  ;;  %v4149_v27 = vmax.f32 %v3967_v57, 0.0  ;;  %v4151_v31 = vmax.f32 %v4080_v7, 0.0 }
 0xf6c   : > { %v4152_v25 = vmax.f32 %v3969_v53, 0.0  ;;  %v4154_v56 = vmax.f32 %v4082_v54, 0.0 }
 0xf6d   : > { %v4153_v22 = vmax.f32 %v3971_v9, 0.0  ;;  %v4155_v44 = vmax.f32 %v4084_v37, 0.0 }
 0xf6e   : > { %v4196_v34 = vpack.c.bf16 %v4152_v25, %v4148_v38  ;;  %v4198_v55 = vpack.c.bf16 %v4154_v56, %v4150_v16 }
 0xf6f   : > { %v4197_v59 = vpack.c.bf16 %v4153_v22, %v4149_v27  ;;  %v4199_v23 = vpack.c.bf16 %v4155_v44, %v4151_v31  ;;  %v3974_v50 = vpop.f32.mrb[100].mxu1  ;;  %v4087_v8 = vpop.f32.mrb[132].mxu0 }
 0xf70   : > { %v3975_v14 = vadd.f32 %v3974_v50, %v8382_v47  ;;  %v4088_v2 = vadd.f32 %v4087_v8, %v8386_v58  ;;  %v3976_v33 = vpop.f32.mrb[101].mxu1  ;;  %v4089_v41 = vpop.f32.mrb[133].mxu0 }
 0xf71   : > { %v3977_v46 = vadd.f32 %v3976_v33, %v8390_v10  ;;  %v4090_v17 = vadd.f32 %v4089_v41, %v8392_v43  ;;  %v3978_v11 = vpop.f32.mrb[102].mxu1  ;;  %v4091_v13 = vpop.f32.mrb[134].mxu0  ;;  %4603 = vmatprep.mubr.bf16.mxu1 %v4197_v59  ;;  %4700 = vmatprep.mubr.bf16.mxu0 %v4199_v23 }
 0xf72   : > { %v3979_v42 = vadd.f32 %v3978_v11, %v8382_v47  ;;  %v4092_v51 = vadd.f32 %v4091_v13, %v8386_v58  ;;  %v3980_v0 = vpop.f32.mrb[103].mxu1  ;;  %v4093_v6 = vpop.f32.mrb[135].mxu0  ;;  %4604 = vmatmul.mubr.bf16.gmra.mrb[128].mxu1 %v4196_v34  ;;  %4701 = vmatmul.mubr.bf16.gmra.mrb[160].mxu0 %v4198_v55  ;;  %v4156_v35 = vmax.f32 %v3975_v14, 0.0  ;;  %v4158_v4 = vmax.f32 %v4088_v2, 0.0 }
 0xf73   : > { %v3981_v45 = vadd.f32 %v3980_v0, %v8390_v10  ;;  %v4094_v1 = vadd.f32 %v4093_v6, %v8392_v43  ;;  %v4157_v40 = vmax.f32 %v3977_v46, 0.0  ;;  %v4159_v39 = vmax.f32 %v4090_v17, 0.0 }
 0xf74   : > { %v4160_v28 = vmax.f32 %v3979_v42, 0.0  ;;  %v4162_v29 = vmax.f32 %v4092_v51, 0.0 }
 0xf75   : > { %v4161_v26 = vmax.f32 %v3981_v45, 0.0  ;;  %v4163_v32 = vmax.f32 %v4094_v1, 0.0 }
 0xf76   : > { %v4200_v48 = vpack.c.bf16 %v4160_v28, %v4156_v35  ;;  %v4202_v18 = vpack.c.bf16 %v4162_v29, %v4158_v4 }
 0xf77   : > { %v4201_v61 = vpack.c.bf16 %v4161_v26, %v4157_v40  ;;  %v4203_v52 = vpack.c.bf16 %v4163_v32, %v4159_v39  ;;  %v3984_v24 = vpop.f32.mrb[104].mxu1  ;;  %v4097_v63 = vpop.f32.mrb[136].mxu0  ;;  %v8478_v26 = vld [vmem:[%s642_s16] ss:$0 sm:$0xff] }
 0xf78   : > { %v3985_v20 = vadd.f32 %v3984_v24, %v8382_v47  ;;  %v4098_v5 = vadd.f32 %v4097_v63, %v8386_v58  ;;  %v3986_v19 = vpop.f32.mrb[105].mxu1  ;;  %v4099_v21 = vpop.f32.mrb[137].mxu0 }
 0xf79   : > { %v3987_v49 = vadd.f32 %v3986_v19, %v8390_v10  ;;  %v4100_v62 = vadd.f32 %v4099_v21, %v8392_v43  ;;  %v3988_v15 = vpop.f32.mrb[106].mxu1  ;;  %v4101_v30 = vpop.f32.mrb[138].mxu0  ;;  %4611 = vmatprep.mubr.bf16.mxu1 %v4201_v61  ;;  %4708 = vmatprep.mubr.bf16.mxu0 %v4203_v52 }
 0xf7a   : > { %v3989_v57 = vadd.f32 %v3988_v15, %v8382_v47  ;;  %v4102_v7 = vadd.f32 %v4101_v30, %v8386_v58  ;;  %v3990_v12 = vpop.f32.mrb[107].mxu1  ;;  %v4103_v60 = vpop.f32.mrb[139].mxu0  ;;  %4612 = vmatmul.mubr.bf16.gmra.mrb[132].mxu1 %v4200_v48  ;;  %4709 = vmatmul.mubr.bf16.gmra.mrb[164].mxu0 %v4202_v18  ;;  %v4164_v36 = vmax.f32 %v3985_v20, 0.0  ;;  %v4166_v3 = vmax.f32 %v4098_v5, 0.0  ;;  %v4733_v15 = vld [vmem:[%s6867_s24] sm:$0xff] }
 0xf7b   : > { %v3991_v53 = vadd.f32 %v3990_v12, %v8390_v10  ;;  %v4104_v54 = vadd.f32 %v4103_v60, %v8392_v43  ;;  %v4165_v38 = vmax.f32 %v3987_v49, 0.0  ;;  %v4167_v16 = vmax.f32 %v4100_v62, 0.0 }
 0xf7c   : > { %v4168_v9 = vmax.f32 %v3989_v57, 0.0  ;;  %v4170_v37 = vmax.f32 %v4102_v7, 0.0 }
 0xf7d   : > { %v4169_v25 = vmax.f32 %v3991_v53, 0.0  ;;  %v4171_v56 = vmax.f32 %v4104_v54, 0.0  ;;  %v4734_v54 = vld [vmem:[%s6867_s24 + $0x8] sm:$0xff] }
 0xf7e   : > { %v4204_v27 = vpack.c.bf16 %v4168_v9, %v4164_v36  ;;  %v4206_v31 = vpack.c.bf16 %v4170_v37, %v4166_v3 }
 0xf7f   : > { %v4205_v22 = vpack.c.bf16 %v4169_v25, %v4165_v38  ;;  %v4207_v44 = vpack.c.bf16 %v4171_v56, %v4167_v16  ;;  %v3994_v34 = vpop.f32.mrb[108].mxu1  ;;  %v4107_v55 = vpop.f32.mrb[140].mxu0 }
 0xf80   : > { %v3995_v59 = vadd.f32 %v3994_v34, %v8382_v47  ;;  %v4108_v23 = vadd.f32 %v4107_v55, %v8386_v58  ;;  %v3996_v50 = vpop.f32.mrb[109].mxu1  ;;  %v4109_v8 = vpop.f32.mrb[141].mxu0  ;;  %v4735_v34 = vld [vmem:[%s6867_s24 + $0x10] sm:$0xff] }
 0xf81   : > { %v3997_v14 = vadd.f32 %v3996_v50, %v8390_v10  ;;  %v4110_v2 = vadd.f32 %v4109_v8, %v8392_v43  ;;  %v3998_v33 = vpop.f32.mrb[110].mxu1  ;;  %v4111_v41 = vpop.f32.mrb[142].mxu0  ;;  %4619 = vmatprep.mubr.bf16.mxu1 %v4205_v22 }
 0xf82   : > { %v3999_v46 = vadd.f32 %v3998_v33, %v8382_v47  ;;  %v4112_v17 = vadd.f32 %v4111_v41, %v8386_v58  ;;  %v4000_v11 = vpop.f32.mrb[111].mxu1  ;;  %v4113_v13 = vpop.f32.mrb[143].mxu0  ;;  %4620 = vmatmul.mubr.bf16.gmra.mrb[136].mxu1 %v4204_v27  ;;  %v4172_v0 = vmax.f32 %v3995_v59, 0.0  ;;  %v4174_v6 = vmax.f32 %v4108_v23, 0.0 }
 0xf83   : > { %v4001_v42 = vadd.f32 %v4000_v11, %v8390_v10  ;;  %v4114_v51 = vadd.f32 %v4113_v13, %v8392_v43  ;;  %v4173_v35 = vmax.f32 %v3997_v14, 0.0  ;;  %v4175_v4 = vmax.f32 %v4110_v2, 0.0  ;;  %v4736_v2 = vld [vmem:[%s6867_s24 + $0x18] sm:$0xff] }
 0xf84   : > { %v4176_v45 = vmax.f32 %v3999_v46, 0.0  ;;  %v4178_v1 = vmax.f32 %v4112_v17, 0.0 }
 0xf85   : > { %v4177_v28 = vmax.f32 %v4001_v42, 0.0  ;;  %v4179_v29 = vmax.f32 %v4114_v51, 0.0 }
 0xf86   : > { %v4208_v40 = vpack.c.bf16 %v4176_v45, %v4172_v0  ;;  %v4210_v47 = vpack.c.bf16 %v4178_v1, %v4174_v6 }
 0xf87   : > { %v4209_v39 = vpack.c.bf16 %v4177_v28, %v4173_v35  ;;  %v4211_v58 = vpack.c.bf16 %v4179_v29, %v4175_v4  ;;  %v4737_v35 = vld [vmem:[%s6867_s24 + $0x20] sm:$0xff] }
 0xf89   : > { %4627 = vmatprep.mubr.bf16.mxu1 %v4209_v39 }
 0xf8a   : > { %4628 = vmatmul.mubr.bf16.gmra.mrb[140].mxu1 %v4208_v40 }
 0xf8b   : > { %4716 = vmatprep.mubr.bf16.mxu1 %v4207_v44 }
 0xf92   : > { %4717 = vmatmul.mubr.bf16.vlgmr.msra.gmra.mrb[144].mxu1 %v4206_v31 }
 0xf93   : > { %4724 = vmatprep.mubr.bf16.mxu1 %v4211_v58  ;;  %v4738_v58 = vld [vmem:[%s6867_s24 + $0x28] sm:$0xff] }
 0xf9a   : > { %4725 = vmatmul.mubr.bf16.gmra.mrb[148].mxu1 %v4210_v47 }
0x1009   : > { %v5553_v10 = vpop.f32.mrb[112].mxu1  ;;  %v5617_v43 = vpop.f32.mrb[144].mxu0 }
0x100a   : > { %v5554_v32 = vpop.f32.mrb[113].mxu1  ;;  %v5618_v48 = vpop.f32.mrb[145].mxu0 }
0x100b   : > { %v5555_v18 = vadd.f32 %v5554_v32, %v5553_v10  ;;  %v5619_v61 = vadd.f32 %v5618_v48, %v5617_v43  ;;  %v5556_v52 = vpop.f32.mrb[114].mxu1  ;;  %v5620_v24 = vpop.f32.mrb[146].mxu0 }
0x100c   : > { %v5557_v63 = vpop.f32.mrb[115].mxu1  ;;  %v5621_v20 = vpop.f32.mrb[147].mxu0 }
0x100d   : > { %v4574_v5 = vadd.f32 %v5555_v18, %v8478_v26  ;;  %v5558_v19 = vadd.f32 %v5557_v63, %v5556_v52  ;;  %v5622_v21 = vadd.f32 %v5621_v20, %v5620_v24 }
0x100f   : > { %v4671_v49 = vadd.f32 %v5619_v61, %v4574_v5  ;;  %v4577_v62 = vadd.f32 %v5558_v19, %v8478_v26 }
0x1011   : > { %v4674_v30 = vadd.f32 %v5622_v21, %v4577_v62  ;;  %v5559_v57 = vpop.f32.mrb[116].mxu1  ;;  %v5623_v7 = vpop.f32.mrb[148].mxu0  ;;  %v8483_v12 = vadd.f32 %v4733_v15, %v4671_v49  ;;  %v4739_v21 = vld [vmem:[%s6867_s24 + $0x30] sm:$0xff]  ;;  %v4740_v15 = vld [vmem:[%s6867_s24 + $0x38] sm:$0xff] }
0x1012   : > { %v5560_v60 = vpop.f32.mrb[117].mxu1  ;;  %v5624_v53 = vpop.f32.mrb[149].mxu0 }
0x1013   : > { %v5561_v36 = vadd.f32 %v5560_v60, %v5559_v57  ;;  %v5625_v3 = vadd.f32 %v5624_v53, %v5623_v7  ;;  %v5562_v9 = vpop.f32.mrb[118].mxu1  ;;  %v5626_v37 = vpop.f32.mrb[150].mxu0  ;;  %4765 = vadd.xlane.f32.xlu0 %v8483_v12  ;;  %v8487_v38 = vadd.f32 %v4734_v54, %v4674_v30 }
0x1014   : > { %v5563_v16 = vpop.f32.mrb[119].mxu1  ;;  %v5627_v25 = vpop.f32.mrb[151].mxu0 }
0x1015   : > { %v4582_v56 = vadd.f32 %v5561_v36, %v8478_v26  ;;  %v5564_v27 = vadd.f32 %v5563_v16, %v5562_v9  ;;  %v5628_v31 = vadd.f32 %v5627_v25, %v5626_v37  ;;  %4767 = vadd.xlane.f32.xlu1 %v8487_v38 }
0x1017   : > { %v4679_v22 = vadd.f32 %v5625_v3, %v4582_v56  ;;  %v4585_v44 = vadd.f32 %v5564_v27, %v8478_v26 }
0x1019   : > { %v4682_v55 = vadd.f32 %v5628_v31, %v4585_v44  ;;  %v5565_v59 = vpop.f32.mrb[120].mxu1  ;;  %v5629_v23 = vpop.f32.mrb[152].mxu0  ;;  %v8493_v50 = vadd.f32 %v4735_v34, %v4679_v22  ;;  %v4741_v44 = vld [vmem:[%s6867_s24 + $0x40] sm:$0xff] }
0x101a   : > { %v5566_v8 = vpop.f32.mrb[121].mxu1  ;;  %v5630_v14 = vpop.f32.mrb[153].mxu0 }
0x101b   : > { %v5567_v33 = vadd.f32 %v5566_v8, %v5565_v59  ;;  %v5631_v41 = vadd.f32 %v5630_v14, %v5629_v23  ;;  %v5568_v46 = vpop.f32.mrb[122].mxu1  ;;  %v5632_v17 = vpop.f32.mrb[154].mxu0  ;;  %4769 = vadd.xlane.f32.xlu0 %v8493_v50  ;;  %v8497_v11 = vadd.f32 %v4736_v2, %v4682_v55  ;;  %v4742_v2 = vld [vmem:[%s6867_s24 + $0x48] sm:$0xff] }
0x101c   : > { %v5569_v13 = vpop.f32.mrb[123].mxu1  ;;  %v5633_v42 = vpop.f32.mrb[155].mxu0 }
0x101d   : > { %v4590_v51 = vadd.f32 %v5567_v33, %v8478_v26  ;;  %v5570_v0 = vadd.f32 %v5569_v13, %v5568_v46  ;;  %v5634_v6 = vadd.f32 %v5633_v42, %v5632_v17  ;;  %4771 = vadd.xlane.f32.xlu1 %v8497_v11 }
0x101f   : > { %v4687_v45 = vadd.f32 %v5631_v41, %v4590_v51  ;;  %v4593_v1 = vadd.f32 %v5570_v0, %v8478_v26 }
0x1021   : > { %v4690_v4 = vadd.f32 %v5634_v6, %v4593_v1  ;;  %v5571_v28 = vpop.f32.mrb[124].mxu1  ;;  %v5635_v29 = vpop.f32.mrb[156].mxu0  ;;  %v8503_v40 = vadd.f32 %v4737_v35, %v4687_v45 }
0x1022   : > { %v5572_v47 = vpop.f32.mrb[125].mxu1  ;;  %v5636_v39 = vpop.f32.mrb[157].mxu0 }
0x1023   : > { %v5573_v10 = vadd.f32 %v5572_v47, %v5571_v28  ;;  %v5637_v43 = vadd.f32 %v5636_v39, %v5635_v29  ;;  %v5574_v32 = vpop.f32.mrb[126].mxu1  ;;  %v5638_v48 = vpop.f32.mrb[158].mxu0  ;;  %4773 = vadd.xlane.f32.xlu0 %v8503_v40  ;;  %v8507_v18 = vadd.f32 %v4738_v58, %v4690_v4  ;;  %v4743_v4 = vld [vmem:[%s6867_s24 + $0x50] sm:$0xff]  ;;  %v4744_v58 = vld [vmem:[%s6867_s24 + $0x58] sm:$0xff] }
0x1024   : > { %v5575_v61 = vpop.f32.mrb[127].mxu1  ;;  %v5639_v52 = vpop.f32.mrb[159].mxu0 }
0x1025   : > { %v4598_v24 = vadd.f32 %v5573_v10, %v8478_v26  ;;  %v5576_v63 = vadd.f32 %v5575_v61, %v5574_v32  ;;  %v5640_v20 = vadd.f32 %v5639_v52, %v5638_v48  ;;  %4775 = vadd.xlane.f32.xlu1 %v8507_v18 }
0x1027   : > { %v4695_v5 = vadd.f32 %v5637_v43, %v4598_v24  ;;  %v4601_v19 = vadd.f32 %v5576_v63, %v8478_v26 }
0x1029   : > { %v4698_v49 = vadd.f32 %v5640_v20, %v4601_v19  ;;  %v8513_v62 = vadd.f32 %v4739_v21, %v4695_v5 }
0x102b   : > { %4777 = vadd.xlane.f32.xlu0 %v8513_v62  ;;  %v8517_v30 = vadd.f32 %v4740_v15, %v4698_v49 }
0x102d   : > { %4779 = vadd.xlane.f32.xlu1 %v8517_v30 }
0x1045   : > { %v5577_v57 = vpop.f32.mrb[128].mxu1  ;;  %v5641_v7 = vpop.f32.mrb[160].mxu0 }
0x1046   : > { %v5578_v60 = vpop.f32.mrb[129].mxu1  ;;  %v5642_v53 = vpop.f32.mrb[161].mxu0 }
0x1047   : > { %v5579_v54 = vadd.f32 %v5578_v60, %v5577_v57  ;;  %v5643_v36 = vadd.f32 %v5642_v53, %v5641_v7  ;;  %v5580_v3 = vpop.f32.mrb[130].mxu1  ;;  %v5644_v9 = vpop.f32.mrb[162].mxu0 }
0x1048   : > { %v5581_v37 = vpop.f32.mrb[131].mxu1  ;;  %v5645_v16 = vpop.f32.mrb[163].mxu0 }
0x1049   : > { %v4606_v25 = vadd.f32 %v5579_v54, %v8478_v26  ;;  %v5582_v56 = vadd.f32 %v5581_v37, %v5580_v3  ;;  %v5646_v27 = vadd.f32 %v5645_v16, %v5644_v9  ;;  %v4745_v3 = vld [vmem:[%s6867_s24 + $0x60] sm:$0xff]  ;;  %v4746_v16 = vld [vmem:[%s6867_s24 + $0x68] sm:$0xff] }
0x104b   : > { %v4703_v31 = vadd.f32 %v5643_v36, %v4606_v25  ;;  %v4609_v22 = vadd.f32 %v5582_v56, %v8478_v26 }
0x104d   : > { %v4706_v34 = vadd.f32 %v5646_v27, %v4609_v22  ;;  %v5583_v55 = vpop.f32.mrb[132].mxu1  ;;  %v5647_v59 = vpop.f32.mrb[164].mxu0  ;;  %v8523_v23 = vadd.f32 %v4741_v44, %v4703_v31 }
0x104e   : > { %v5584_v8 = vpop.f32.mrb[133].mxu1  ;;  %v5648_v14 = vpop.f32.mrb[165].mxu0 }
0x104f   : > { %v5585_v33 = vadd.f32 %v5584_v8, %v5583_v55  ;;  %v5649_v41 = vadd.f32 %v5648_v14, %v5647_v59  ;;  %v5586_v46 = vpop.f32.mrb[134].mxu1  ;;  %v5650_v17 = vpop.f32.mrb[166].mxu0  ;;  %4781 = vadd.xlane.f32.xlu0 %v8523_v23  ;;  %v8527_v13 = vadd.f32 %v4742_v2, %v4706_v34  ;;  %v4747_v14 = vld [vmem:[%s6867_s24 + $0x70] sm:$0xff] }
0x1050   : > { %v5587_v42 = vpop.f32.mrb[135].mxu1  ;;  %v5651_v51 = vpop.f32.mrb[167].mxu0 }
0x1051   : > { %v4614_v0 = vadd.f32 %v5585_v33, %v8478_v26  ;;  %v5588_v6 = vadd.f32 %v5587_v42, %v5586_v46  ;;  %v5652_v45 = vadd.f32 %v5651_v51, %v5650_v17  ;;  %4783 = vadd.xlane.f32.xlu1 %v8527_v13 }
0x1053   : > { %v4711_v1 = vadd.f32 %v5649_v41, %v4614_v0  ;;  %v4617_v35 = vadd.f32 %v5588_v6, %v8478_v26  ;;  %v4748_v41 = vld [vmem:[%s6867_s24 + $0x78] sm:$0xff] }
0x1055   : > { %v4714_v28 = vadd.f32 %v5652_v45, %v4617_v35  ;;  %v5589_v29 = vpop.f32.mrb[136].mxu1  ;;  %v8533_v47 = vadd.f32 %v4743_v4, %v4711_v1 }
0x1056   : > { %v5590_v39 = vpop.f32.mrb[137].mxu1 }
0x1057   : > { %v5591_v10 = vadd.f32 %v5590_v39, %v5589_v29  ;;  %v5592_v43 = vpop.f32.mrb[138].mxu1  ;;  %4785 = vadd.xlane.f32.xlu0 %v8533_v47  ;;  %v8537_v32 = vadd.f32 %v4744_v58, %v4714_v28 }
0x1058   : > { %v5593_v48 = vpop.f32.mrb[139].mxu1 }
0x1059   : > { %v5594_v61 = vadd.f32 %v5593_v48, %v5592_v43  ;;  %4787 = vadd.xlane.f32.xlu1 %v8537_v32  ;;  %v4622_v15 = vadd.f32 %v5591_v10, %v8478_v26 }
0x105b   : > { %v4625_v53 = vadd.f32 %v5594_v61, %v8478_v26 }
0x105d   : > { %v5595_v52 = vpop.f32.mrb[140].mxu1 }
0x105e   : > { %v5596_v24 = vpop.f32.mrb[141].mxu1 }
0x105f   : > { %v5597_v63 = vadd.f32 %v5596_v24, %v5595_v52  ;;  %v5598_v20 = vpop.f32.mrb[142].mxu1 }
0x1060   : > { %v5599_v5 = vpop.f32.mrb[143].mxu1 }
0x1061   : > { %v5600_v19 = vadd.f32 %v5599_v5, %v5598_v20  ;;  %v4630_v31 = vadd.f32 %v5597_v63, %v8478_v26 }
0x1063   : > { %v4633_v55 = vadd.f32 %v5600_v19, %v8478_v26 }
0x1065   : > { %v5653_v21 = vpop.f32.mrb[144].mxu1 }
0x1066   : > { %v5654_v49 = vpop.f32.mrb[145].mxu1 }
0x1067   : > { %v5655_v57 = vadd.f32 %v5654_v49, %v5653_v21  ;;  %v5656_v7 = vpop.f32.mrb[146].mxu1 }
0x1068   : > { %v5657_v60 = vpop.f32.mrb[147].mxu1 }
0x1069   : > { %v4719_v54 = vadd.f32 %v5655_v57, %v4622_v15  ;;  %v5658_v36 = vadd.f32 %v5657_v60, %v5656_v7 }
0x106b   : > { %v4722_v9 = vadd.f32 %v5658_v36, %v4625_v53  ;;  %v8543_v37 = vadd.f32 %v4745_v3, %v4719_v54 }
0x106d   : > { %v5659_v25 = vpop.f32.mrb[148].mxu1  ;;  %4789 = vadd.xlane.f32.xlu0 %v8543_v37  ;;  %v8547_v56 = vadd.f32 %v4746_v16, %v4722_v9 }
0x106e   : > { %v5660_v27 = vpop.f32.mrb[149].mxu1 }
0x106f   : > { %v5661_v22 = vadd.f32 %v5660_v27, %v5659_v25  ;;  %v5662_v44 = vpop.f32.mrb[150].mxu1  ;;  %4791 = vadd.xlane.f32.xlu1 %v8547_v56 }
0x1070   : > { %v5663_v34 = vpop.f32.mrb[151].mxu1 }
0x1071   : > { %v4727_v59 = vadd.f32 %v5661_v22, %v4630_v31  ;;  %v5664_v8 = vadd.f32 %v5663_v34, %v5662_v44 }
0x1073   : > { %v4730_v2 = vadd.f32 %v5664_v8, %v4633_v55  ;;  %v8553_v33 = vadd.f32 %v4747_v14, %v4727_v59 }
0x1075   : > { %4793 = vadd.xlane.f32.xlu0 %v8553_v33  ;;  %v8557_v46 = vadd.f32 %v4748_v41, %v4730_v2 }
0x1077   : > { %4795 = vadd.xlane.f32.xlu1 %v8557_v46 }
0x10a0   : > { %v4766_v17 = vpop.xlane.xlu0 %4765 }
0x10a1   : > { %v4797_v42 = vmul.f32 0.0078125, %v4766_v17 }
0x10a2   : > { %v4768_v51 = vpop.xlane.xlu1 %4767 }
0x10a3   : > { %v8561_v0 = vsub.f32 %v8483_v12, %v4797_v42  ;;  %v4798_v26 = vmul.f32 0.0078125, %v4768_v51 }
0x10a5   : > { %v8564_v6 = vsub.f32 %v8487_v38, %v4798_v26  ;;  %v4829_v45 = vmul.f32 %v8561_v0, %v8561_v0 }
0x10a7   : > { %4845 = vadd.xlane.f32.xlu0 %v4829_v45  ;;  %v4830_v1 = vmul.f32 %v8564_v6, %v8564_v6 }
0x10a8   : > { %v4770_v35 = vpop.xlane.xlu0 %4769 }
0x10a9   : > { %v4799_v4 = vmul.f32 0.0078125, %v4770_v35  ;;  %4847 = vadd.xlane.f32.xlu1 %v4830_v1 }
0x10aa   : > { %v4772_v28 = vpop.xlane.xlu1 %4771 }
0x10ab   : > { %v8571_v29 = vsub.f32 %v8493_v50, %v4799_v4  ;;  %v4800_v12 = vmul.f32 0.0078125, %v4772_v28 }
0x10ad   : > { %v8574_v39 = vsub.f32 %v8497_v11, %v4800_v12  ;;  %v4831_v38 = vmul.f32 %v8571_v29, %v8571_v29 }
0x10af   : > { %4849 = vadd.xlane.f32.xlu0 %v4831_v38  ;;  %v4832_v58 = vmul.f32 %v8574_v39, %v8574_v39 }
0x10b0   : > { %v4774_v10 = vpop.xlane.xlu0 %4773 }
0x10b1   : > { %v4801_v43 = vmul.f32 0.0078125, %v4774_v10  ;;  %4851 = vadd.xlane.f32.xlu1 %v4832_v58 }
0x10b2   : > { %v4776_v48 = vpop.xlane.xlu1 %4775 }
0x10b3   : > { %v8581_v61 = vsub.f32 %v8503_v40, %v4801_v43  ;;  %v4802_v50 = vmul.f32 0.0078125, %v4776_v48  ;;  %v8645_v43 = vld [vmem:[%s645_s3] ss:$0 sm:$0xff] }
0x10b5   : > { %v8584_v52 = vsub.f32 %v8507_v18, %v4802_v50  ;;  %v4833_v11 = vmul.f32 %v8581_v61, %v8581_v61 }
0x10b7   : > { %4853 = vadd.xlane.f32.xlu0 %v4833_v11  ;;  %v4834_v24 = vmul.f32 %v8584_v52, %v8584_v52 }
0x10b8   : > { %v4778_v63 = vpop.xlane.xlu0 %4777 }
0x10b9   : > { %v4803_v20 = vmul.f32 0.0078125, %v4778_v63  ;;  %4855 = vadd.xlane.f32.xlu1 %v4834_v24  ;;  %v8653_v24 = vld [vmem:[%s648_s7] ss:$0 sm:$0xff]  ;;  %s8889_s7 = sld [smem:[#allocation12_spill]] }
0x10ba   : > { %v4780_v5 = vpop.xlane.xlu1 %4779 }
0x10bb   : > { %v8591_v19 = vsub.f32 %v8513_v62, %v4803_v20  ;;  %v4804_v40 = vmul.f32 0.0078125, %v4780_v5 }
0x10bd   : > { %v8594_v21 = vsub.f32 %v8517_v30, %v4804_v40  ;;  %v4835_v18 = vmul.f32 %v8591_v19, %v8591_v19 }
0x10bf   : > { %4857 = vadd.xlane.f32.xlu0 %v4835_v18  ;;  %v4836_v49 = vmul.f32 %v8594_v21, %v8594_v21  ;;  %s5376_s29 = sshll.u32 %s8889_s7, 11 }
0x10c0   : > { %s8720_s18 = scalar_lea.hbm %s8892_s17, %s5376_s29 }
0x10c1   : > { %4859 = vadd.xlane.f32.xlu1 %v4836_v49 }
0x10dc   : > { %v4782_v15 = vpop.xlane.xlu0 %4781 }
0x10dd   : > { %v4805_v57 = vmul.f32 0.0078125, %v4782_v15 }
0x10de   : > { %v4784_v7 = vpop.xlane.xlu1 %4783 }
0x10df   : > { %v8601_v60 = vsub.f32 %v8523_v23, %v4805_v57  ;;  %v4806_v62 = vmul.f32 0.0078125, %v4784_v7 }
0x10e1   : > { %v8604_v53 = vsub.f32 %v8527_v13, %v4806_v62  ;;  %v4837_v30 = vmul.f32 %v8601_v60, %v8601_v60 }
0x10e3   : > { %4861 = vadd.xlane.f32.xlu0 %v4837_v30  ;;  %v4838_v54 = vmul.f32 %v8604_v53, %v8604_v53 }
0x10e4   : > { %v4786_v36 = vpop.xlane.xlu0 %4785 }
0x10e5   : > { %v4807_v3 = vmul.f32 0.0078125, %v4786_v36  ;;  %4863 = vadd.xlane.f32.xlu1 %v4838_v54 }
0x10e6   : > { %v4788_v9 = vpop.xlane.xlu1 %4787 }
0x10e7   : > { %v8611_v16 = vsub.f32 %v8533_v47, %v4807_v3  ;;  %v4808_v23 = vmul.f32 0.0078125, %v4788_v9 }
0x10e9   : > { %v8614_v25 = vsub.f32 %v8537_v32, %v4808_v23  ;;  %v4839_v13 = vmul.f32 %v8611_v16, %v8611_v16 }
0x10eb   : > { %4865 = vadd.xlane.f32.xlu0 %v4839_v13  ;;  %v4840_v27 = vmul.f32 %v8614_v25, %v8614_v25 }
0x10ed   : > { %4867 = vadd.xlane.f32.xlu1 %v4840_v27 }
0x10fa   : > { %v4790_v31 = vpop.xlane.xlu0 %4789 }
0x10fb   : > { %v4809_v22 = vmul.f32 0.0078125, %v4790_v31 }
0x10fc   : > { %v4792_v44 = vpop.xlane.xlu1 %4791 }
0x10fd   : > { %v8621_v34 = vsub.f32 %v8543_v37, %v4809_v22  ;;  %v4810_v47 = vmul.f32 0.0078125, %v4792_v44 }
0x10ff   : > { %v8624_v55 = vsub.f32 %v8547_v56, %v4810_v47  ;;  %v4841_v32 = vmul.f32 %v8621_v34, %v8621_v34 }
0x1101   : > { %4869 = vadd.xlane.f32.xlu0 %v4841_v32  ;;  %v4842_v59 = vmul.f32 %v8624_v55, %v8624_v55 }
0x1102   : > { %v4794_v8 = vpop.xlane.xlu0 %4793 }
0x1103   : > { %v4811_v14 = vmul.f32 0.0078125, %v4794_v8  ;;  %4871 = vadd.xlane.f32.xlu1 %v4842_v59 }
0x1104   : > { %v4796_v2 = vpop.xlane.xlu1 %4795 }
0x1105   : > { %v8631_v41 = vsub.f32 %v8553_v33, %v4811_v14  ;;  %v4812_v37 = vmul.f32 0.0078125, %v4796_v2 }
0x1107   : > { %v8634_v17 = vsub.f32 %v8557_v46, %v4812_v37  ;;  %v4843_v56 = vmul.f32 %v8631_v41, %v8631_v41 }
0x1109   : > { %4873 = vadd.xlane.f32.xlu0 %v4843_v56  ;;  %v4844_v42 = vmul.f32 %v8634_v17, %v8634_v17 }
0x110b   : > { %4875 = vadd.xlane.f32.xlu1 %v4844_v42 }
0x1134   : > { %v4846_v51 = vpop.xlane.xlu0 %4845 }
0x1135   : > { %v4877_v26 = vmul.f32 0.0078125, %v4846_v51 }
0x1136   : > { %v4848_v45 = vpop.xlane.xlu1 %4847 }
0x1137   : > { %v4893_v1 = vadd.f32 1e-05, %v4877_v26  ;;  %v4878_v35 = vmul.f32 0.0078125, %v4848_v45 }
0x1139   : > { %6520 = vrsqrt.f32 %v4893_v1  ;;  %v4894_v33 = vadd.f32 1e-05, %v4878_v35 }
0x113b   : > { %6522 = vrsqrt.f32 %v4894_v33 }
0x113c   : > { %v4850_v46 = vpop.xlane.xlu0 %4849 }
0x113d   : > { %v4879_v4 = vmul.f32 0.0078125, %v4850_v46 }
0x113e   : > { %v4852_v28 = vpop.xlane.xlu1 %4851 }
0x113f   : > { %v4895_v12 = vadd.f32 1e-05, %v4879_v4  ;;  %v4880_v38 = vmul.f32 0.0078125, %v4852_v28 }
0x1141   : > { %6524 = vrsqrt.f32 %v4895_v12  ;;  %v4896_v58 = vadd.f32 1e-05, %v4880_v38 }
0x1143   : > { %v6521_v10 = vpop.eup %6520  ;;  %6526 = vrsqrt.f32 %v4896_v58 }
0x1144   : > { %v4925_v48 = vmul.f32 %v6521_v10, %v8561_v0  ;;  %v4854_v50 = vpop.xlane.xlu0 %4853 }
0x1145   : > { %v6523_v11 = vpop.eup %6522  ;;  %v4881_v63 = vmul.f32 0.0078125, %v4854_v50 }
0x1146   : > { %v4948_v20 = vmul.f32 %v8645_v43, %v4925_v48  ;;  %v4926_v5 = vmul.f32 %v6523_v11, %v8564_v6  ;;  %v4856_v40 = vpop.xlane.xlu1 %4855 }
0x1147   : > { %v4897_v18 = vadd.f32 1e-05, %v4881_v63  ;;  %v4882_v49 = vmul.f32 0.0078125, %v4856_v40 }
0x1148   : > { %v4971_v15 = vadd.f32 %v8653_v24, %v4948_v20  ;;  %v4949_v0 = vmul.f32 %v8645_v43, %v4926_v5 }
0x1149   : > { %6528 = vrsqrt.f32 %v4897_v18  ;;  %v4898_v57 = vadd.f32 1e-05, %v4882_v49 }
0x114a   : > { %4987 = vst [vmem:[%s6867_s24] sm:$0xff] %v4971_v15  ;;  %v4972_v7 = vadd.f32 %v8653_v24, %v4949_v0 }
0x114b   : > { %v6525_v62 = vpop.eup %6524  ;;  %6530 = vrsqrt.f32 %v4898_v57 }
0x114c   : > { %4988 = vst [vmem:[%s6867_s24 + $0x8] sm:$0xff] %v4972_v7  ;;  %v4927_v30 = vmul.f32 %v6525_v62, %v8571_v29  ;;  %v4858_v54 = vpop.xlane.xlu0 %4857 }
0x114d   : > { %v6527_v6 = vpop.eup %6526  ;;  %v4883_v36 = vmul.f32 0.0078125, %v4858_v54 }
0x114e   : > { %v4950_v3 = vmul.f32 %v8645_v43, %v4927_v30  ;;  %v4928_v9 = vmul.f32 %v6527_v6, %v8574_v39  ;;  %v4860_v23 = vpop.xlane.xlu1 %4859 }
0x114f   : > { %v4899_v13 = vadd.f32 1e-05, %v4883_v36  ;;  %v4884_v27 = vmul.f32 0.0078125, %v4860_v23 }
0x1150   : > { %v4973_v31 = vadd.f32 %v8653_v24, %v4950_v3  ;;  %v4951_v22 = vmul.f32 %v8645_v43, %v4928_v9 }
0x1151   : > { %6532 = vrsqrt.f32 %v4899_v13  ;;  %v4900_v44 = vadd.f32 1e-05, %v4884_v27 }
0x1152   : > { %4989 = vst [vmem:[%s6867_s24 + $0x10] sm:$0xff] %v4973_v31  ;;  %v4974_v29 = vadd.f32 %v8653_v24, %v4951_v22 }
0x1153   : > { %v6529_v47 = vpop.eup %6528  ;;  %6534 = vrsqrt.f32 %v4900_v44 }
0x1154   : > { %4990 = vst [vmem:[%s6867_s24 + $0x18] sm:$0xff] %v4974_v29  ;;  %v4929_v32 = vmul.f32 %v6529_v47, %v8581_v61 }
0x1155   : > { %v6531_v39 = vpop.eup %6530 }
0x1156   : > { %v4952_v59 = vmul.f32 %v8645_v43, %v4929_v32  ;;  %v4930_v8 = vmul.f32 %v6531_v39, %v8584_v52 }
0x1158   : > { %v4975_v14 = vadd.f32 %v8653_v24, %v4952_v59  ;;  %v4953_v2 = vmul.f32 %v8645_v43, %v4930_v8 }
0x115a   : > { %4991 = vst [vmem:[%s6867_s24 + $0x20] sm:$0xff] %v4975_v14  ;;  %v4976_v37 = vadd.f32 %v8653_v24, %v4953_v2 }
0x115b   : > { %v6533_v56 = vpop.eup %6532 }
0x115c   : > { %4992 = vst [vmem:[%s6867_s24 + $0x28] sm:$0xff] %v4976_v37  ;;  %v4931_v42 = vmul.f32 %v6533_v56, %v8591_v19 }
0x115d   : > { %v6535_v51 = vpop.eup %6534 }
0x115e   : > { %v4954_v61 = vmul.f32 %v8645_v43, %v4931_v42  ;;  %v4932_v26 = vmul.f32 %v6535_v51, %v8594_v21 }
0x1160   : > { %v4977_v45 = vadd.f32 %v8653_v24, %v4954_v61  ;;  %v4955_v52 = vmul.f32 %v8645_v43, %v4932_v26 }
0x1162   : > { %4993 = vst [vmem:[%s6867_s24 + $0x30] sm:$0xff] %v4977_v45  ;;  %v4978_v1 = vadd.f32 %v8653_v24, %v4955_v52 }
0x1164   : > { %4994 = vst [vmem:[%s6867_s24 + $0x38] sm:$0xff] %v4978_v1 }
0x1170   : > { %v4862_v35 = vpop.xlane.xlu0 %4861 }
0x1171   : > { %v4885_v33 = vmul.f32 0.0078125, %v4862_v35 }
0x1172   : > { %v4864_v46 = vpop.xlane.xlu1 %4863 }
0x1173   : > { %v4901_v4 = vadd.f32 1e-05, %v4885_v33  ;;  %v4886_v28 = vmul.f32 0.0078125, %v4864_v46 }
0x1175   : > { %6536 = vrsqrt.f32 %v4901_v4  ;;  %v4902_v19 = vadd.f32 1e-05, %v4886_v28 }
0x1177   : > { %6538 = vrsqrt.f32 %v4902_v19 }
0x1178   : > { %v4866_v12 = vpop.xlane.xlu0 %4865 }
0x1179   : > { %v4887_v38 = vmul.f32 0.0078125, %v4866_v12 }
0x117a   : > { %v4868_v21 = vpop.xlane.xlu1 %4867 }
0x117b   : > { %v4903_v58 = vadd.f32 1e-05, %v4887_v38  ;;  %v4888_v10 = vmul.f32 0.0078125, %v4868_v21 }
0x117d   : > { %6540 = vrsqrt.f32 %v4903_v58  ;;  %v4904_v48 = vadd.f32 1e-05, %v4888_v10 }
0x117f   : > { %v6537_v50 = vpop.eup %6536  ;;  %6542 = vrsqrt.f32 %v4904_v48 }
0x1180   : > { %v4933_v11 = vmul.f32 %v6537_v50, %v8601_v60 }
0x1181   : > { %v6539_v63 = vpop.eup %6538 }
0x1182   : > { %v4956_v20 = vmul.f32 %v8645_v43, %v4933_v11  ;;  %v4934_v5 = vmul.f32 %v6539_v63, %v8604_v53 }
0x1184   : > { %v4979_v40 = vadd.f32 %v8653_v24, %v4956_v20  ;;  %v4957_v18 = vmul.f32 %v8645_v43, %v4934_v5 }
0x1186   : > { %4995 = vst [vmem:[%s6867_s24 + $0x40] sm:$0xff] %v4979_v40  ;;  %v4980_v49 = vadd.f32 %v8653_v24, %v4957_v18 }
0x1187   : > { %v6541_v15 = vpop.eup %6540 }
0x1188   : > { %4996 = vst [vmem:[%s6867_s24 + $0x48] sm:$0xff] %v4980_v49  ;;  %v4935_v0 = vmul.f32 %v6541_v15, %v8611_v16 }
0x1189   : > { %v6543_v57 = vpop.eup %6542 }
0x118a   : > { %v4958_v60 = vmul.f32 %v8645_v43, %v4935_v0  ;;  %v4936_v7 = vmul.f32 %v6543_v57, %v8614_v25 }
0x118c   : > { %v4981_v62 = vadd.f32 %v8653_v24, %v4958_v60  ;;  %v4959_v53 = vmul.f32 %v8645_v43, %v4936_v7 }
0x118e   : > { %4997 = vst [vmem:[%s6867_s24 + $0x50] sm:$0xff] %v4981_v62  ;;  %v4982_v30 = vadd.f32 %v8653_v24, %v4959_v53  ;;  %v4870_v54 = vpop.xlane.xlu0 %4869 }
0x118f   : > { %v4889_v6 = vmul.f32 0.0078125, %v4870_v54 }
0x1190   : > { %4998 = vst [vmem:[%s6867_s24 + $0x58] sm:$0xff] %v4982_v30  ;;  %v4872_v36 = vpop.xlane.xlu1 %4871 }
0x1191   : > { %v4905_v3 = vadd.f32 1e-05, %v4889_v6  ;;  %v4890_v9 = vmul.f32 0.0078125, %v4872_v36 }
0x1193   : > { %6544 = vrsqrt.f32 %v4905_v3  ;;  %v4906_v16 = vadd.f32 1e-05, %v4890_v9 }
0x1195   : > { %6546 = vrsqrt.f32 %v4906_v16 }
0x1196   : > { %v4874_v23 = vpop.xlane.xlu0 %4873 }
0x1197   : > { %v4891_v13 = vmul.f32 0.0078125, %v4874_v23 }
0x1198   : > { %v4876_v25 = vpop.xlane.xlu1 %4875 }
0x1199   : > { %v4907_v27 = vadd.f32 1e-05, %v4891_v13  ;;  %v4892_v31 = vmul.f32 0.0078125, %v4876_v25 }
0x119b   : > { %6548 = vrsqrt.f32 %v4907_v27  ;;  %v4908_v22 = vadd.f32 1e-05, %v4892_v31 }
0x119d   : > { %v6545_v44 = vpop.eup %6544  ;;  %6550 = vrsqrt.f32 %v4908_v22 }
0x119e   : > { %v4937_v29 = vmul.f32 %v6545_v44, %v8621_v34 }
0x119f   : > { %v6547_v47 = vpop.eup %6546 }
0x11a0   : > { %v4960_v32 = vmul.f32 %v8645_v43, %v4937_v29  ;;  %v4938_v39 = vmul.f32 %v6547_v47, %v8624_v55 }
0x11a2   : > { %v4983_v59 = vadd.f32 %v8653_v24, %v4960_v32  ;;  %v4961_v8 = vmul.f32 %v8645_v43, %v4938_v39 }
0x11a4   : > { %4999 = vst [vmem:[%s6867_s24 + $0x60] sm:$0xff] %v4983_v59  ;;  %v4984_v14 = vadd.f32 %v8653_v24, %v4961_v8 }
0x11a5   : > { %v6549_v2 = vpop.eup %6548 }
0x11a6   : > { %5000 = vst [vmem:[%s6867_s24 + $0x68] sm:$0xff] %v4984_v14  ;;  %v4939_v37 = vmul.f32 %v6549_v2, %v8631_v41 }
0x11a7   : > { %v6551_v34 = vpop.eup %6550 }
0x11a8   : > { %v4962_v56 = vmul.f32 %v8645_v43, %v4939_v37  ;;  %v4940_v55 = vmul.f32 %v6551_v34, %v8634_v17 }
0x11aa   : > { %v4985_v42 = vadd.f32 %v8653_v24, %v4962_v56  ;;  %v4963_v51 = vmul.f32 %v8645_v43, %v4940_v55 }
0x11ac   : > { %5001 = vst [vmem:[%s6867_s24 + $0x70] sm:$0xff] %v4985_v42  ;;  %v4986_v41 = vadd.f32 %v8653_v24, %v4963_v51 }
0x11ae   : > { %5002 = vst [vmem:[%s6867_s24 + $0x78] sm:$0xff] %v4986_v41 }
0x11af   : > { %6565 = shalt.err (!%p6562_p8)
}
0x11b0   : > { %s6566_s24 = scalar_lea.hbm %s8720_s18, 2048  ;;  %s6570_s28 = scalar_lea.hbm %s8892_s17, 4096 }
0x11b1   : > { %p6567_p10 = scmp.ne.s32.totalorder %s8720_s18, %s6566_s24  ;;  %p6571_p13 = scmp.lt.u32.totalorder %s8720_s18, %s8892_s17 }
0x11b2   : > { %p6572_p0 = scmp.lt.u32.totalorder %s6570_s28, %s6566_s24  ;;  %p6574_p2 = scmp.lt.u32.totalorder %s6566_s24, %s8720_s18 }
0x11b3   : > { %p6568_p11 = pnand %p6567_p10, %p6774_p3 }
0x11b4   : > { %p6573_p1 = por %p6572_p0, %p6571_p13 }
0x11b5   : > { %p6569_p12 = pneg %p6568_p11 }
0x11b6   : > { %p6575_p4 = por %p6574_p2, %p6573_p1 }
0x11b8   : > { %p6576_p5 = pnand %p6575_p4, %p6569_p12 }
0x11ba   : > { %6579 = shalt.err (!%p6576_p5)
}
0x11bb   : > { %s6653_s20 = smov 128   ;;  %s6654_s27 = smov 8  }
0x11bc   : > { %6035 = dma.vmem_to_hbm [thread:$0]  (%p6774_p3), %s8722_s1, 2048, %s8720_s18, %s8729_s25, %s6653_s20, %s6653_s20, %s6654_s27  }
0x11bd PF: > { %s8894_s7 = sld [smem:[#allocation15_spill]]  ;;  %s8895_s30 = sld [smem:[#allocation8_spill]] }
0x11c3   : > { %p6041_p6 = scmp.ge.s32.totalorder %s8894_s7, 2  ;;  %s5032_s2 = sand.u32 1, %s8895_s30  }
0x11c4   : > { %s5033_s15 = scalar_lea.sflag [#allocation6], %s5032_s2 }
0x11c5   : > { %p6038_p7 = pnand %p6041_p6, %p6784_p9 }
0x11c7   : > { %6613 = dma.done.wait (!%p6038_p7), %s5033_s15, 2048  }
0x11c8   : > { %6615 = vsyncadd (!%p6038_p7), %s5033_s15, 4294965248  ;;  %s26_s15 = sadd.s32 1, %s8894_s7   ;;  %s8897_s25 = sld [smem:[#allocation9_spill]] }
0x11c9   : > { %p23_p8 = scmp.ge.s32.totalorder %s26_s15, 6   ;;  %s8898_s26 = sld [smem:[#allocation10_spill]] }
0x11ca   : > { %s8899_s27 = sld [smem:[#allocation20_spill]]  ;;  %s8900_s28 = sld [smem:[#allocation13_spill]] }
0x11cb   : > { %s8901_s29 = sld [smem:[#allocation14_spill]]  ;;  %s8902_s30 = sld [smem:[#allocation16_spill]] }
0x11cc   : > { %s8903_s14 = sld [smem:[#allocation18_spill]]  ;;  %25 = sbr.rel (!%p23_p8) target bundleno = 12 (0xc), region = 147 }
0x11d3   :  { %5038 = vsyncpa [#allocation6], 1 }
0x11d4   :  { %5040 = vsyncpa [#allocation6 + $0x1], 1 }

</bundles_post_ra>
